<compile_context>
chip_gen: v7x
topology: tpu7x:2x2x1
jax: 0.10.0
libtpu: 0.0.40
codegen_flags: <defaults>
</compile_context>

<pallas_src>
import jax
import jax.numpy as jnp
import numpy as np
from jax import lax
from jax.experimental import pallas as pl
from jax.experimental.pallas import tpu as pltpu  # noqa: F401  (kept for parity)


# ----------------------------------------------------------------------------
# Pallas kernels
# ----------------------------------------------------------------------------
def _conv1_pool_relu_kernel(p_ref, w_ref, b_ref, o_ref):
    # p_ref: (4*M, 25) im2col patches, rows ordered (pool_offset, b, ph, pw)
    # w_ref: (25, 16); b_ref: (1, 16); o_ref: (M, 16) with M = B*144
    m = o_ref.shape[0]
    y = jnp.dot(p_ref[...], w_ref[...], preferred_element_type=jnp.float32)
    pooled = jnp.maximum(jnp.maximum(y[0 * m:1 * m], y[1 * m:2 * m]),
                         jnp.maximum(y[2 * m:3 * m], y[3 * m:4 * m]))
    # per-channel bias is constant over the 2x2 pool window, so bias-after-max
    # + ReLU is identical to conv+bias -> maxpool -> ReLU.
    o_ref[...] = jnp.maximum(pooled + b_ref[...], 0.0)


def _conv2_pool_relu_mlp_kernel(p_ref, w2_ref, b2_ref, wf1_ref, bf1_ref,
                                wf2_ref, bf2_ref, o_ref):
    # p_ref : (4*16*B, 400) conv2 im2col patches, rows ordered (pool_offset, p, b)
    # w2_ref: (400, 32); b2_ref: (1, 32)
    # wf1_ref: (16, 32, 512)  fc1 weights permuted to channels-last flatten (p, c, n)
    # bf1_ref: (1, 512); wf2_ref: (512, 128) zero-padded; bf2_ref: (1, 128)
    # o_ref : (B, 128)
    bsz = o_ref.shape[0]
    m = 16 * bsz

    # conv2 over all pool offsets / positions / batch as a single matmul
    y = jnp.dot(p_ref[...], w2_ref[...], preferred_element_type=jnp.float32)
    pooled = jnp.maximum(jnp.maximum(y[0 * m:1 * m], y[1 * m:2 * m]),
                         jnp.maximum(y[2 * m:3 * m], y[3 * m:4 * m]))
    h = jnp.maximum(pooled + b2_ref[...], 0.0)            # (16*B, 32), rows (p, b)

    # fc1 on the channels-last flatten:  out[b] = sum_p h[p*B:(p+1)*B] @ wf1[p]
    acc = jnp.zeros((bsz, wf1_ref.shape[2]), jnp.float32)
    for p in range(16):
        acc = acc + jnp.dot(h[p * bsz:(p + 1) * bsz, :], wf1_ref[p],
                            preferred_element_type=jnp.float32)
    h_fc1 = jnp.maximum(acc + bf1_ref[...], 0.0)          # (B, 512)

    # fc2 (padded to 128 lanes -> unmasked, lane-dense store)
    o_ref[...] = (jnp.dot(h_fc1, wf2_ref[...], preferred_element_type=jnp.float32)
                  + bf2_ref[...])


# ----------------------------------------------------------------------------
# One-time weight preparation (no per-call transposes inside forward)
# ----------------------------------------------------------------------------
def prepare_params(params):
    (w1, b1, w2, b2, wf1, bf1, wf2, bf2) = params
    w1m = jnp.asarray(w1).reshape(16, 25).T                              # (25,16), rows (kh,kw)
    w2m = jnp.transpose(jnp.asarray(w2), (2, 3, 1, 0)).reshape(400, 32)  # rows (kh,kw,ci)
    # fc1.weight is (512_out, 512_in) with input index = c*16 + p (NCHW flatten).
    # Permute to (p, c, n) so the kernel consumes the channels-last flatten directly.
    wf1p = jnp.transpose(jnp.asarray(wf1).reshape(512, 32, 16), (2, 1, 0))   # (16,32,512)
    wf2p = jnp.zeros((512, 128), jnp.float32).at[:, :10].set(jnp.asarray(wf2).T)
    bf2p = jnp.zeros((1, 128), jnp.float32).at[0, :10].set(jnp.asarray(bf2))
    return (w1m, jnp.asarray(b1).reshape(1, 16),
            w2m, jnp.asarray(b2).reshape(1, 32),
            wf1p, jnp.asarray(bf1).reshape(1, 512), wf2p, bf2p)


# ----------------------------------------------------------------------------
# Forward pass (two pallas_calls + tiny static-slice im2col glue)
# ----------------------------------------------------------------------------
@jax.jit
def forward(x, prepped):
    (w1m, b1, w2m, b2, wf1p, bf1, wf2p, bf2p) = prepped
    B = x.shape[0]

    # ---- stage-1 im2col (pool-offset grouped) on the raw input ----
    xs = x[:, 0, :, :]                                                   # (B,28,28), C_in = 1
    pat1 = jnp.stack([xs[:, kh:kh + 24, kw:kw + 24]
                      for kh in range(5) for kw in range(5)], axis=-1)   # (B,24,24,25)
    p1 = jnp.stack([pat1[:, di::2, dj::2, :].reshape(B, 144, 25)
                    for di in (0, 1) for dj in (0, 1)], axis=0)          # (4,B,144,25)
    p1 = p1.reshape(4 * B * 144, 25)                                     # rows (g, b, ph, pw)

    h1 = pl.pallas_call(
        _conv1_pool_relu_kernel,
        out_shape=jax.ShapeDtypeStruct((B * 144, 16), jnp.float32),
    )(p1, w1m, b1)                                                       # rows (b, ph, pw)

    # ---- stage-2 im2col glue on the (B,12,12,16) pooled map ----
    h1m = h1.reshape(B, 12, 12, 16)
    pat2 = jnp.concatenate([h1m[:, kh:kh + 8, kw:kw + 8, :]
                            for kh in range(5) for kw in range(5)], axis=-1)  # (B,8,8,400)
    p2 = jnp.stack(
        [jnp.transpose(pat2[:, di::2, dj::2, :], (1, 2, 0, 3)).reshape(16 * B, 400)
         for di in (0, 1) for dj in (0, 1)], axis=0)                     # (4,16*B,400)
    p2 = p2.reshape(4 * 16 * B, 400)                                     # rows (g, p, b)

    out = pl.pallas_call(
        _conv2_pool_relu_mlp_kernel,
        out_shape=jax.ShapeDtypeStruct((B, 128), jnp.float32),
    )(p2, w2m, b2, wf1p, bf1, wf2p, bf2p)
    return out[:, :10]


# ----------------------------------------------------------------------------
# Pure-JAX reference (for correctness check)
# ----------------------------------------------------------------------------
def _pool2(h):
    B, C, H, W = h.shape
    return h.reshape(B, C, H // 2, 2, W // 2, 2).max(axis=(3, 5))


def reference(x, params):
    (w1, b1, w2, b2, wf1, bf1, wf2, bf2) = params
    h = lax.conv_general_dilated(x, w1, (1, 1), "VALID") + b1[None, :, None, None]
    h = jnp.maximum(_pool2(h), 0.0)
    h = lax.conv_general_dilated(h, w2, (1, 1), "VALID") + b2[None, :, None, None]
    h = jnp.maximum(_pool2(h), 0.0)
    h = h.reshape(h.shape[0], -1)
    h = jnp.maximum(h @ wf1.T + bf1, 0.0)
    return h @ wf2.T + bf2


# ----------------------------------------------------------------------------
if __name__ == "__main__":
    key = jax.random.PRNGKey(0)
    ks = jax.random.split(key, 9)
    B = 2
    # Linear(512, 512) after two conv/pool stages forces 28x28 spatial input.
    x = jax.random.normal(ks[0], (B, 1, 28, 28), jnp.float32)
    params = (
        0.10 * jax.random.normal(ks[1], (16, 1, 5, 5), jnp.float32),   # conv1.weight
        0.10 * jax.random.normal(ks[2], (16,), jnp.float32),           # conv1.bias
        0.05 * jax.random.normal(ks[3], (32, 16, 5, 5), jnp.float32),  # conv2.weight
        0.10 * jax.random.normal(ks[4], (32,), jnp.float32),           # conv2.bias
        0.05 * jax.random.normal(ks[5], (512, 512), jnp.float32),      # fc1.weight
        0.10 * jax.random.normal(ks[6], (512,), jnp.float32),          # fc1.bias
        0.05 * jax.random.normal(ks[7], (10, 512), jnp.float32),       # fc2.weight
        0.10 * jax.random.normal(ks[8], (10,), jnp.float32),           # fc2.bias
    )

    prepped = prepare_params(params)                 # one-time weight prep
    out = jax.block_until_ready(forward(x, prepped))
    ref = jax.block_until_ready(reference(x, params))

    assert out.shape == (B, 10), out.shape
    np.testing.assert_allclose(np.asarray(out), np.asarray(ref), rtol=2e-3, atol=2e-3)
    print("KERNEL_OK")
</pallas_src>

<mosaic_0001>
module attributes {stable_mosaic.version = 11 : i64} {
  func.func @_conv1_pool_relu_kernel(%arg0: memref<1152x25xf32, #tpu.memory_space<vmem>>, %arg1: memref<25x16xf32, #tpu.memory_space<vmem>>, %arg2: memref<1x16xf32, #tpu.memory_space<vmem>>, %arg3: memref<288x16xf32, #tpu.memory_space<vmem>>) attributes {dimension_semantics = [], scalar_prefetch = 0 : i64, scratch_operands = 0 : i64, tpu.core_type = #tpu.core_type<tc>} {
    %c0 = arith.constant 0 : index
    %c0_0 = arith.constant 0 : index
    %0 = vector.load %arg0[%c0, %c0_0] : memref<1152x25xf32, #tpu.memory_space<vmem>>, vector<1152x25xf32>
    %c0_1 = arith.constant 0 : index
    %c0_2 = arith.constant 0 : index
    %1 = vector.load %arg1[%c0_1, %c0_2] : memref<25x16xf32, #tpu.memory_space<vmem>>, vector<25x16xf32>
    %cst = arith.constant dense<0.000000e+00> : vector<1152x16xf32>
    %2 = tpu.matmul %0, %1, %cst {dimension_numbers = #tpu.dot_dimension_numbers<[1], [0], [0], [1], [0, 0, 1, 1], [], []>} : vector<1152x25xf32>, vector<25x16xf32>, vector<1152x16xf32> -> vector<1152x16xf32>
    %3 = vector.extract_strided_slice %2 {offsets = [0, 0], sizes = [288, 16], strides = [1, 1]} : vector<1152x16xf32> to vector<288x16xf32>
    %4 = vector.extract_strided_slice %2 {offsets = [288, 0], sizes = [288, 16], strides = [1, 1]} : vector<1152x16xf32> to vector<288x16xf32>
    %5 = arith.maximumf %3, %4 : vector<288x16xf32>
    %6 = vector.extract_strided_slice %2 {offsets = [576, 0], sizes = [288, 16], strides = [1, 1]} : vector<1152x16xf32> to vector<288x16xf32>
    %7 = vector.extract_strided_slice %2 {offsets = [864, 0], sizes = [288, 16], strides = [1, 1]} : vector<1152x16xf32> to vector<288x16xf32>
    %8 = arith.maximumf %6, %7 : vector<288x16xf32>
    %9 = arith.maximumf %5, %8 : vector<288x16xf32>
    %c0_3 = arith.constant 0 : index
    %c0_4 = arith.constant 0 : index
    %10 = vector.load %arg2[%c0_3, %c0_4] : memref<1x16xf32, #tpu.memory_space<vmem>>, vector<1x16xf32>
    %11 = vector.broadcast %10 : vector<1x16xf32> to vector<288x16xf32>
    %12 = arith.addf %9, %11 : vector<288x16xf32>
    %cst_5 = arith.constant 0.000000e+00 : f32
    %13 = vector.broadcast %cst_5 : f32 to vector<288x16xf32>
    %14 = arith.maximumf %12, %13 : vector<288x16xf32>
    %c0_6 = arith.constant 0 : index
    %c0_7 = arith.constant 0 : index
    %15 = vector.load %arg3[%c0_6, %c0_7] : memref<288x16xf32, #tpu.memory_space<vmem>>, vector<288x16xf32>
    tpu.vector_store %arg3[%c0_6, %c0_7], %14 {strides = array<i32>} : memref<288x16xf32, #tpu.memory_space<vmem>>, vector<288x16xf32>,
    return
  }
}

module attributes {stable_mosaic.version = 11 : i64} {
  func.func @_conv2_pool_relu_mlp_kernel(%arg0: memref<128x400xf32, #tpu.memory_space<vmem>>, %arg1: memref<400x32xf32, #tpu.memory_space<vmem>>, %arg2: memref<1x32xf32, #tpu.memory_space<vmem>>, %arg3: memref<16x32x512xf32, #tpu.memory_space<vmem>>, %arg4: memref<1x512xf32, #tpu.memory_space<vmem>>, %arg5: memref<512x128xf32, #tpu.memory_space<vmem>>, %arg6: memref<1x128xf32, #tpu.memory_space<vmem>>, %arg7: memref<2x128xf32, #tpu.memory_space<vmem>>) attributes {dimension_semantics = [], scalar_prefetch = 0 : i64, scratch_operands = 0 : i64, tpu.core_type = #tpu.core_type<tc>} {
    %c0 = arith.constant 0 : index
    %c0_0 = arith.constant 0 : index
    %0 = vector.load %arg0[%c0, %c0_0] : memref<128x400xf32, #tpu.memory_space<vmem>>, vector<128x400xf32>
    %c0_1 = arith.constant 0 : index
    %c0_2 = arith.constant 0 : index
    %1 = vector.load %arg1[%c0_1, %c0_2] : memref<400x32xf32, #tpu.memory_space<vmem>>, vector<400x32xf32>
    %cst = arith.constant dense<0.000000e+00> : vector<128x32xf32>
    %2 = tpu.matmul %0, %1, %cst {dimension_numbers = #tpu.dot_dimension_numbers<[1], [0], [0], [1], [0, 0, 1, 1], [], []>} : vector<128x400xf32>, vector<400x32xf32>, vector<128x32xf32> -> vector<128x32xf32>
    %3 = vector.extract_strided_slice %2 {offsets = [0, 0], sizes = [32, 32], strides = [1, 1]} : vector<128x32xf32> to vector<32x32xf32>
    %4 = vector.extract_strided_slice %2 {offsets = [32, 0], sizes = [32, 32], strides = [1, 1]} : vector<128x32xf32> to vector<32x32xf32>
    %5 = arith.maximumf %3, %4 : vector<32x32xf32>
    %6 = vector.extract_strided_slice %2 {offsets = [64, 0], sizes = [32, 32], strides = [1, 1]} : vector<128x32xf32> to vector<32x32xf32>
    %7 = vector.extract_strided_slice %2 {offsets = [96, 0], sizes = [32, 32], strides = [1, 1]} : vector<128x32xf32> to vector<32x32xf32>
    %8 = arith.maximumf %6, %7 : vector<32x32xf32>
    %9 = arith.maximumf %5, %8 : vector<32x32xf32>
    %c0_3 = arith.constant 0 : index
    %c0_4 = arith.constant 0 : index
    %10 = vector.load %arg2[%c0_3, %c0_4] : memref<1x32xf32, #tpu.memory_space<vmem>>, vector<1x32xf32>
    %11 = vector.broadcast %10 : vector<1x32xf32> to vector<32x32xf32>
    %12 = arith.addf %9, %11 : vector<32x32xf32>
    %cst_5 = arith.constant 0.000000e+00 : f32
    %13 = vector.broadcast %cst_5 : f32 to vector<32x32xf32>
    %14 = arith.maximumf %12, %13 : vector<32x32xf32>
    %cst_6 = arith.constant 0.000000e+00 : f32
    %15 = vector.broadcast %cst_6 : f32 to vector<2x512xf32>
    %16 = vector.extract_strided_slice %14 {offsets = [0, 0], sizes = [2, 32], strides = [1, 1]} : vector<32x32xf32> to vector<2x32xf32>
    %c0_7 = arith.constant 0 : index
    %c0_8 = arith.constant 0 : index
    %c0_9 = arith.constant 0 : index
    %17 = vector.load %arg3[%c0_7, %c0_8, %c0_9] : memref<16x32x512xf32, #tpu.memory_space<vmem>>, vector<1x32x512xf32>
    %18 = vector.shape_cast %17 : vector<1x32x512xf32> to vector<32x512xf32>
    %cst_10 = arith.constant dense<0.000000e+00> : vector<2x512xf32>
    %19 = tpu.matmul %16, %18, %cst_10 {dimension_numbers = #tpu.dot_dimension_numbers<[1], [0], [0], [1], [0, 0, 1, 1], [], []>} : vector<2x32xf32>, vector<32x512xf32>, vector<2x512xf32> -> vector<2x512xf32>
    %20 = arith.addf %15, %19 : vector<2x512xf32>
    %21 = vector.extract_strided_slice %14 {offsets = [2, 0], sizes = [2, 32], strides = [1, 1]} : vector<32x32xf32> to vector<2x32xf32>
    %c1 = arith.constant 1 : index
    %c0_11 = arith.constant 0 : index
    %c0_12 = arith.constant 0 : index
    %22 = vector.load %arg3[%c1, %c0_11, %c0_12] : memref<16x32x512xf32, #tpu.memory_space<vmem>>, vector<1x32x512xf32>
    %23 = vector.shape_cast %22 : vector<1x32x512xf32> to vector<32x512xf32>
    %cst_13 = arith.constant dense<0.000000e+00> : vector<2x512xf32>
    %24 = tpu.matmul %21, %23, %cst_13 {dimension_numbers = #tpu.dot_dimension_numbers<[1], [0], [0], [1], [0, 0, 1, 1], [], []>} : vector<2x32xf32>, vector<32x512xf32>, vector<2x512xf32> -> vector<2x512xf32>
    %25 = arith.addf %20, %24 : vector<2x512xf32>
    %26 = vector.extract_strided_slice %14 {offsets = [4, 0], sizes = [2, 32], strides = [1, 1]} : vector<32x32xf32> to vector<2x32xf32>
    %c2 = arith.constant 2 : index
    %c0_14 = arith.constant 0 : index
    %c0_15 = arith.constant 0 : index
    %27 = vector.load %arg3[%c2, %c0_14, %c0_15] : memref<16x32x512xf32, #tpu.memory_space<vmem>>, vector<1x32x512xf32>
    %28 = vector.shape_cast %27 : vector<1x32x512xf32> to vector<32x512xf32>
    %cst_16 = arith.constant dense<0.000000e+00> : vector<2x512xf32>
    %29 = tpu.matmul %26, %28, %cst_16 {dimension_numbers = #tpu.dot_dimension_numbers<[1], [0], [0], [1], [0, 0, 1, 1], [], []>} : vector<2x32xf32>, vector<32x512xf32>, vector<2x512xf32> -> vector<2x512xf32>
    %30 = arith.addf %25, %29 : vector<2x512xf32>
    %31 = vector.extract_strided_slice %14 {offsets = [6, 0], sizes = [2, 32], strides = [1, 1]} : vector<32x32xf32> to vector<2x32xf32>
    %c3 = arith.constant 3 : index
    %c0_17 = arith.constant 0 : index
    %c0_18 = arith.constant 0 : index
    %32 = vector.load %arg3[%c3, %c0_17, %c0_18] : memref<16x32x512xf32, #tpu.memory_space<vmem>>, vector<1x32x512xf32>
    %33 = vector.shape_cast %32 : vector<1x32x512xf32> to vector<32x512xf32>
    %cst_19 = arith.constant dense<0.000000e+00> : vector<2x512xf32>
    %34 = tpu.matmul %31, %33, %cst_19 {dimension_numbers = #tpu.dot_dimension_numbers<[1], [0], [0], [1], [0, 0, 1, 1], [], []>} : vector<2x32xf32>, vector<32x512xf32>, vector<2x512xf32> -> vector<2x512xf32>
    %35 = arith.addf %30, %34 : vector<2x512xf32>
    %36 = vector.extract_strided_slice %14 {offsets = [8, 0], sizes = [2, 32], strides = [1, 1]} : vector<32x32xf32> to vector<2x32xf32>
    %c4 = arith.constant 4 : index
    %c0_20 = arith.constant 0 : index
    %c0_21 = arith.constant 0 : index
    %37 = vector.load %arg3[%c4, %c0_20, %c0_21] : memref<16x32x512xf32, #tpu.memory_space<vmem>>, vector<1x32x512xf32>
    %38 = vector.shape_cast %37 : vector<1x32x512xf32> to vector<32x512xf32>
    %cst_22 = arith.constant dense<0.000000e+00> : vector<2x512xf32>
    %39 = tpu.matmul %36, %38, %cst_22 {dimension_numbers = #tpu.dot_dimension_numbers<[1], [0], [0], [1], [0, 0, 1, 1], [], []>} : vector<2x32xf32>, vector<32x512xf32>, vector<2x512xf32> -> vector<2x512xf32>
    %40 = arith.addf %35, %39 : vector<2x512xf32>
    %41 = vector.extract_strided_slice %14 {offsets = [10, 0], sizes = [2, 32], strides = [1, 1]} : vector<32x32xf32> to vector<2x32xf32>
    %c5 = arith.constant 5 : index
    %c0_23 = arith.constant 0 : index
    %c0_24 = arith.constant 0 : index
    %42 = vector.load %arg3[%c5, %c0_23, %c0_24] : memref<16x32x512xf32, #tpu.memory_space<vmem>>, vector<1x32x512xf32>
    %43 = vector.shape_cast %42 : vector<1x32x512xf32> to vector<32x512xf32>
    %cst_25 = arith.constant dense<0.000000e+00> : vector<2x512xf32>
    %44 = tpu.matmul %41, %43, %cst_25 {dimension_numbers = #tpu.dot_dimension_numbers<[1], [0], [0], [1], [0, 0, 1, 1], [], []>} : vector<2x32xf32>, vector<32x512xf32>, vector<2x512xf32> -> vector<2x512xf32>
    %45 = arith.addf %40, %44 : vector<2x512xf32>
    %46 = vector.extract_strided_slice %14 {offsets = [12, 0], sizes = [2, 32], strides = [1, 1]} : vector<32x32xf32> to vector<2x32xf32>
    %c6 = arith.constant 6 : index
    %c0_26 = arith.constant 0 : index
    %c0_27 = arith.constant 0 : index
    %47 = vector.load %arg3[%c6, %c0_26, %c0_27] : memref<16x32x512xf32, #tpu.memory_space<vmem>>, vector<1x32x512xf32>
    %48 = vector.shape_cast %47 : vector<1x32x512xf32> to vector<32x512xf32>
    %cst_28 = arith.constant dense<0.000000e+00> : vector<2x512xf32>
    %49 = tpu.matmul %46, %48, %cst_28 {dimension_numbers = #tpu.dot_dimension_numbers<[1], [0], [0], [1], [0, 0, 1, 1], [], []>} : vector<2x32xf32>, vector<32x512xf32>, vector<2x512xf32> -> vector<2x512xf32>
    %50 = arith.addf %45, %49 : vector<2x512xf32>
    %51 = vector.extract_strided_slice %14 {offsets = [14, 0], sizes = [2, 32], strides = [1, 1]} : vector<32x32xf32> to vector<2x32xf32>
    %c7 = arith.constant 7 : index
    %c0_29 = arith.constant 0 : index
    %c0_30 = arith.constant 0 : index
    %52 = vector.load %arg3[%c7, %c0_29, %c0_30] : memref<16x32x512xf32, #tpu.memory_space<vmem>>, vector<1x32x512xf32>
    %53 = vector.shape_cast %52 : vector<1x32x512xf32> to vector<32x512xf32>
    %cst_31 = arith.constant dense<0.000000e+00> : vector<2x512xf32>
    %54 = tpu.matmul %51, %53, %cst_31 {dimension_numbers = #tpu.dot_dimension_numbers<[1], [0], [0], [1], [0, 0, 1, 1], [], []>} : vector<2x32xf32>, vector<32x512xf32>, vector<2x512xf32> -> vector<2x512xf32>
    %55 = arith.addf %50, %54 : vector<2x512xf32>
    %56 = vector.extract_strided_slice %14 {offsets = [16, 0], sizes = [2, 32], strides = [1, 1]} : vector<32x32xf32> to vector<2x32xf32>
    %c8 = arith.constant 8 : index
    %c0_32 = arith.constant 0 : index
    %c0_33 = arith.constant 0 : index
    %57 = vector.load %arg3[%c8, %c0_32, %c0_33] : memref<16x32x512xf32, #tpu.memory_space<vmem>>, vector<1x32x512xf32>
    %58 = vector.shape_cast %57 : vector<1x32x512xf32> to vector<32x512xf32>
    %cst_34 = arith.constant dense<0.000000e+00> : vector<2x512xf32>
    %59 = tpu.matmul %56, %58, %cst_34 {dimension_numbers = #tpu.dot_dimension_numbers<[1], [0], [0], [1], [0, 0, 1, 1], [], []>} : vector<2x32xf32>, vector<32x512xf32>, vector<2x512xf32> -> vector<2x512xf32>
    %60 = arith.addf %55, %59 : vector<2x512xf32>
    %61 = vector.extract_strided_slice %14 {offsets = [18, 0], sizes = [2, 32], strides = [1, 1]} : vector<32x32xf32> to vector<2x32xf32>
    %c9 = arith.constant 9 : index
    %c0_35 = arith.constant 0 : index
    %c0_36 = arith.constant 0 : index
    %62 = vector.load %arg3[%c9, %c0_35, %c0_36] : memref<16x32x512xf32, #tpu.memory_space<vmem>>, vector<1x32x512xf32>
    %63 = vector.shape_cast %62 : vector<1x32x512xf32> to vector<32x512xf32>
    %cst_37 = arith.constant dense<0.000000e+00> : vector<2x512xf32>
    %64 = tpu.matmul %61, %63, %cst_37 {dimension_numbers = #tpu.dot_dimension_numbers<[1], [0], [0], [1], [0, 0, 1, 1], [], []>} : vector<2x32xf32>, vector<32x512xf32>, vector<2x512xf32> -> vector<2x512xf32>
    %65 = arith.addf %60, %64 : vector<2x512xf32>
    %66 = vector.extract_strided_slice %14 {offsets = [20, 0], sizes = [2, 32], strides = [1, 1]} : vector<32x32xf32> to vector<2x32xf32>
    %c10 = arith.constant 10 : index
    %c0_38 = arith.constant 0 : index
    %c0_39 = arith.constant 0 : index
    %67 = vector.load %arg3[%c10, %c0_38, %c0_39] : memref<16x32x512xf32, #tpu.memory_space<vmem>>, vector<1x32x512xf32>
    %68 = vector.shape_cast %67 : vector<1x32x512xf32> to vector<32x512xf32>
    %cst_40 = arith.constant dense<0.000000e+00> : vector<2x512xf32>
    %69 = tpu.matmul %66, %68, %cst_40 {dimension_numbers = #tpu.dot_dimension_numbers<[1], [0], [0], [1], [0, 0, 1, 1], [], []>} : vector<2x32xf32>, vector<32x512xf32>, vector<2x512xf32> -> vector<2x512xf32>
    %70 = arith.addf %65, %69 : vector<2x512xf32>
    %71 = vector.extract_strided_slice %14 {offsets = [22, 0], sizes = [2, 32], strides = [1, 1]} : vector<32x32xf32> to vector<2x32xf32>
    %c11 = arith.constant 11 : index
    %c0_41 = arith.constant 0 : index
    %c0_42 = arith.constant 0 : index
    %72 = vector.load %arg3[%c11, %c0_41, %c0_42] : memref<16x32x512xf32, #tpu.memory_space<vmem>>, vector<1x32x512xf32>
    %73 = vector.shape_cast %72 : vector<1x32x512xf32> to vector<32x512xf32>
    %cst_43 = arith.constant dense<0.000000e+00> : vector<2x512xf32>
    %74 = tpu.matmul %71, %73, %cst_43 {dimension_numbers = #tpu.dot_dimension_numbers<[1], [0], [0], [1], [0, 0, 1, 1], [], []>} : vector<2x32xf32>, vector<32x512xf32>, vector<2x512xf32> -> vector<2x512xf32>
    %75 = arith.addf %70, %74 : vector<2x512xf32>
    %76 = vector.extract_strided_slice %14 {offsets = [24, 0], sizes = [2, 32], strides = [1, 1]} : vector<32x32xf32> to vector<2x32xf32>
    %c12 = arith.constant 12 : index
    %c0_44 = arith.constant 0 : index
    %c0_45 = arith.constant 0 : index
    %77 = vector.load %arg3[%c12, %c0_44, %c0_45] : memref<16x32x512xf32, #tpu.memory_space<vmem>>, vector<1x32x512xf32>
    %78 = vector.shape_cast %77 : vector<1x32x512xf32> to vector<32x512xf32>
    %cst_46 = arith.constant dense<0.000000e+00> : vector<2x512xf32>
    %79 = tpu.matmul %76, %78, %cst_46 {dimension_numbers = #tpu.dot_dimension_numbers<[1], [0], [0], [1], [0, 0, 1, 1], [], []>} : vector<2x32xf32>, vector<32x512xf32>, vector<2x512xf32> -> vector<2x512xf32>
    %80 = arith.addf %75, %79 : vector<2x512xf32>
    %81 = vector.extract_strided_slice %14 {offsets = [26, 0], sizes = [2, 32], strides = [1, 1]} : vector<32x32xf32> to vector<2x32xf32>
    %c13 = arith.constant 13 : index
    %c0_47 = arith.constant 0 : index
    %c0_48 = arith.constant 0 : index
    %82 = vector.load %arg3[%c13, %c0_47, %c0_48] : memref<16x32x512xf32, #tpu.memory_space<vmem>>, vector<1x32x512xf32>
    %83 = vector.shape_cast %82 : vector<1x32x512xf32> to vector<32x512xf32>
    %cst_49 = arith.constant dense<0.000000e+00> : vector<2x512xf32>
    %84 = tpu.matmul %81, %83, %cst_49 {dimension_numbers = #tpu.dot_dimension_numbers<[1], [0], [0], [1], [0, 0, 1, 1], [], []>} : vector<2x32xf32>, vector<32x512xf32>, vector<2x512xf32> -> vector<2x512xf32>
    %85 = arith.addf %80, %84 : vector<2x512xf32>
    %86 = vector.extract_strided_slice %14 {offsets = [28, 0], sizes = [2, 32], strides = [1, 1]} : vector<32x32xf32> to vector<2x32xf32>
    %c14 = arith.constant 14 : index
    %c0_50 = arith.constant 0 : index
    %c0_51 = arith.constant 0 : index
    %87 = vector.load %arg3[%c14, %c0_50, %c0_51] : memref<16x32x512xf32, #tpu.memory_space<vmem>>, vector<1x32x512xf32>
    %88 = vector.shape_cast %87 : vector<1x32x512xf32> to vector<32x512xf32>
    %cst_52 = arith.constant dense<0.000000e+00> : vector<2x512xf32>
    %89 = tpu.matmul %86, %88, %cst_52 {dimension_numbers = #tpu.dot_dimension_numbers<[1], [0], [0], [1], [0, 0, 1, 1], [], []>} : vector<2x32xf32>, vector<32x512xf32>, vector<2x512xf32> -> vector<2x512xf32>
    %90 = arith.addf %85, %89 : vector<2x512xf32>
    %91 = vector.extract_strided_slice %14 {offsets = [30, 0], sizes = [2, 32], strides = [1, 1]} : vector<32x32xf32> to vector<2x32xf32>
    %c15 = arith.constant 15 : index
    %c0_53 = arith.constant 0 : index
    %c0_54 = arith.constant 0 : index
    %92 = vector.load %arg3[%c15, %c0_53, %c0_54] : memref<16x32x512xf32, #tpu.memory_space<vmem>>, vector<1x32x512xf32>
    %93 = vector.shape_cast %92 : vector<1x32x512xf32> to vector<32x512xf32>
    %cst_55 = arith.constant dense<0.000000e+00> : vector<2x512xf32>
    %94 = tpu.matmul %91, %93, %cst_55 {dimension_numbers = #tpu.dot_dimension_numbers<[1], [0], [0], [1], [0, 0, 1, 1], [], []>} : vector<2x32xf32>, vector<32x512xf32>, vector<2x512xf32> -> vector<2x512xf32>
    %95 = arith.addf %90, %94 : vector<2x512xf32>
    %c0_56 = arith.constant 0 : index
    %c0_57 = arith.constant 0 : index
    %96 = vector.load %arg4[%c0_56, %c0_57] : memref<1x512xf32, #tpu.memory_space<vmem>>, vector<1x512xf32>
    %97 = vector.broadcast %96 : vector<1x512xf32> to vector<2x512xf32>
    %98 = arith.addf %95, %97 : vector<2x512xf32>
    %cst_58 = arith.constant 0.000000e+00 : f32
    %99 = vector.broadcast %cst_58 : f32 to vector<2x512xf32>
    %100 = arith.maximumf %98, %99 : vector<2x512xf32>
    %c0_59 = arith.constant 0 : index
    %c0_60 = arith.constant 0 : index
    %101 = vector.load %arg5[%c0_59, %c0_60] : memref<512x128xf32, #tpu.memory_space<vmem>>, vector<512x128xf32>
    %cst_61 = arith.constant dense<0.000000e+00> : vector<2x128xf32>
    %102 = tpu.matmul %100, %101, %cst_61 {dimension_numbers = #tpu.dot_dimension_numbers<[1], [0], [0], [1], [0, 0, 1, 1], [], []>} : vector<2x512xf32>, vector<512x128xf32>, vector<2x128xf32> -> vector<2x128xf32>
    %c0_62 = arith.constant 0 : index
    %c0_63 = arith.constant 0 : index
    %103 = vector.load %arg6[%c0_62, %c0_63] : memref<1x128xf32, #tpu.memory_space<vmem>>, vector<1x128xf32>
    %104 = vector.broadcast %103 : vector<1x128xf32> to vector<2x128xf32>
    %105 = arith.addf %102, %104 : vector<2x128xf32>
    %c0_64 = arith.constant 0 : index
    %c0_65 = arith.constant 0 : index
    %106 = vector.load %arg7[%c0_64, %c0_65] : memref<2x128xf32, #tpu.memory_space<vmem>>, vector<2x128xf32>
    tpu.vector_store %arg7[%c0_64, %c0_65], %105 {strides = array<i32>} : memref<2x128xf32, #tpu.memory_space<vmem>>, vector<2x128xf32>,
    return
  }
}

</mosaic_0001>

<bundles_post_ra>
// kernel: forward.2
= control target key start
LH: loop header
LB: loop body
LE: loop exit
PB: predicated region body
PF: predicated region fallthrough
CT: control target
= control target key end

     0   :  { %vm595_vm0 = vcmask 1040384   ;;  %vm162_vm1 = vcmask 203776   ;;  %vm2145_vm2 = vmmov 1   ;;  %vm1571_vm4 = vcmask 130048   ;;  %s3155_s1 = inlined_call_operand.vmem [shape: f32[25,16], index: 1, kind: input, shape index: {}]   ;;  %s3156_s0 = inlined_call_operand.vmem [shape: f32[1152,25], index: 0, kind: input, shape index: {}]   ;;  %s3157_s2 = inlined_call_operand.vmem [shape: f32[1,16], index: 2, kind: input, shape index: {}]   ;;  %s3158_s3 = inlined_call_operand.vmem [shape: f32[288,16], index: 3, kind: output, shape index: {}]  }
   0x1   :  { %v158_v0 = vld [vmem:[%s3155_s1] sm:$0xff]  ;;  %v159_v1 = vld [vmem:[%s3155_s1 + $0x8] sm:$0xff]  ;;  %v160_v2 = vld [vmem:[%s3155_s1 + $0x10] sm:$0xff] }
   0x2   :  { %v2130_v3 = vpack.c.bf16 %v159_v1, %v158_v0  ;;  %v161_v4 = vld [vmem:[%s3155_s1 + $0x18] sm:$0x1]  ;;  %v14_v5 = vld [vmem:[%s3156_s0] sm:$0xff]  ;;  %vm2135_vm3 = vmpackc.low %vm595_vm0, %vm2145_vm2 }
   0x3   :  { %v2134_v6 = vpack.c.bf16 %v161_v4, %v160_v2  ;;  %1914 = vmatprep.mubr.msk.f32.mxu0 %vm162_vm1, %v14_v5  ;;  %v86_v7 = vld [vmem:[%s3156_s0 + $0x240] sm:$0xff]  ;;  %v15_v8 = vld [vmem:[%s3156_s0 + $0x8] sm:$0xff]  ;;  %v16_v10 = vld [vmem:[%s3156_s0 + $0x10] sm:$0xff] }
   0x4   :  { %2131 = vmatprep.subr.bf16.mxu0 %v2130_v3  ;;  %2140 = vmatprep.subr.bf16.mxu1 %v2130_v3  ;;  %v87_v9 = vld [vmem:[%s3156_s0 + $0x248] sm:$0xff]  ;;  %v88_v11 = vld [vmem:[%s3156_s0 + $0x250] sm:$0xff]  ;;  %v17_v12 = vld [vmem:[%s3156_s0 + $0x18] sm:$0xff] }
   0x5   :  { %2133 = vmatpush3.bf16.msra.mxu0 %v2130_v3  ;;  %2142 = vmatpush3.bf16.msra.mxu1 %v2130_v3  ;;  %v89_v13 = vld [vmem:[%s3156_s0 + $0x258] sm:$0xff]  ;;  %v18_v14 = vld [vmem:[%s3156_s0 + $0x20] sm:$0xff]  ;;  %v19_v16 = vld [vmem:[%s3156_s0 + $0x28] sm:$0xff] }
   0x6   :  { %2136 = vmatprep.subr.msk.bf16.mxu0 %vm2135_vm3, %v2134_v6  ;;  %2141 = vmatprep.subr.msk.bf16.mxu1 %vm2135_vm3, %v2134_v6  ;;  %v90_v15 = vld [vmem:[%s3156_s0 + $0x260] sm:$0xff]  ;;  %v91_v17 = vld [vmem:[%s3156_s0 + $0x268] sm:$0xff]  ;;  %v20_v18 = vld [vmem:[%s3156_s0 + $0x30] sm:$0xff] }
   0x7   :  { %2022 = vmatprep.mubr.msk.f32.mxu1 %vm162_vm1, %v86_v7  ;;  %v92_v19 = vld [vmem:[%s3156_s0 + $0x270] sm:$0xff]  ;;  %v21_v20 = vld [vmem:[%s3156_s0 + $0x38] sm:$0xff]  ;;  %v22_v22 = vld [vmem:[%s3156_s0 + $0x40] sm:$0xff] }
   0x8   :  { %v93_v21 = vld [vmem:[%s3156_s0 + $0x278] sm:$0xff]  ;;  %v94_v23 = vld [vmem:[%s3156_s0 + $0x280] sm:$0xff]  ;;  %v23_v24 = vld [vmem:[%s3156_s0 + $0x48] sm:$0xff] }
   0x9   :  { %2139 = vmatpush3.bf16.msk.msra.mxu0 %vm2135_vm3, %v2134_v6  ;;  %2143 = vmatpush3.bf16.msk.msra.mxu1 %vm2135_vm3, %v2134_v6  ;;  %v95_v25 = vld [vmem:[%s3156_s0 + $0x288] sm:$0xff]  ;;  %v24_v26 = vld [vmem:[%s3156_s0 + $0x50] sm:$0xff]  ;;  %v25_v28 = vld [vmem:[%s3156_s0 + $0x58] sm:$0xff] }
   0xa   :  { %v96_v27 = vld [vmem:[%s3156_s0 + $0x290] sm:$0xff]  ;;  %v97_v29 = vld [vmem:[%s3156_s0 + $0x298] sm:$0xff]  ;;  %v26_v30 = vld [vmem:[%s3156_s0 + $0x60] sm:$0xff] }
   0xb   :  { %v98_v31 = vld [vmem:[%s3156_s0 + $0x2a0] sm:$0xff]  ;;  %v27_v32 = vld [vmem:[%s3156_s0 + $0x68] sm:$0xff]  ;;  %v28_v34 = vld [vmem:[%s3156_s0 + $0x70] sm:$0xff] }
   0xc   :  { %1915 = vmatmul.mubr.msk.f32.vlgmr.msra.gmra.mrb[0].mxu0 %vm162_vm1, %v15_v8  ;;  %2023 = vmatmul.mubr.msk.f32.vlgmr.msra.gmra.mrb[0].mxu1 %vm162_vm1, %v87_v9  ;;  %v99_v33 = vld [vmem:[%s3156_s0 + $0x2a8] sm:$0xff]  ;;  %v100_v35 = vld [vmem:[%s3156_s0 + $0x2b0] sm:$0xff]  ;;  %v29_v36 = vld [vmem:[%s3156_s0 + $0x78] sm:$0xff] }
   0xd   :  { %1917 = vmatprep.mubr.msk.f32.mxu0 %vm162_vm1, %v16_v10  ;;  %2025 = vmatprep.mubr.msk.f32.mxu1 %vm162_vm1, %v88_v11  ;;  %v101_v37 = vld [vmem:[%s3156_s0 + $0x2b8] sm:$0xff]  ;;  %v30_v38 = vld [vmem:[%s3156_s0 + $0x80] sm:$0xff]  ;;  %v31_v40 = vld [vmem:[%s3156_s0 + $0x88] sm:$0xff] }
   0xe   :  { %v102_v39 = vld [vmem:[%s3156_s0 + $0x2c0] sm:$0xff]  ;;  %v103_v41 = vld [vmem:[%s3156_s0 + $0x2c8] sm:$0xff]  ;;  %v32_v42 = vld [vmem:[%s3156_s0 + $0x90] sm:$0xff] }
   0xf   :  { %v104_v43 = vld [vmem:[%s3156_s0 + $0x2d0] sm:$0xff]  ;;  %v33_v44 = vld [vmem:[%s3156_s0 + $0x98] sm:$0xff]  ;;  %v34_v46 = vld [vmem:[%s3156_s0 + $0xa0] sm:$0xff] }
  0x10   :  { %1918 = vmatmul.mubr.msk.f32.gmra.mrb[2].mxu0 %vm162_vm1, %v17_v12  ;;  %2026 = vmatmul.mubr.msk.f32.gmra.mrb[2].mxu1 %vm162_vm1, %v89_v13  ;;  %v105_v45 = vld [vmem:[%s3156_s0 + $0x2d8] sm:$0xff]  ;;  %v106_v47 = vld [vmem:[%s3156_s0 + $0x2e0] sm:$0xff]  ;;  %v35_v48 = vld [vmem:[%s3156_s0 + $0xa8] sm:$0xff] }
  0x11   :  { %1920 = vmatprep.mubr.msk.f32.mxu0 %vm162_vm1, %v18_v14  ;;  %2028 = vmatprep.mubr.msk.f32.mxu1 %vm162_vm1, %v90_v15  ;;  %v107_v49 = vld [vmem:[%s3156_s0 + $0x2e8] sm:$0xff]  ;;  %v36_v50 = vld [vmem:[%s3156_s0 + $0xb0] sm:$0xff]  ;;  %v37_v52 = vld [vmem:[%s3156_s0 + $0xb8] sm:$0xff] }
  0x12   :  { %v108_v51 = vld [vmem:[%s3156_s0 + $0x2f0] sm:$0xff]  ;;  %v109_v53 = vld [vmem:[%s3156_s0 + $0x2f8] sm:$0xff]  ;;  %v38_v54 = vld [vmem:[%s3156_s0 + $0xc0] sm:$0xff] }
  0x13   :  { %v110_v55 = vld [vmem:[%s3156_s0 + $0x300] sm:$0xff]  ;;  %v39_v56 = vld [vmem:[%s3156_s0 + $0xc8] sm:$0xff]  ;;  %v40_v58 = vld [vmem:[%s3156_s0 + $0xd0] sm:$0xff] }
  0x14   :  { %1921 = vmatmul.mubr.msk.f32.gmra.mrb[4].mxu0 %vm162_vm1, %v19_v16  ;;  %2029 = vmatmul.mubr.msk.f32.gmra.mrb[4].mxu1 %vm162_vm1, %v91_v17  ;;  %v111_v57 = vld [vmem:[%s3156_s0 + $0x308] sm:$0xff]  ;;  %v112_v59 = vld [vmem:[%s3156_s0 + $0x310] sm:$0xff]  ;;  %v41_v60 = vld [vmem:[%s3156_s0 + $0xd8] sm:$0xff] }
  0x15   :  { %1923 = vmatprep.mubr.msk.f32.mxu0 %vm162_vm1, %v20_v18  ;;  %2031 = vmatprep.mubr.msk.f32.mxu1 %vm162_vm1, %v92_v19  ;;  %v113_v61 = vld [vmem:[%s3156_s0 + $0x318] sm:$0xff]  ;;  %v42_v62 = vld [vmem:[%s3156_s0 + $0xe0] sm:$0xff]  ;;  %v43_v0 = vld [vmem:[%s3156_s0 + $0xe8] sm:$0xff] }
  0x16   :  { %v114_v63 = vld [vmem:[%s3156_s0 + $0x320] sm:$0xff]  ;;  %v115_v1 = vld [vmem:[%s3156_s0 + $0x328] sm:$0xff]  ;;  %v44_v2 = vld [vmem:[%s3156_s0 + $0xf0] sm:$0xff] }
  0x17   :  { %v116_v3 = vld [vmem:[%s3156_s0 + $0x330] sm:$0xff]  ;;  %v45_v4 = vld [vmem:[%s3156_s0 + $0xf8] sm:$0xff]  ;;  %v46_v6 = vld [vmem:[%s3156_s0 + $0x100] sm:$0xff] }
  0x18   :  { %1924 = vmatmul.mubr.msk.f32.gmra.mrb[6].mxu0 %vm162_vm1, %v21_v20  ;;  %2032 = vmatmul.mubr.msk.f32.gmra.mrb[6].mxu1 %vm162_vm1, %v93_v21  ;;  %v117_v5 = vld [vmem:[%s3156_s0 + $0x338] sm:$0xff]  ;;  %v118_v7 = vld [vmem:[%s3156_s0 + $0x340] sm:$0xff]  ;;  %v47_v8 = vld [vmem:[%s3156_s0 + $0x108] sm:$0xff] }
  0x19   :  { %1926 = vmatprep.mubr.msk.f32.mxu0 %vm162_vm1, %v22_v22  ;;  %2034 = vmatprep.mubr.msk.f32.mxu1 %vm162_vm1, %v94_v23  ;;  %v119_v9 = vld [vmem:[%s3156_s0 + $0x348] sm:$0xff]  ;;  %v48_v10 = vld [vmem:[%s3156_s0 + $0x110] sm:$0xff]  ;;  %v49_v12 = vld [vmem:[%s3156_s0 + $0x118] sm:$0xff] }
  0x1a   :  { %v120_v11 = vld [vmem:[%s3156_s0 + $0x350] sm:$0xff]  ;;  %v121_v13 = vld [vmem:[%s3156_s0 + $0x358] sm:$0xff]  ;;  %v50_v14 = vld [vmem:[%s3156_s0 + $0x120] sm:$0xff] }
  0x1b   :  { %v122_v15 = vld [vmem:[%s3156_s0 + $0x360] sm:$0xff]  ;;  %v51_v16 = vld [vmem:[%s3156_s0 + $0x128] sm:$0xff]  ;;  %v52_v18 = vld [vmem:[%s3156_s0 + $0x130] sm:$0xff] }
  0x1c   :  { %1927 = vmatmul.mubr.msk.f32.gmra.mrb[8].mxu0 %vm162_vm1, %v23_v24  ;;  %2035 = vmatmul.mubr.msk.f32.gmra.mrb[8].mxu1 %vm162_vm1, %v95_v25  ;;  %v123_v17 = vld [vmem:[%s3156_s0 + $0x368] sm:$0xff]  ;;  %v124_v19 = vld [vmem:[%s3156_s0 + $0x370] sm:$0xff]  ;;  %v53_v20 = vld [vmem:[%s3156_s0 + $0x138] sm:$0xff] }
  0x1d   :  { %1929 = vmatprep.mubr.msk.f32.mxu0 %vm162_vm1, %v24_v26  ;;  %2037 = vmatprep.mubr.msk.f32.mxu1 %vm162_vm1, %v96_v27  ;;  %v125_v21 = vld [vmem:[%s3156_s0 + $0x378] sm:$0xff]  ;;  %v54_v22 = vld [vmem:[%s3156_s0 + $0x140] sm:$0xff]  ;;  %v55_v24 = vld [vmem:[%s3156_s0 + $0x148] sm:$0xff] }
  0x1e   :  { %v126_v23 = vld [vmem:[%s3156_s0 + $0x380] sm:$0xff]  ;;  %v127_v25 = vld [vmem:[%s3156_s0 + $0x388] sm:$0xff]  ;;  %v56_v26 = vld [vmem:[%s3156_s0 + $0x150] sm:$0xff] }
  0x1f   :  { %v128_v27 = vld [vmem:[%s3156_s0 + $0x390] sm:$0xff] }
  0x20   :  { %1930 = vmatmul.mubr.msk.f32.gmra.mrb[10].mxu0 %vm162_vm1, %v25_v28  ;;  %2038 = vmatmul.mubr.msk.f32.gmra.mrb[10].mxu1 %vm162_vm1, %v97_v29  ;;  %v57_v28 = vld [vmem:[%s3156_s0 + $0x158] sm:$0xff] }
  0x21   :  { %1932 = vmatprep.mubr.msk.f32.mxu0 %vm162_vm1, %v26_v30  ;;  %2040 = vmatprep.mubr.msk.f32.mxu1 %vm162_vm1, %v98_v31  ;;  %v129_v29 = vld [vmem:[%s3156_s0 + $0x398] sm:$0xff]  ;;  %v58_v30 = vld [vmem:[%s3156_s0 + $0x160] sm:$0xff] }
  0x22   :  { %v130_v31 = vld [vmem:[%s3156_s0 + $0x3a0] sm:$0xff] }
  0x24   :  { %1933 = vmatmul.mubr.msk.f32.gmra.mrb[12].mxu0 %vm162_vm1, %v27_v32  ;;  %2041 = vmatmul.mubr.msk.f32.gmra.mrb[12].mxu1 %vm162_vm1, %v99_v33  ;;  %v59_v32 = vld [vmem:[%s3156_s0 + $0x168] sm:$0xff] }
  0x25   :  { %1935 = vmatprep.mubr.msk.f32.mxu0 %vm162_vm1, %v28_v34  ;;  %2043 = vmatprep.mubr.msk.f32.mxu1 %vm162_vm1, %v100_v35  ;;  %v131_v33 = vld [vmem:[%s3156_s0 + $0x3a8] sm:$0xff]  ;;  %v60_v34 = vld [vmem:[%s3156_s0 + $0x170] sm:$0xff] }
  0x26   :  { %v132_v35 = vld [vmem:[%s3156_s0 + $0x3b0] sm:$0xff] }
  0x28   :  { %1936 = vmatmul.mubr.msk.f32.gmra.mrb[14].mxu0 %vm162_vm1, %v29_v36  ;;  %2044 = vmatmul.mubr.msk.f32.gmra.mrb[14].mxu1 %vm162_vm1, %v101_v37  ;;  %v61_v36 = vld [vmem:[%s3156_s0 + $0x178] sm:$0xff] }
  0x29   :  { %1938 = vmatprep.mubr.msk.f32.mxu0 %vm162_vm1, %v30_v38  ;;  %2046 = vmatprep.mubr.msk.f32.mxu1 %vm162_vm1, %v102_v39  ;;  %v133_v37 = vld [vmem:[%s3156_s0 + $0x3b8] sm:$0xff]  ;;  %v62_v38 = vld [vmem:[%s3156_s0 + $0x180] sm:$0xff] }
  0x2a   :  { %v134_v39 = vld [vmem:[%s3156_s0 + $0x3c0] sm:$0xff] }
  0x2c   :  { %1939 = vmatmul.mubr.msk.f32.gmra.mrb[16].mxu0 %vm162_vm1, %v31_v40  ;;  %2047 = vmatmul.mubr.msk.f32.gmra.mrb[16].mxu1 %vm162_vm1, %v103_v41  ;;  %v63_v40 = vld [vmem:[%s3156_s0 + $0x188] sm:$0xff] }
  0x2d   :  { %1941 = vmatprep.mubr.msk.f32.mxu0 %vm162_vm1, %v32_v42  ;;  %2049 = vmatprep.mubr.msk.f32.mxu1 %vm162_vm1, %v104_v43  ;;  %v135_v41 = vld [vmem:[%s3156_s0 + $0x3c8] sm:$0xff]  ;;  %v64_v42 = vld [vmem:[%s3156_s0 + $0x190] sm:$0xff] }
  0x2e   :  { %v136_v43 = vld [vmem:[%s3156_s0 + $0x3d0] sm:$0xff] }
  0x30   :  { %1942 = vmatmul.mubr.msk.f32.gmra.mrb[18].mxu0 %vm162_vm1, %v33_v44  ;;  %2050 = vmatmul.mubr.msk.f32.gmra.mrb[18].mxu1 %vm162_vm1, %v105_v45  ;;  %v65_v44 = vld [vmem:[%s3156_s0 + $0x198] sm:$0xff] }
  0x31   :  { %1944 = vmatprep.mubr.msk.f32.mxu0 %vm162_vm1, %v34_v46  ;;  %2052 = vmatprep.mubr.msk.f32.mxu1 %vm162_vm1, %v106_v47  ;;  %v137_v45 = vld [vmem:[%s3156_s0 + $0x3d8] sm:$0xff]  ;;  %v66_v46 = vld [vmem:[%s3156_s0 + $0x1a0] sm:$0xff] }
  0x32   :  { %v138_v47 = vld [vmem:[%s3156_s0 + $0x3e0] sm:$0xff] }
  0x34   :  { %1945 = vmatmul.mubr.msk.f32.gmra.mrb[20].mxu0 %vm162_vm1, %v35_v48  ;;  %2053 = vmatmul.mubr.msk.f32.gmra.mrb[20].mxu1 %vm162_vm1, %v107_v49  ;;  %v67_v48 = vld [vmem:[%s3156_s0 + $0x1a8] sm:$0xff] }
  0x35   :  { %1947 = vmatprep.mubr.msk.f32.mxu0 %vm162_vm1, %v36_v50  ;;  %2055 = vmatprep.mubr.msk.f32.mxu1 %vm162_vm1, %v108_v51  ;;  %v139_v49 = vld [vmem:[%s3156_s0 + $0x3e8] sm:$0xff]  ;;  %v68_v50 = vld [vmem:[%s3156_s0 + $0x1b0] sm:$0xff] }
  0x36   :  { %v140_v51 = vld [vmem:[%s3156_s0 + $0x3f0] sm:$0xff] }
  0x38   :  { %1948 = vmatmul.mubr.msk.f32.gmra.mrb[22].mxu0 %vm162_vm1, %v37_v52  ;;  %2056 = vmatmul.mubr.msk.f32.gmra.mrb[22].mxu1 %vm162_vm1, %v109_v53  ;;  %v69_v52 = vld [vmem:[%s3156_s0 + $0x1b8] sm:$0xff] }
  0x39   :  { %1950 = vmatprep.mubr.msk.f32.mxu0 %vm162_vm1, %v38_v54  ;;  %2058 = vmatprep.mubr.msk.f32.mxu1 %vm162_vm1, %v110_v55  ;;  %v141_v53 = vld [vmem:[%s3156_s0 + $0x3f8] sm:$0xff]  ;;  %v70_v54 = vld [vmem:[%s3156_s0 + $0x1c0] sm:$0xff] }
  0x3a   :  { %v142_v55 = vld [vmem:[%s3156_s0 + $0x400] sm:$0xff] }
  0x3c   :  { %1951 = vmatmul.mubr.msk.f32.gmra.mrb[24].mxu0 %vm162_vm1, %v39_v56  ;;  %2059 = vmatmul.mubr.msk.f32.gmra.mrb[24].mxu1 %vm162_vm1, %v111_v57  ;;  %v71_v56 = vld [vmem:[%s3156_s0 + $0x1c8] sm:$0xff] }
  0x3d   :  { %1953 = vmatprep.mubr.msk.f32.mxu0 %vm162_vm1, %v40_v58  ;;  %2061 = vmatprep.mubr.msk.f32.mxu1 %vm162_vm1, %v112_v59  ;;  %v143_v57 = vld [vmem:[%s3156_s0 + $0x408] sm:$0xff]  ;;  %v72_v58 = vld [vmem:[%s3156_s0 + $0x1d0] sm:$0xff] }
  0x3e   :  { %v144_v59 = vld [vmem:[%s3156_s0 + $0x410] sm:$0xff] }
  0x40   :  { %1954 = vmatmul.mubr.msk.f32.gmra.mrb[26].mxu0 %vm162_vm1, %v41_v60  ;;  %2062 = vmatmul.mubr.msk.f32.gmra.mrb[26].mxu1 %vm162_vm1, %v113_v61  ;;  %v73_v60 = vld [vmem:[%s3156_s0 + $0x1d8] sm:$0xff] }
  0x41   :  { %1956 = vmatprep.mubr.msk.f32.mxu0 %vm162_vm1, %v42_v62  ;;  %2064 = vmatprep.mubr.msk.f32.mxu1 %vm162_vm1, %v114_v63  ;;  %v145_v61 = vld [vmem:[%s3156_s0 + $0x418] sm:$0xff]  ;;  %v74_v62 = vld [vmem:[%s3156_s0 + $0x1e0] sm:$0xff] }
  0x42   :  { %v146_v63 = vld [vmem:[%s3156_s0 + $0x420] sm:$0xff] }
  0x44   :  { %1957 = vmatmul.mubr.msk.f32.gmra.mrb[28].mxu0 %vm162_vm1, %v43_v0  ;;  %2065 = vmatmul.mubr.msk.f32.gmra.mrb[28].mxu1 %vm162_vm1, %v115_v1  ;;  %v75_v0 = vld [vmem:[%s3156_s0 + $0x1e8] sm:$0xff] }
  0x45   :  { %1959 = vmatprep.mubr.msk.f32.mxu0 %vm162_vm1, %v44_v2  ;;  %2067 = vmatprep.mubr.msk.f32.mxu1 %vm162_vm1, %v116_v3  ;;  %v147_v1 = vld [vmem:[%s3156_s0 + $0x428] sm:$0xff]  ;;  %v76_v2 = vld [vmem:[%s3156_s0 + $0x1f0] sm:$0xff] }
  0x46   :  { %v148_v3 = vld [vmem:[%s3156_s0 + $0x430] sm:$0xff] }
  0x48   :  { %1960 = vmatmul.mubr.msk.f32.gmra.mrb[30].mxu0 %vm162_vm1, %v45_v4  ;;  %2068 = vmatmul.mubr.msk.f32.gmra.mrb[30].mxu1 %vm162_vm1, %v117_v5  ;;  %v77_v4 = vld [vmem:[%s3156_s0 + $0x1f8] sm:$0xff] }
  0x49   :  { %1962 = vmatprep.mubr.msk.f32.mxu0 %vm162_vm1, %v46_v6  ;;  %2070 = vmatprep.mubr.msk.f32.mxu1 %vm162_vm1, %v118_v7  ;;  %v149_v5 = vld [vmem:[%s3156_s0 + $0x438] sm:$0xff]  ;;  %v78_v6 = vld [vmem:[%s3156_s0 + $0x200] sm:$0xff] }
  0x4a   :  { %v150_v7 = vld [vmem:[%s3156_s0 + $0x440] sm:$0xff] }
  0x4c   :  { %1963 = vmatmul.mubr.msk.f32.gmra.mrb[32].mxu0 %vm162_vm1, %v47_v8  ;;  %2071 = vmatmul.mubr.msk.f32.gmra.mrb[32].mxu1 %vm162_vm1, %v119_v9  ;;  %v79_v8 = vld [vmem:[%s3156_s0 + $0x208] sm:$0xff] }
  0x4d   :  { %1965 = vmatprep.mubr.msk.f32.mxu0 %vm162_vm1, %v48_v10  ;;  %2073 = vmatprep.mubr.msk.f32.mxu1 %vm162_vm1, %v120_v11  ;;  %v151_v9 = vld [vmem:[%s3156_s0 + $0x448] sm:$0xff]  ;;  %v80_v10 = vld [vmem:[%s3156_s0 + $0x210] sm:$0xff] }
  0x4e   :  { %v152_v11 = vld [vmem:[%s3156_s0 + $0x450] sm:$0xff] }
  0x50   :  { %1966 = vmatmul.mubr.msk.f32.gmra.mrb[34].mxu0 %vm162_vm1, %v49_v12  ;;  %2074 = vmatmul.mubr.msk.f32.gmra.mrb[34].mxu1 %vm162_vm1, %v121_v13  ;;  %v81_v12 = vld [vmem:[%s3156_s0 + $0x218] sm:$0xff] }
  0x51   :  { %1968 = vmatprep.mubr.msk.f32.mxu0 %vm162_vm1, %v50_v14  ;;  %2076 = vmatprep.mubr.msk.f32.mxu1 %vm162_vm1, %v122_v15  ;;  %v153_v13 = vld [vmem:[%s3156_s0 + $0x458] sm:$0xff]  ;;  %v82_v14 = vld [vmem:[%s3156_s0 + $0x220] sm:$0xff] }
  0x52   :  { %v154_v15 = vld [vmem:[%s3156_s0 + $0x460] sm:$0xff] }
  0x54   :  { %1969 = vmatmul.mubr.msk.f32.gmra.mrb[36].mxu0 %vm162_vm1, %v51_v16  ;;  %2077 = vmatmul.mubr.msk.f32.gmra.mrb[36].mxu1 %vm162_vm1, %v123_v17  ;;  %v83_v16 = vld [vmem:[%s3156_s0 + $0x228] sm:$0xff] }
  0x55   :  { %1971 = vmatprep.mubr.msk.f32.mxu0 %vm162_vm1, %v52_v18  ;;  %2079 = vmatprep.mubr.msk.f32.mxu1 %vm162_vm1, %v124_v19  ;;  %v155_v17 = vld [vmem:[%s3156_s0 + $0x468] sm:$0xff]  ;;  %v84_v18 = vld [vmem:[%s3156_s0 + $0x230] sm:$0xff] }
  0x56   :  { %v156_v19 = vld [vmem:[%s3156_s0 + $0x470] sm:$0xff] }
  0x58   :  { %1972 = vmatmul.mubr.msk.f32.gmra.mrb[38].mxu0 %vm162_vm1, %v53_v20  ;;  %2080 = vmatmul.mubr.msk.f32.gmra.mrb[38].mxu1 %vm162_vm1, %v125_v21  ;;  %v85_v20 = vld [vmem:[%s3156_s0 + $0x238] sm:$0xff] }
  0x59   :  { %1974 = vmatprep.mubr.msk.f32.mxu0 %vm162_vm1, %v54_v22  ;;  %2082 = vmatprep.mubr.msk.f32.mxu1 %vm162_vm1, %v126_v23  ;;  %v157_v21 = vld [vmem:[%s3156_s0 + $0x478] sm:$0xff] }
  0x5c   :  { %1975 = vmatmul.mubr.msk.f32.gmra.mrb[40].mxu0 %vm162_vm1, %v55_v24  ;;  %2083 = vmatmul.mubr.msk.f32.gmra.mrb[40].mxu1 %vm162_vm1, %v127_v25 }
  0x5d   :  { %1977 = vmatprep.mubr.msk.f32.mxu0 %vm162_vm1, %v56_v26  ;;  %2085 = vmatprep.mubr.msk.f32.mxu1 %vm162_vm1, %v128_v27 }
  0x60   :  { %1978 = vmatmul.mubr.msk.f32.gmra.mrb[42].mxu0 %vm162_vm1, %v57_v28  ;;  %2086 = vmatmul.mubr.msk.f32.gmra.mrb[42].mxu1 %vm162_vm1, %v129_v29 }
  0x61   :  { %1980 = vmatprep.mubr.msk.f32.mxu0 %vm162_vm1, %v58_v30  ;;  %2088 = vmatprep.mubr.msk.f32.mxu1 %vm162_vm1, %v130_v31 }
  0x64   :  { %1981 = vmatmul.mubr.msk.f32.gmra.mrb[44].mxu0 %vm162_vm1, %v59_v32  ;;  %2089 = vmatmul.mubr.msk.f32.gmra.mrb[44].mxu1 %vm162_vm1, %v131_v33 }
  0x65   :  { %1983 = vmatprep.mubr.msk.f32.mxu0 %vm162_vm1, %v60_v34  ;;  %2091 = vmatprep.mubr.msk.f32.mxu1 %vm162_vm1, %v132_v35 }
  0x68   :  { %1984 = vmatmul.mubr.msk.f32.gmra.mrb[46].mxu0 %vm162_vm1, %v61_v36  ;;  %2092 = vmatmul.mubr.msk.f32.gmra.mrb[46].mxu1 %vm162_vm1, %v133_v37 }
  0x69   :  { %1986 = vmatprep.mubr.msk.f32.mxu0 %vm162_vm1, %v62_v38  ;;  %2094 = vmatprep.mubr.msk.f32.mxu1 %vm162_vm1, %v134_v39 }
  0x6c   :  { %1987 = vmatmul.mubr.msk.f32.gmra.mrb[48].mxu0 %vm162_vm1, %v63_v40  ;;  %2095 = vmatmul.mubr.msk.f32.gmra.mrb[48].mxu1 %vm162_vm1, %v135_v41 }
  0x6d   :  { %1989 = vmatprep.mubr.msk.f32.mxu0 %vm162_vm1, %v64_v42  ;;  %2097 = vmatprep.mubr.msk.f32.mxu1 %vm162_vm1, %v136_v43 }
  0x70   :  { %1990 = vmatmul.mubr.msk.f32.gmra.mrb[50].mxu0 %vm162_vm1, %v65_v44  ;;  %2098 = vmatmul.mubr.msk.f32.gmra.mrb[50].mxu1 %vm162_vm1, %v137_v45 }
  0x71   :  { %1992 = vmatprep.mubr.msk.f32.mxu0 %vm162_vm1, %v66_v46  ;;  %2100 = vmatprep.mubr.msk.f32.mxu1 %vm162_vm1, %v138_v47 }
  0x74   :  { %1993 = vmatmul.mubr.msk.f32.gmra.mrb[52].mxu0 %vm162_vm1, %v67_v48  ;;  %2101 = vmatmul.mubr.msk.f32.gmra.mrb[52].mxu1 %vm162_vm1, %v139_v49 }
  0x75   :  { %1995 = vmatprep.mubr.msk.f32.mxu0 %vm162_vm1, %v68_v50  ;;  %2103 = vmatprep.mubr.msk.f32.mxu1 %vm162_vm1, %v140_v51 }
  0x78   :  { %1996 = vmatmul.mubr.msk.f32.gmra.mrb[54].mxu0 %vm162_vm1, %v69_v52  ;;  %2104 = vmatmul.mubr.msk.f32.gmra.mrb[54].mxu1 %vm162_vm1, %v141_v53 }
  0x79   :  { %1998 = vmatprep.mubr.msk.f32.mxu0 %vm162_vm1, %v70_v54  ;;  %2106 = vmatprep.mubr.msk.f32.mxu1 %vm162_vm1, %v142_v55 }
  0x7c   :  { %1999 = vmatmul.mubr.msk.f32.gmra.mrb[56].mxu0 %vm162_vm1, %v71_v56  ;;  %2107 = vmatmul.mubr.msk.f32.gmra.mrb[56].mxu1 %vm162_vm1, %v143_v57 }
  0x7d   :  { %2001 = vmatprep.mubr.msk.f32.mxu0 %vm162_vm1, %v72_v58  ;;  %2109 = vmatprep.mubr.msk.f32.mxu1 %vm162_vm1, %v144_v59 }
  0x80   :  { %2002 = vmatmul.mubr.msk.f32.gmra.mrb[58].mxu0 %vm162_vm1, %v73_v60  ;;  %2110 = vmatmul.mubr.msk.f32.gmra.mrb[58].mxu1 %vm162_vm1, %v145_v61 }
  0x81   :  { %2004 = vmatprep.mubr.msk.f32.mxu0 %vm162_vm1, %v74_v62  ;;  %2112 = vmatprep.mubr.msk.f32.mxu1 %vm162_vm1, %v146_v63 }
  0x84   :  { %2005 = vmatmul.mubr.msk.f32.gmra.mrb[60].mxu0 %vm162_vm1, %v75_v0  ;;  %2113 = vmatmul.mubr.msk.f32.gmra.mrb[60].mxu1 %vm162_vm1, %v147_v1 }
  0x85   :  { %2007 = vmatprep.mubr.msk.f32.mxu0 %vm162_vm1, %v76_v2  ;;  %2115 = vmatprep.mubr.msk.f32.mxu1 %vm162_vm1, %v148_v3 }
  0x88   :  { %2008 = vmatmul.mubr.msk.f32.gmra.mrb[62].mxu0 %vm162_vm1, %v77_v4  ;;  %2116 = vmatmul.mubr.msk.f32.gmra.mrb[62].mxu1 %vm162_vm1, %v149_v5 }
  0x89   :  { %2010 = vmatprep.mubr.msk.f32.mxu0 %vm162_vm1, %v78_v6  ;;  %2118 = vmatprep.mubr.msk.f32.mxu1 %vm162_vm1, %v150_v7 }
  0x8c   :  { %2011 = vmatmul.mubr.msk.f32.gmra.mrb[64].mxu0 %vm162_vm1, %v79_v8  ;;  %2119 = vmatmul.mubr.msk.f32.gmra.mrb[64].mxu1 %vm162_vm1, %v151_v9 }
  0x8d   :  { %2013 = vmatprep.mubr.msk.f32.mxu0 %vm162_vm1, %v80_v10  ;;  %2121 = vmatprep.mubr.msk.f32.mxu1 %vm162_vm1, %v152_v11 }
  0x90   :  { %2014 = vmatmul.mubr.msk.f32.gmra.mrb[66].mxu0 %vm162_vm1, %v81_v12  ;;  %2122 = vmatmul.mubr.msk.f32.gmra.mrb[66].mxu1 %vm162_vm1, %v153_v13 }
  0x91   :  { %2016 = vmatprep.mubr.msk.f32.mxu0 %vm162_vm1, %v82_v14  ;;  %2124 = vmatprep.mubr.msk.f32.mxu1 %vm162_vm1, %v154_v15 }
  0x94   :  { %2017 = vmatmul.mubr.msk.f32.gmra.mrb[68].mxu0 %vm162_vm1, %v83_v16  ;;  %2125 = vmatmul.mubr.msk.f32.gmra.mrb[68].mxu1 %vm162_vm1, %v155_v17 }
  0x95   :  { %2019 = vmatprep.mubr.msk.f32.mxu0 %vm162_vm1, %v84_v18  ;;  %2127 = vmatprep.mubr.msk.f32.mxu1 %vm162_vm1, %v156_v19 }
  0x98   :  { %2020 = vmatmul.mubr.msk.f32.gmra.mrb[70].mxu0 %vm162_vm1, %v85_v20  ;;  %2128 = vmatmul.mubr.msk.f32.gmra.mrb[70].mxu1 %vm162_vm1, %v157_v21 }
  0xdf   :  { %v2754_v22 = vpop.f32.mrb[0].mxu0  ;;  %v2756_v23 = vpop.f32.mrb[0].mxu1 }
  0xe0   :  { %v2758_v24 = vpop.f32.mrb[1].mxu0  ;;  %v2760_v25 = vpop.f32.mrb[1].mxu1 }
  0xe3   :  { %v2762_v26 = vpop.f32.mrb[2].mxu0  ;;  %v2764_v27 = vpop.f32.mrb[2].mxu1 }
  0xe4   :  { %v2766_v28 = vpop.f32.mrb[3].mxu0  ;;  %v2768_v29 = vpop.f32.mrb[3].mxu1 }
  0xe7   :  { %v2770_v30 = vpop.f32.mrb[4].mxu0  ;;  %v2772_v31 = vpop.f32.mrb[4].mxu1 }
  0xe8   :  { %v2774_v32 = vpop.f32.mrb[5].mxu0  ;;  %v2776_v33 = vpop.f32.mrb[5].mxu1 }
  0xeb   :  { %v2778_v34 = vpop.f32.mrb[6].mxu0  ;;  %v2780_v35 = vpop.f32.mrb[6].mxu1 }
  0xec   :  { %v2782_v36 = vpop.f32.mrb[7].mxu0  ;;  %v2784_v37 = vpop.f32.mrb[7].mxu1 }
  0xef   :  { %v2786_v38 = vpop.f32.mrb[8].mxu0  ;;  %v2788_v39 = vpop.f32.mrb[8].mxu1 }
  0xf0   :  { %v2790_v40 = vpop.f32.mrb[9].mxu0  ;;  %v2792_v41 = vpop.f32.mrb[9].mxu1 }
  0xf3   :  { %v2794_v42 = vpop.f32.mrb[10].mxu0  ;;  %v2796_v43 = vpop.f32.mrb[10].mxu1 }
  0xf4   :  { %v2798_v44 = vpop.f32.mrb[11].mxu0  ;;  %v2800_v45 = vpop.f32.mrb[11].mxu1 }
  0xf7   :  { %v2802_v46 = vpop.f32.mrb[12].mxu0  ;;  %v2804_v47 = vpop.f32.mrb[12].mxu1 }
  0xf8   :  { %v2806_v48 = vpop.f32.mrb[13].mxu0  ;;  %v2808_v49 = vpop.f32.mrb[13].mxu1 }
  0xfb   :  { %v2810_v50 = vpop.f32.mrb[14].mxu0  ;;  %v2812_v51 = vpop.f32.mrb[14].mxu1 }
  0xfc   :  { %v2814_v52 = vpop.f32.mrb[15].mxu0  ;;  %v2816_v53 = vpop.f32.mrb[15].mxu1 }
  0xff   :  { %v2818_v54 = vpop.f32.mrb[16].mxu0  ;;  %v2820_v55 = vpop.f32.mrb[16].mxu1 }
 0x100   :  { %v2822_v56 = vpop.f32.mrb[17].mxu0  ;;  %v2824_v57 = vpop.f32.mrb[17].mxu1 }
 0x103   :  { %v2826_v58 = vpop.f32.mrb[18].mxu0  ;;  %v2828_v59 = vpop.f32.mrb[18].mxu1 }
 0x104   :  { %v2830_v60 = vpop.f32.mrb[19].mxu0  ;;  %v2832_v61 = vpop.f32.mrb[19].mxu1 }
 0x107   :  { %v2834_v62 = vpop.f32.mrb[20].mxu0  ;;  %v2836_v63 = vpop.f32.mrb[20].mxu1 }
 0x108   :  { %v2838_v0 = vpop.f32.mrb[21].mxu0  ;;  %v2840_v1 = vpop.f32.mrb[21].mxu1 }
 0x10b   :  { %v2842_v2 = vpop.f32.mrb[22].mxu0  ;;  %v2844_v3 = vpop.f32.mrb[22].mxu1 }
 0x10c   :  { %v2846_v4 = vpop.f32.mrb[23].mxu0  ;;  %v2848_v5 = vpop.f32.mrb[23].mxu1 }
 0x10f   :  { %v2850_v6 = vpop.f32.mrb[24].mxu0  ;;  %v2852_v7 = vpop.f32.mrb[24].mxu1 }
 0x110   :  { %3159 = vst [vmem:[#allocation2_spill] sm:$0xff] %v2850_v6  ;;  %3160 = vst [vmem:[#allocation3_spill] sm:$0xff] %v2852_v7  ;;  %v2854_v8 = vpop.f32.mrb[25].mxu0  ;;  %v2856_v9 = vpop.f32.mrb[25].mxu1 }
 0x111   :  { %3161 = vst [vmem:[#allocation4_spill] sm:$0xff] %v2854_v8  ;;  %3162 = vst [vmem:[#allocation5_spill] sm:$0xff] %v2856_v9 }
 0x113   :  { %v2858_v10 = vpop.f32.mrb[26].mxu0  ;;  %v2860_v11 = vpop.f32.mrb[26].mxu1 }
 0x114   :  { %3163 = vst [vmem:[#allocation6_spill] sm:$0xff] %v2858_v10  ;;  %3164 = vst [vmem:[#allocation7_spill] sm:$0xff] %v2860_v11  ;;  %v2862_v12 = vpop.f32.mrb[27].mxu0  ;;  %v2864_v13 = vpop.f32.mrb[27].mxu1 }
 0x115   :  { %3165 = vst [vmem:[#allocation8_spill] sm:$0xff] %v2862_v12  ;;  %3166 = vst [vmem:[#allocation9_spill] sm:$0xff] %v2864_v13 }
 0x117   :  { %v2866_v14 = vpop.f32.mrb[28].mxu0  ;;  %v2868_v15 = vpop.f32.mrb[28].mxu1 }
 0x118   :  { %3167 = vst [vmem:[#allocation10_spill] sm:$0xff] %v2866_v14  ;;  %3168 = vst [vmem:[#allocation11_spill] sm:$0xff] %v2868_v15  ;;  %v2870_v16 = vpop.f32.mrb[29].mxu0  ;;  %v2872_v17 = vpop.f32.mrb[29].mxu1 }
 0x119   :  { %3169 = vst [vmem:[#allocation12_spill] sm:$0xff] %v2870_v16  ;;  %3170 = vst [vmem:[#allocation13_spill] sm:$0xff] %v2872_v17 }
 0x11b   :  { %v2874_v18 = vpop.f32.mrb[30].mxu0  ;;  %v2876_v19 = vpop.f32.mrb[30].mxu1 }
 0x11c   :  { %3171 = vst [vmem:[#allocation14_spill] sm:$0xff] %v2874_v18  ;;  %3172 = vst [vmem:[#allocation15_spill] sm:$0xff] %v2876_v19  ;;  %v2878_v20 = vpop.f32.mrb[31].mxu0  ;;  %v2880_v21 = vpop.f32.mrb[31].mxu1 }
 0x11d   :  { %3173 = vst [vmem:[#allocation16_spill] sm:$0xff] %v2878_v20  ;;  %3174 = vst [vmem:[#allocation17_spill] sm:$0xff] %v2880_v21 }
 0x11f   :  { %v2882_v11 = vpop.f32.mrb[32].mxu0  ;;  %v2884_v12 = vpop.f32.mrb[32].mxu1 }
 0x120   :  { %3175 = vst [vmem:[#allocation18_spill] sm:$0xff] %v2882_v11  ;;  %3176 = vst [vmem:[#allocation19_spill] sm:$0xff] %v2884_v12  ;;  %v2886_v13 = vpop.f32.mrb[33].mxu0  ;;  %v2888_v14 = vpop.f32.mrb[33].mxu1 }
 0x121   :  { %3177 = vst [vmem:[#allocation20_spill] sm:$0xff] %v2886_v13  ;;  %3178 = vst [vmem:[#allocation21_spill] sm:$0xff] %v2888_v14  ;;  %v2903_v14 = vld [vmem:[%s3157_s2] ss:$0 sm:$0xff] }
 0x123   :  { %v2890_v15 = vpop.f32.mrb[34].mxu0  ;;  %v2892_v16 = vpop.f32.mrb[34].mxu1 }
 0x124   :  { %3179 = vst [vmem:[#allocation22_spill] sm:$0xff] %v2890_v15  ;;  %3180 = vst [vmem:[#allocation23_spill] sm:$0xff] %v2892_v16  ;;  %v2894_v17 = vpop.f32.mrb[35].mxu0  ;;  %v2896_v18 = vpop.f32.mrb[35].mxu1 }
 0x125   :  { %3181 = vst [vmem:[#allocation24_spill] sm:$0xff] %v2894_v17  ;;  %3182 = vst [vmem:[#allocation25_spill] sm:$0xff] %v2896_v18 }
 0x127   :  { %v1970_v19 = vpop.f32.mrb[36].mxu0  ;;  %v2078_v20 = vpop.f32.mrb[36].mxu1 }
 0x128   :  { %v1385_v21 = vmax.f32 %v2754_v22, %v1970_v19  ;;  %v1421_v11 = vmax.f32 %v2756_v23, %v2078_v20  ;;  %v845_v10 = vpop.f32.mrb[37].mxu0  ;;  %v1205_v12 = vpop.f32.mrb[37].mxu1 }
 0x129   :  { %v1384_v15 = vmax.f32 %v2758_v24, %v845_v10  ;;  %v1420_v16 = vmax.f32 %v2760_v25, %v1205_v12 }
 0x12a   :  { %v1457_v17 = vmax.f32 %v1385_v21, %v1421_v11 }
 0x12b   :  { %v1456_v13 = vmax.f32 %v1384_v15, %v1420_v16  ;;  %v1973_v18 = vpop.f32.mrb[38].mxu0  ;;  %v2081_v9 = vpop.f32.mrb[38].mxu1 }
 0x12c   :  { %v1500_v8 = vadd.f32 %v2903_v14, %v1457_v17  ;;  %v1387_v22 = vmax.f32 %v2762_v26, %v1973_v18  ;;  %v1423_v23 = vmax.f32 %v2764_v27, %v2081_v9  ;;  %v855_v19 = vpop.f32.mrb[39].mxu0  ;;  %v1215_v20 = vpop.f32.mrb[39].mxu1 }
 0x12d   :  { %v1499_v7 = vadd.f32 %v2903_v14, %v1456_v13  ;;  %v1386_v6 = vmax.f32 %v2766_v28, %v855_v19  ;;  %v1422_v24 = vmax.f32 %v2768_v29, %v1215_v20 }
 0x12e   :  { %v1536_v25 = vmax.f32 %v1500_v8, 0.0  ;;  %v1459_v10 = vmax.f32 %v1387_v22, %v1423_v23 }
 0x12f   :  { %v1535_v11 = vmax.f32 %v1499_v7, 0.0  ;;  %v1458_v12 = vmax.f32 %v1386_v6, %v1422_v24  ;;  %v1976_v15 = vpop.f32.mrb[40].mxu0  ;;  %v2084_v16 = vpop.f32.mrb[40].mxu1 }
 0x130   :  { %1573 = vst.msk [vmem:[%s3158_s3 + $0x8] sm:$0xff] %vm1571_vm4, %v1536_v25  ;;  %v1502_v26 = vadd.f32 %v2903_v14, %v1459_v10  ;;  %v1389_v27 = vmax.f32 %v2770_v30, %v1976_v15  ;;  %v1425_v9 = vmax.f32 %v2772_v31, %v2084_v16  ;;  %v865_v28 = vpop.f32.mrb[41].mxu0  ;;  %v1225_v13 = vpop.f32.mrb[41].mxu1 }
 0x131   :  { %1572 = vst.msk [vmem:[%s3158_s3] sm:$0xff] %vm1571_vm4, %v1535_v11  ;;  %v1501_v29 = vadd.f32 %v2903_v14, %v1458_v12  ;;  %v1388_v6 = vmax.f32 %v2774_v32, %v865_v28  ;;  %v1424_v7 = vmax.f32 %v2776_v33, %v1225_v13 }
 0x132   :  { %v1538_v8 = vmax.f32 %v1502_v26, 0.0  ;;  %v1461_v17 = vmax.f32 %v1389_v27, %v1425_v9 }
 0x133   :  { %v1537_v18 = vmax.f32 %v1501_v29, 0.0  ;;  %v1460_v21 = vmax.f32 %v1388_v6, %v1424_v7  ;;  %v1979_v30 = vpop.f32.mrb[42].mxu0  ;;  %v2087_v22 = vpop.f32.mrb[42].mxu1 }
 0x134   :  { %1575 = vst.msk [vmem:[%s3158_s3 + $0x18] sm:$0xff] %vm1571_vm4, %v1538_v8  ;;  %v1504_v31 = vadd.f32 %v2903_v14, %v1461_v17  ;;  %v1391_v23 = vmax.f32 %v2778_v34, %v1979_v30  ;;  %v1427_v19 = vmax.f32 %v2780_v35, %v2087_v22  ;;  %v875_v32 = vpop.f32.mrb[43].mxu0  ;;  %v1235_v20 = vpop.f32.mrb[43].mxu1 }
 0x135   :  { %1574 = vst.msk [vmem:[%s3158_s3 + $0x10] sm:$0xff] %vm1571_vm4, %v1537_v18  ;;  %v1503_v33 = vadd.f32 %v2903_v14, %v1460_v21  ;;  %v1390_v24 = vmax.f32 %v2782_v36, %v875_v32  ;;  %v1426_v25 = vmax.f32 %v2784_v37, %v1235_v20 }
 0x136   :  { %v1540_v10 = vmax.f32 %v1504_v31, 0.0  ;;  %v1463_v11 = vmax.f32 %v1391_v23, %v1427_v19 }
 0x137   :  { %v1539_v12 = vmax.f32 %v1503_v33, 0.0  ;;  %v1462_v15 = vmax.f32 %v1390_v24, %v1426_v25  ;;  %v1982_v34 = vpop.f32.mrb[44].mxu0  ;;  %v2090_v16 = vpop.f32.mrb[44].mxu1 }
 0x138   :  { %1577 = vst.msk [vmem:[%s3158_s3 + $0x28] sm:$0xff] %vm1571_vm4, %v1540_v10  ;;  %v1506_v35 = vadd.f32 %v2903_v14, %v1463_v11  ;;  %v1393_v26 = vmax.f32 %v2786_v38, %v1982_v34  ;;  %v1429_v27 = vmax.f32 %v2788_v39, %v2090_v16  ;;  %v885_v36 = vpop.f32.mrb[45].mxu0  ;;  %v1245_v9 = vpop.f32.mrb[45].mxu1 }
 0x139   :  { %1576 = vst.msk [vmem:[%s3158_s3 + $0x20] sm:$0xff] %vm1571_vm4, %v1539_v12  ;;  %v1505_v37 = vadd.f32 %v2903_v14, %v1462_v15  ;;  %v1392_v28 = vmax.f32 %v2790_v40, %v885_v36  ;;  %v1428_v13 = vmax.f32 %v2792_v41, %v1245_v9 }
 0x13a   :  { %v1542_v29 = vmax.f32 %v1506_v35, 0.0  ;;  %v1465_v6 = vmax.f32 %v1393_v26, %v1429_v27 }
 0x13b   :  { %v1541_v7 = vmax.f32 %v1505_v37, 0.0  ;;  %v1464_v8 = vmax.f32 %v1392_v28, %v1428_v13  ;;  %v1985_v38 = vpop.f32.mrb[46].mxu0  ;;  %v2093_v17 = vpop.f32.mrb[46].mxu1 }
 0x13c   :  { %1579 = vst.msk [vmem:[%s3158_s3 + $0x38] sm:$0xff] %vm1571_vm4, %v1542_v29  ;;  %v1508_v39 = vadd.f32 %v2903_v14, %v1465_v6  ;;  %v1395_v18 = vmax.f32 %v2794_v42, %v1985_v38  ;;  %v1431_v21 = vmax.f32 %v2796_v43, %v2093_v17  ;;  %v895_v40 = vpop.f32.mrb[47].mxu0  ;;  %v1255_v30 = vpop.f32.mrb[47].mxu1 }
 0x13d   :  { %1578 = vst.msk [vmem:[%s3158_s3 + $0x30] sm:$0xff] %vm1571_vm4, %v1541_v7  ;;  %v1507_v41 = vadd.f32 %v2903_v14, %v1464_v8  ;;  %v1394_v22 = vmax.f32 %v2798_v44, %v895_v40  ;;  %v1430_v31 = vmax.f32 %v2800_v45, %v1255_v30 }
 0x13e   :  { %v1544_v23 = vmax.f32 %v1508_v39, 0.0  ;;  %v1467_v19 = vmax.f32 %v1395_v18, %v1431_v21 }
 0x13f   :  { %v1543_v32 = vmax.f32 %v1507_v41, 0.0  ;;  %v1466_v20 = vmax.f32 %v1394_v22, %v1430_v31  ;;  %v1988_v42 = vpop.f32.mrb[48].mxu0  ;;  %v2096_v33 = vpop.f32.mrb[48].mxu1 }
 0x140   :  { %1581 = vst.msk [vmem:[%s3158_s3 + $0x48] sm:$0xff] %vm1571_vm4, %v1544_v23  ;;  %v1510_v43 = vadd.f32 %v2903_v14, %v1467_v19  ;;  %v1397_v24 = vmax.f32 %v2802_v46, %v1988_v42  ;;  %v1433_v25 = vmax.f32 %v2804_v47, %v2096_v33  ;;  %v905_v44 = vpop.f32.mrb[49].mxu0  ;;  %v1265_v10 = vpop.f32.mrb[49].mxu1 }
 0x141   :  { %1580 = vst.msk [vmem:[%s3158_s3 + $0x40] sm:$0xff] %vm1571_vm4, %v1543_v32  ;;  %v1509_v45 = vadd.f32 %v2903_v14, %v1466_v20  ;;  %v1396_v11 = vmax.f32 %v2806_v48, %v905_v44  ;;  %v1432_v12 = vmax.f32 %v2808_v49, %v1265_v10 }
 0x142   :  { %v1546_v15 = vmax.f32 %v1510_v43, 0.0  ;;  %v1469_v34 = vmax.f32 %v1397_v24, %v1433_v25 }
 0x143   :  { %v1545_v16 = vmax.f32 %v1509_v45, 0.0  ;;  %v1468_v35 = vmax.f32 %v1396_v11, %v1432_v12  ;;  %v1991_v46 = vpop.f32.mrb[50].mxu0  ;;  %v2099_v26 = vpop.f32.mrb[50].mxu1 }
 0x144   :  { %1583 = vst.msk [vmem:[%s3158_s3 + $0x58] sm:$0xff] %vm1571_vm4, %v1546_v15  ;;  %v1512_v47 = vadd.f32 %v2903_v14, %v1469_v34  ;;  %v1399_v27 = vmax.f32 %v2810_v50, %v1991_v46  ;;  %v1435_v36 = vmax.f32 %v2812_v51, %v2099_v26  ;;  %v915_v48 = vpop.f32.mrb[51].mxu0  ;;  %v1275_v9 = vpop.f32.mrb[51].mxu1 }
 0x145   :  { %1582 = vst.msk [vmem:[%s3158_s3 + $0x50] sm:$0xff] %vm1571_vm4, %v1545_v16  ;;  %v1511_v49 = vadd.f32 %v2903_v14, %v1468_v35  ;;  %v1398_v37 = vmax.f32 %v2814_v52, %v915_v48  ;;  %v1434_v28 = vmax.f32 %v2816_v53, %v1275_v9 }
 0x146   :  { %v1548_v13 = vmax.f32 %v1512_v47, 0.0  ;;  %v1471_v29 = vmax.f32 %v1399_v27, %v1435_v36 }
 0x147   :  { %v1547_v6 = vmax.f32 %v1511_v49, 0.0  ;;  %v1470_v7 = vmax.f32 %v1398_v37, %v1434_v28  ;;  %v1994_v50 = vpop.f32.mrb[52].mxu0  ;;  %v2102_v8 = vpop.f32.mrb[52].mxu1 }
 0x148   :  { %1585 = vst.msk [vmem:[%s3158_s3 + $0x68] sm:$0xff] %vm1571_vm4, %v1548_v13  ;;  %v1514_v51 = vadd.f32 %v2903_v14, %v1471_v29  ;;  %v1401_v38 = vmax.f32 %v2818_v54, %v1994_v50  ;;  %v1437_v17 = vmax.f32 %v2820_v55, %v2102_v8  ;;  %v925_v52 = vpop.f32.mrb[53].mxu0  ;;  %v1285_v39 = vpop.f32.mrb[53].mxu1  ;;  %v3184_v50 = vld [vmem:[#allocation3_spill] sm:$0xff] }
 0x149   :  { %1584 = vst.msk [vmem:[%s3158_s3 + $0x60] sm:$0xff] %vm1571_vm4, %v1547_v6  ;;  %v1513_v53 = vadd.f32 %v2903_v14, %v1470_v7  ;;  %v1400_v18 = vmax.f32 %v2822_v56, %v925_v52  ;;  %v1436_v21 = vmax.f32 %v2824_v57, %v1285_v39  ;;  %v3183_v6 = vld [vmem:[#allocation2_spill] sm:$0xff]  ;;  %v3186_v52 = vld [vmem:[#allocation5_spill] sm:$0xff] }
 0x14a   :  { %v1550_v40 = vmax.f32 %v1514_v51, 0.0  ;;  %v1473_v30 = vmax.f32 %v1401_v38, %v1437_v17  ;;  %v3185_v38 = vld [vmem:[#allocation4_spill] sm:$0xff] }
 0x14b   :  { %v1549_v41 = vmax.f32 %v1513_v53, 0.0  ;;  %v1472_v22 = vmax.f32 %v1400_v18, %v1436_v21  ;;  %v1997_v54 = vpop.f32.mrb[54].mxu0  ;;  %v2105_v31 = vpop.f32.mrb[54].mxu1 }
 0x14c   :  { %1587 = vst.msk [vmem:[%s3158_s3 + $0x78] sm:$0xff] %vm1571_vm4, %v1550_v40  ;;  %v1516_v55 = vadd.f32 %v2903_v14, %v1473_v30  ;;  %v1403_v23 = vmax.f32 %v2826_v58, %v1997_v54  ;;  %v1439_v19 = vmax.f32 %v2828_v59, %v2105_v31  ;;  %v935_v56 = vpop.f32.mrb[55].mxu0  ;;  %v1295_v32 = vpop.f32.mrb[55].mxu1  ;;  %v3187_v54 = vld [vmem:[#allocation6_spill] sm:$0xff] }
 0x14d   :  { %1586 = vst.msk [vmem:[%s3158_s3 + $0x70] sm:$0xff] %vm1571_vm4, %v1549_v41  ;;  %v1515_v57 = vadd.f32 %v2903_v14, %v1472_v22  ;;  %v1402_v20 = vmax.f32 %v2830_v60, %v935_v56  ;;  %v1438_v42 = vmax.f32 %v2832_v61, %v1295_v32 }
 0x14e   :  { %v1552_v33 = vmax.f32 %v1516_v55, 0.0  ;;  %v1475_v43 = vmax.f32 %v1403_v23, %v1439_v19  ;;  %v3188_v55 = vld [vmem:[#allocation7_spill] sm:$0xff] }
 0x14f   :  { %v1551_v24 = vmax.f32 %v1515_v57, 0.0  ;;  %v1474_v25 = vmax.f32 %v1402_v20, %v1438_v42  ;;  %v2000_v58 = vpop.f32.mrb[56].mxu0  ;;  %v2108_v44 = vpop.f32.mrb[56].mxu1  ;;  %v3189_v57 = vld [vmem:[#allocation8_spill] sm:$0xff]  ;;  %v3190_v42 = vld [vmem:[#allocation9_spill] sm:$0xff] }
 0x150   :  { %1589 = vst.msk [vmem:[%s3158_s3 + $0x88] sm:$0xff] %vm1571_vm4, %v1552_v33  ;;  %v1518_v59 = vadd.f32 %v2903_v14, %v1475_v43  ;;  %v1405_v10 = vmax.f32 %v2834_v62, %v2000_v58  ;;  %v1441_v45 = vmax.f32 %v2836_v63, %v2108_v44  ;;  %v945_v60 = vpop.f32.mrb[57].mxu0  ;;  %v1305_v11 = vpop.f32.mrb[57].mxu1 }
 0x151   :  { %1588 = vst.msk [vmem:[%s3158_s3 + $0x80] sm:$0xff] %vm1571_vm4, %v1551_v24  ;;  %v1517_v61 = vadd.f32 %v2903_v14, %v1474_v25  ;;  %v1404_v12 = vmax.f32 %v2838_v0, %v945_v60  ;;  %v1440_v15 = vmax.f32 %v2840_v1, %v1305_v11  ;;  %v3192_v11 = vld [vmem:[#allocation11_spill] sm:$0xff] }
 0x152   :  { %v1554_v34 = vmax.f32 %v1518_v59, 0.0  ;;  %v1477_v16 = vmax.f32 %v1405_v10, %v1441_v45  ;;  %v3191_v45 = vld [vmem:[#allocation10_spill] sm:$0xff] }
 0x153   :  { %v1553_v35 = vmax.f32 %v1517_v61, 0.0  ;;  %v1476_v46 = vmax.f32 %v1404_v12, %v1440_v15  ;;  %v2003_v62 = vpop.f32.mrb[58].mxu0  ;;  %v2111_v26 = vpop.f32.mrb[58].mxu1 }
 0x154   :  { %1591 = vst.msk [vmem:[%s3158_s3 + $0x98] sm:$0xff] %vm1571_vm4, %v1554_v34  ;;  %v1520_v63 = vadd.f32 %v2903_v14, %v1477_v16  ;;  %v1407_v47 = vmax.f32 %v2842_v2, %v2003_v62  ;;  %v1443_v27 = vmax.f32 %v2844_v3, %v2111_v26  ;;  %v955_v0 = vpop.f32.mrb[59].mxu0  ;;  %v1315_v36 = vpop.f32.mrb[59].mxu1  ;;  %v3193_v16 = vld [vmem:[#allocation12_spill] sm:$0xff] }
 0x155   :  { %1590 = vst.msk [vmem:[%s3158_s3 + $0x90] sm:$0xff] %vm1571_vm4, %v1553_v35  ;;  %v1519_v1 = vadd.f32 %v2903_v14, %v1476_v46  ;;  %v1406_v48 = vmax.f32 %v2846_v4, %v955_v0  ;;  %v1442_v9 = vmax.f32 %v2848_v5, %v1315_v36  ;;  %v3194_v46 = vld [vmem:[#allocation13_spill] sm:$0xff] }
 0x156   :  { %v1556_v49 = vmax.f32 %v1520_v63, 0.0  ;;  %v1479_v37 = vmax.f32 %v1407_v47, %v1443_v27 }
 0x157   :  { %v1555_v28 = vmax.f32 %v1519_v1, 0.0  ;;  %v1478_v13 = vmax.f32 %v1406_v48, %v1442_v9  ;;  %v2006_v2 = vpop.f32.mrb[60].mxu0  ;;  %v2114_v29 = vpop.f32.mrb[60].mxu1  ;;  %v3195_v48 = vld [vmem:[#allocation14_spill] sm:$0xff] }
 0x158   :  { %1593 = vst.msk [vmem:[%s3158_s3 + $0xa8] sm:$0xff] %vm1571_vm4, %v1556_v49  ;;  %v1522_v3 = vadd.f32 %v2903_v14, %v1479_v37  ;;  %v1409_v7 = vmax.f32 %v3183_v6, %v2006_v2  ;;  %v1445_v8 = vmax.f32 %v3184_v50, %v2114_v29  ;;  %v965_v4 = vpop.f32.mrb[61].mxu0  ;;  %v1325_v51 = vpop.f32.mrb[61].mxu1  ;;  %v3196_v49 = vld [vmem:[#allocation15_spill] sm:$0xff]  ;;  %v3197_v29 = vld [vmem:[#allocation16_spill] sm:$0xff]  ;;  %v3198_v6 = vld [vmem:[#allocation17_spill] sm:$0xff] }
 0x159   :  { %1592 = vst.msk [vmem:[%s3158_s3 + $0xa0] sm:$0xff] %vm1571_vm4, %v1555_v28  ;;  %v1521_v5 = vadd.f32 %v2903_v14, %v1478_v13  ;;  %v1408_v17 = vmax.f32 %v3185_v38, %v965_v4  ;;  %v1444_v39 = vmax.f32 %v3186_v52, %v1325_v51  ;;  %v3199_v52 = vld [vmem:[#allocation18_spill] sm:$0xff] }
 0x15a   :  { %v1558_v53 = vmax.f32 %v1522_v3, 0.0  ;;  %v1481_v18 = vmax.f32 %v1409_v7, %v1445_v8 }
 0x15b   :  { %v1557_v21 = vmax.f32 %v1521_v5, 0.0  ;;  %v1480_v40 = vmax.f32 %v1408_v17, %v1444_v39  ;;  %v2009_v30 = vpop.f32.mrb[62].mxu0  ;;  %v2117_v41 = vpop.f32.mrb[62].mxu1 }
 0x15c   :  { %1595 = vst.msk [vmem:[%s3158_s3 + $0xb8] sm:$0xff] %vm1571_vm4, %v1558_v53  ;;  %v1524_v22 = vadd.f32 %v2903_v14, %v1481_v18  ;;  %v1411_v31 = vmax.f32 %v3187_v54, %v2009_v30  ;;  %v1447_v23 = vmax.f32 %v3188_v55, %v2117_v41  ;;  %v975_v19 = vpop.f32.mrb[63].mxu0  ;;  %v1335_v56 = vpop.f32.mrb[63].mxu1  ;;  %v3200_v53 = vld [vmem:[#allocation19_spill] sm:$0xff]  ;;  %v3201_v41 = vld [vmem:[#allocation20_spill] sm:$0xff]  ;;  %v3202_v54 = vld [vmem:[#allocation21_spill] sm:$0xff] }
 0x15d   :  { %1594 = vst.msk [vmem:[%s3158_s3 + $0xb0] sm:$0xff] %vm1571_vm4, %v1557_v21  ;;  %v1523_v32 = vadd.f32 %v2903_v14, %v1480_v40  ;;  %v1410_v20 = vmax.f32 %v3189_v57, %v975_v19  ;;  %v1446_v33 = vmax.f32 %v3190_v42, %v1335_v56  ;;  %v3203_v42 = vld [vmem:[#allocation22_spill] sm:$0xff] }
 0x15e   :  { %v1560_v43 = vmax.f32 %v1524_v22, 0.0  ;;  %v1483_v24 = vmax.f32 %v1411_v31, %v1447_v23 }
 0x15f   :  { %v1559_v25 = vmax.f32 %v1523_v32, 0.0  ;;  %v1482_v58 = vmax.f32 %v1410_v20, %v1446_v33  ;;  %v2012_v44 = vpop.f32.mrb[64].mxu0  ;;  %v2120_v59 = vpop.f32.mrb[64].mxu1 }
 0x160   :  { %1597 = vst.msk [vmem:[%s3158_s3 + $0xc8] sm:$0xff] %vm1571_vm4, %v1560_v43  ;;  %v1526_v10 = vadd.f32 %v2903_v14, %v1483_v24  ;;  %v1413_v60 = vmax.f32 %v3191_v45, %v2012_v44  ;;  %v1449_v61 = vmax.f32 %v3192_v11, %v2120_v59  ;;  %v985_v12 = vpop.f32.mrb[65].mxu0  ;;  %v1345_v15 = vpop.f32.mrb[65].mxu1  ;;  %v3204_v43 = vld [vmem:[#allocation23_spill] sm:$0xff]  ;;  %v3205_v59 = vld [vmem:[#allocation24_spill] sm:$0xff]  ;;  %v3206_v45 = vld [vmem:[#allocation25_spill] sm:$0xff] }
 0x161   :  { %1596 = vst.msk [vmem:[%s3158_s3 + $0xc0] sm:$0xff] %vm1571_vm4, %v1559_v25  ;;  %v1525_v34 = vadd.f32 %v2903_v14, %v1482_v58  ;;  %v1412_v35 = vmax.f32 %v3193_v16, %v985_v12  ;;  %v1448_v62 = vmax.f32 %v3194_v46, %v1345_v15 }
 0x162   :  { %v1562_v26 = vmax.f32 %v1526_v10, 0.0  ;;  %v1485_v63 = vmax.f32 %v1413_v60, %v1449_v61 }
 0x163   :  { %v1561_v47 = vmax.f32 %v1525_v34, 0.0  ;;  %v1484_v27 = vmax.f32 %v1412_v35, %v1448_v62  ;;  %v2015_v0 = vpop.f32.mrb[66].mxu0  ;;  %v2123_v36 = vpop.f32.mrb[66].mxu1 }
 0x164   :  { %1599 = vst.msk [vmem:[%s3158_s3 + $0xd8] sm:$0xff] %vm1571_vm4, %v1562_v26  ;;  %v1528_v1 = vadd.f32 %v2903_v14, %v1485_v63  ;;  %v1415_v9 = vmax.f32 %v3195_v48, %v2015_v0  ;;  %v1451_v37 = vmax.f32 %v3196_v49, %v2123_v36  ;;  %v995_v28 = vpop.f32.mrb[67].mxu0  ;;  %v1355_v13 = vpop.f32.mrb[67].mxu1 }
 0x165   :  { %1598 = vst.msk [vmem:[%s3158_s3 + $0xd0] sm:$0xff] %vm1571_vm4, %v1561_v47  ;;  %v1527_v2 = vadd.f32 %v2903_v14, %v1484_v27  ;;  %v1414_v3 = vmax.f32 %v3197_v29, %v995_v28  ;;  %v1450_v7 = vmax.f32 %v3198_v6, %v1355_v13 }
 0x166   :  { %v1564_v50 = vmax.f32 %v1528_v1, 0.0  ;;  %v1487_v8 = vmax.f32 %v1415_v9, %v1451_v37 }
 0x167   :  { %v1563_v4 = vmax.f32 %v1527_v2, 0.0  ;;  %v1486_v51 = vmax.f32 %v1414_v3, %v1450_v7  ;;  %v2018_v5 = vpop.f32.mrb[68].mxu0  ;;  %v2126_v38 = vpop.f32.mrb[68].mxu1 }
 0x168   :  { %1601 = vst.msk [vmem:[%s3158_s3 + $0xe8] sm:$0xff] %vm1571_vm4, %v1564_v50  ;;  %v1530_v17 = vadd.f32 %v2903_v14, %v1487_v8  ;;  %v1417_v39 = vmax.f32 %v3199_v52, %v2018_v5  ;;  %v1453_v18 = vmax.f32 %v3200_v53, %v2126_v38  ;;  %v1005_v21 = vpop.f32.mrb[69].mxu0  ;;  %v1365_v40 = vpop.f32.mrb[69].mxu1 }
 0x169   :  { %1600 = vst.msk [vmem:[%s3158_s3 + $0xe0] sm:$0xff] %vm1571_vm4, %v1563_v4  ;;  %v1529_v30 = vadd.f32 %v2903_v14, %v1486_v51  ;;  %v1416_v22 = vmax.f32 %v3201_v41, %v1005_v21  ;;  %v1452_v31 = vmax.f32 %v3202_v54, %v1365_v40 }
 0x16a   :  { %v1566_v55 = vmax.f32 %v1530_v17, 0.0  ;;  %v1489_v23 = vmax.f32 %v1417_v39, %v1453_v18 }
 0x16b   :  { %v1565_v19 = vmax.f32 %v1529_v30, 0.0  ;;  %v1488_v56 = vmax.f32 %v1416_v22, %v1452_v31  ;;  %v2021_v32 = vpop.f32.mrb[70].mxu0  ;;  %v2129_v57 = vpop.f32.mrb[70].mxu1 }
 0x16c   :  { %1603 = vst.msk [vmem:[%s3158_s3 + $0xf8] sm:$0xff] %vm1571_vm4, %v1566_v55  ;;  %v1532_v20 = vadd.f32 %v2903_v14, %v1489_v23  ;;  %v1419_v33 = vmax.f32 %v3203_v42, %v2021_v32  ;;  %v1455_v24 = vmax.f32 %v3204_v43, %v2129_v57  ;;  %v1015_v25 = vpop.f32.mrb[71].mxu0  ;;  %v1375_v58 = vpop.f32.mrb[71].mxu1 }
 0x16d   :  { %1602 = vst.msk [vmem:[%s3158_s3 + $0xf0] sm:$0xff] %vm1571_vm4, %v1565_v19  ;;  %v1531_v44 = vadd.f32 %v2903_v14, %v1488_v56  ;;  %v1418_v10 = vmax.f32 %v3205_v59, %v1015_v25  ;;  %v1454_v60 = vmax.f32 %v3206_v45, %v1375_v58 }
 0x16e   :  { %v1568_v11 = vmax.f32 %v1532_v20, 0.0  ;;  %v1491_v61 = vmax.f32 %v1419_v33, %v1455_v24 }
 0x16f   :  { %v1567_v12 = vmax.f32 %v1531_v44, 0.0  ;;  %v1490_v15 = vmax.f32 %v1418_v10, %v1454_v60 }
 0x170   :  { %1605 = vst.msk [vmem:[%s3158_s3 + $0x108] sm:$0xff] %vm1571_vm4, %v1568_v11  ;;  %v1534_v34 = vadd.f32 %v2903_v14, %v1491_v61 }
 0x171   :  { %1604 = vst.msk [vmem:[%s3158_s3 + $0x100] sm:$0xff] %vm1571_vm4, %v1567_v12  ;;  %v1533_v16 = vadd.f32 %v2903_v14, %v1490_v15 }
 0x172   :  { %v1570_v35 = vmax.f32 %v1534_v34, 0.0 }
 0x173   :  { %v1569_v46 = vmax.f32 %v1533_v16, 0.0 }
 0x174   :  { %1607 = vst.msk [vmem:[%s3158_s3 + $0x118] sm:$0xff] %vm1571_vm4, %v1570_v35 }
 0x175   :  { %1606 = vst.msk [vmem:[%s3158_s3 + $0x110] sm:$0xff] %vm1571_vm4, %v1569_v46 }

// kernel: forward.3
= control target key start
LH: loop header
LB: loop body
LE: loop exit
PB: predicated region body
PF: predicated region fallthrough
CT: control target
= control target key end

     0   :  { %v4317_v3 = vmov 0.0|0.0   ;;  %vm141_vm0 = vcmask 130048   ;;  %s5848_s0 = inlined_call_operand.vmem [shape: f32[128,400], index: 0, kind: input, shape index: {}]   ;;  %s5849_s1 = inlined_call_operand.vmem [shape: f32[400,32], index: 1, kind: input, shape index: {}]   ;;  %s5850_s2 = inlined_call_operand.vmem [shape: f32[1,32], index: 2, kind: input, shape index: {}]   ;;  %s5851_s3 = inlined_call_operand.vmem [shape: f32[16,32,512], index: 3, kind: input, shape index: {}]   ;;  %s5852_s4 = inlined_call_operand.vmem [shape: f32[1,512], index: 4, kind: input, shape index: {}]   ;;  %s5853_s5 = inlined_call_operand.vmem [shape: f32[512,128], index: 5, kind: input, shape index: {}]   ;;  %s5854_s6 = inlined_call_operand.vmem [shape: f32[1,128], index: 6, kind: input, shape index: {}]   ;;  %s5855_s7 = inlined_call_operand.hbm [shape: f32[2,128], index: 7, kind: output, shape index: {}]  }
   0x1   :  { %v107_v0 = vld [vmem:[%s5849_s1 + $0x80] sm:$0xff]  ;;  %v108_v1 = vld [vmem:[%s5849_s1 + $0x88] sm:$0xff]  ;;  %3883 = vmatprep.subr.bf16.mxu1 %v4317_v3  ;;  %v109_v10 = vld [vmem:[%s5849_s1 + $0x90] sm:$0xff] }
   0x2   :  { %v123_v2 = vld [vmem:[%s5849_s1 + $0x100] sm:$0xff]  ;;  %v3851_v4 = vpack.c.bf16 %v108_v1, %v107_v0  ;;  %v124_v5 = vld [vmem:[%s5849_s1 + $0x108] sm:$0xff]  ;;  %v110_v11 = vld [vmem:[%s5849_s1 + $0x98] sm:$0xff] }
   0x3   :  { %v91_v6 = vld [vmem:[%s5849_s1] sm:$0xff]  ;;  %v92_v7 = vld [vmem:[%s5849_s1 + $0x8] sm:$0xff]  ;;  %v3884_v8 = vpack.c.bf16 %v124_v5, %v123_v2  ;;  %v125_v12 = vld [vmem:[%s5849_s1 + $0x110] sm:$0xff]  ;;  %v3855_v13 = vpack.c.bf16 %v110_v11, %v109_v10 }
   0x4   :  { %v3853_v9 = vpack.c.bf16 %v92_v7, %v91_v6  ;;  %3852 = vmatprep.subr.bf16.mxu0 %v3851_v4  ;;  %v126_v14 = vld [vmem:[%s5849_s1 + $0x118] sm:$0xff]  ;;  %v93_v15 = vld [vmem:[%s5849_s1 + $0x10] sm:$0xff]  ;;  %v111_v19 = vld [vmem:[%s5849_s1 + $0xa0] sm:$0xff] }
   0x5   :  { %v94_v16 = vld [vmem:[%s5849_s1 + $0x18] sm:$0xff]  ;;  %3885 = vmatpush1.bf16.msra.mxu1 %v3884_v8  ;;  %v3887_v17 = vpack.c.bf16 %v126_v14, %v125_v12  ;;  %v112_v20 = vld [vmem:[%s5849_s1 + $0xa8] sm:$0xff]  ;;  %v127_v21 = vld [vmem:[%s5849_s1 + $0x120] sm:$0xff] }
   0x6   :  { %3854 = vmatpush3.bf16.msra.mxu0 %v3853_v9  ;;  %v3857_v18 = vpack.c.bf16 %v94_v16, %v93_v15  ;;  %3886 = vmatprep.subr.bf16.mxu1 %v4317_v3  ;;  %v3859_v22 = vpack.c.bf16 %v112_v20, %v111_v19  ;;  %v128_v23 = vld [vmem:[%s5849_s1 + $0x128] sm:$0xff]  ;;  %v95_v24 = vld [vmem:[%s5849_s1 + $0x20] sm:$0xff]  ;;  %v113_v26 = vld [vmem:[%s5849_s1 + $0xb0] sm:$0xff] }
   0x7   :  { %3856 = vmatprep.subr.bf16.mxu0 %v3855_v13  ;;  %v96_v25 = vld [vmem:[%s5849_s1 + $0x28] sm:$0xff]  ;;  %v114_v27 = vld [vmem:[%s5849_s1 + $0xb8] sm:$0xff]  ;;  %v3890_v28 = vpack.c.bf16 %v128_v23, %v127_v21  ;;  %v129_v30 = vld [vmem:[%s5849_s1 + $0x130] sm:$0xff] }
   0x8   :  { %v3861_v29 = vpack.c.bf16 %v96_v25, %v95_v24  ;;  %v3863_v31 = vpack.c.bf16 %v114_v27, %v113_v26  ;;  %v130_v32 = vld [vmem:[%s5849_s1 + $0x138] sm:$0xff]  ;;  %v97_v33 = vld [vmem:[%s5849_s1 + $0x30] sm:$0xff]  ;;  %v115_v35 = vld [vmem:[%s5849_s1 + $0xc0] sm:$0xff] }
   0x9   :  { %3888 = vmatpush1.bf16.msra.mxu1 %v3887_v17  ;;  %v98_v34 = vld [vmem:[%s5849_s1 + $0x38] sm:$0xff]  ;;  %v116_v36 = vld [vmem:[%s5849_s1 + $0xc8] sm:$0xff]  ;;  %v3893_v37 = vpack.c.bf16 %v130_v32, %v129_v30  ;;  %v131_v39 = vld [vmem:[%s5849_s1 + $0x140] sm:$0xff] }
   0xa   :  { %3858 = vmatpush3.bf16.msra.mxu0 %v3857_v18  ;;  %3889 = vmatprep.subr.bf16.mxu1 %v4317_v3  ;;  %v3865_v38 = vpack.c.bf16 %v98_v34, %v97_v33  ;;  %v3867_v40 = vpack.c.bf16 %v116_v36, %v115_v35  ;;  %v132_v41 = vld [vmem:[%s5849_s1 + $0x148] sm:$0xff]  ;;  %v99_v42 = vld [vmem:[%s5849_s1 + $0x40] sm:$0xff]  ;;  %v117_v44 = vld [vmem:[%s5849_s1 + $0xd0] sm:$0xff] }
   0xb   :  { %3860 = vmatprep.subr.bf16.mxu0 %v3859_v22  ;;  %v100_v43 = vld [vmem:[%s5849_s1 + $0x48] sm:$0xff]  ;;  %v118_v45 = vld [vmem:[%s5849_s1 + $0xd8] sm:$0xff]  ;;  %v3896_v46 = vpack.c.bf16 %v132_v41, %v131_v39  ;;  %v133_v48 = vld [vmem:[%s5849_s1 + $0x150] sm:$0xff] }
   0xc   :  { %v3869_v47 = vpack.c.bf16 %v100_v43, %v99_v42  ;;  %v134_v49 = vld [vmem:[%s5849_s1 + $0x158] sm:$0xff]  ;;  %v28_v50 = vld [vmem:[%s5848_s0 + $0x8] sm:$0xff]  ;;  %v3871_v51 = vpack.c.bf16 %v118_v45, %v117_v44  ;;  %v101_v52 = vld [vmem:[%s5849_s1 + $0x50] sm:$0xff] }
   0xd   :  { %3891 = vmatpush1.bf16.msra.mxu1 %v3890_v28  ;;  %v102_v53 = vld [vmem:[%s5849_s1 + $0x58] sm:$0xff]  ;;  %v119_v55 = vld [vmem:[%s5849_s1 + $0xe0] sm:$0xff]  ;;  %v120_v56 = vld [vmem:[%s5849_s1 + $0xe8] sm:$0xff]  ;;  %254 = vmatprep.mubr.f32.mxu0 %v28_v50  ;;  %v3899_v57 = vpack.c.bf16 %v134_v49, %v133_v48 }
   0xe   :  { %3862 = vmatpush3.bf16.msra.mxu0 %v3861_v29  ;;  %3892 = vmatprep.subr.bf16.mxu1 %v4317_v3  ;;  %v30_v54 = vld [vmem:[%s5848_s0 + $0x18] sm:$0xff]  ;;  %v3873_v58 = vpack.c.bf16 %v102_v53, %v101_v52  ;;  %v135_v59 = vld [vmem:[%s5849_s1 + $0x160] sm:$0xff]  ;;  %v3875_v60 = vpack.c.bf16 %v120_v56, %v119_v55  ;;  %v136_v61 = vld [vmem:[%s5849_s1 + $0x168] sm:$0xff] }
   0xf   :  { %3864 = vmatprep.subr.bf16.mxu0 %v3863_v31  ;;  %3411 = vmatprep.mubr.msk.f32.mxu1 %vm141_vm0, %v30_v54  ;;  %v103_v62 = vld [vmem:[%s5849_s1 + $0x60] sm:$0xff]  ;;  %v104_v63 = vld [vmem:[%s5849_s1 + $0x68] sm:$0xff]  ;;  %v121_v0 = vld [vmem:[%s5849_s1 + $0xf0] sm:$0xff]  ;;  %v3902_v2 = vpack.c.bf16 %v136_v61, %v135_v59 }
  0x10   :  { %v122_v1 = vld [vmem:[%s5849_s1 + $0xf8] sm:$0xff]  ;;  %v3877_v4 = vpack.c.bf16 %v104_v63, %v103_v62  ;;  %v137_v5 = vld [vmem:[%s5849_s1 + $0x170] sm:$0xff]  ;;  %v139_v12 = vld [vmem:[%s5849_s1 + $0x180] sm:$0xff] }
  0x11   :  { %3894 = vmatpush1.bf16.msra.mxu1 %v3893_v37  ;;  %v3879_v6 = vpack.c.bf16 %v122_v1, %v121_v0  ;;  %v138_v7 = vld [vmem:[%s5849_s1 + $0x178] sm:$0xff]  ;;  %v105_v8 = vld [vmem:[%s5849_s1 + $0x70] sm:$0xff]  ;;  %v140_v13 = vld [vmem:[%s5849_s1 + $0x188] sm:$0xff] }
  0x12   :  { %3866 = vmatpush3.bf16.msra.mxu0 %v3865_v38  ;;  %3895 = vmatprep.subr.bf16.mxu1 %v4317_v3  ;;  %v106_v9 = vld [vmem:[%s5849_s1 + $0x78] sm:$0xff]  ;;  %v3905_v10 = vpack.c.bf16 %v138_v7, %v137_v5  ;;  %v27_v14 = vld [vmem:[%s5848_s0] sm:$0xff]  ;;  %v3908_v15 = vpack.c.bf16 %v140_v13, %v139_v12  ;;  %v32_v16 = vld [vmem:[%s5848_s0 + $0x28] sm:$0xff] }
  0x13   :  { %3868 = vmatprep.subr.bf16.mxu0 %v3867_v40  ;;  %v3881_v11 = vpack.c.bf16 %v106_v9, %v105_v8  ;;  %v29_v17 = vld [vmem:[%s5848_s0 + $0x10] sm:$0xff]  ;;  %v31_v18 = vld [vmem:[%s5848_s0 + $0x20] sm:$0xff]  ;;  %v34_v19 = vld [vmem:[%s5848_s0 + $0x38] sm:$0xff] }
  0x14   :  { %v3429_v20 = vld [vmem:[%s5851_s3 + $0x88] sm:$0xff] }
  0x15   :  { %3897 = vmatpush1.bf16.msra.mxu1 %v3896_v46  ;;  %v3433_v21 = vld [vmem:[%s5851_s3 + $0xa8] sm:$0xff] }
  0x16   :  { %3870 = vmatpush3.bf16.msra.mxu0 %v3869_v47  ;;  %3898 = vmatprep.subr.bf16.mxu1 %v4317_v3 }
  0x17   :  { %3872 = vmatprep.subr.bf16.mxu0 %v3871_v51 }
  0x19   :  { %3900 = vmatpush1.bf16.msra.mxu1 %v3899_v57 }
  0x1a   :  { %3874 = vmatpush3.bf16.msra.mxu0 %v3873_v58  ;;  %3901 = vmatprep.subr.bf16.mxu1 %v4317_v3 }
  0x1b   :  { %3876 = vmatprep.subr.bf16.mxu0 %v3875_v60 }
  0x1d   :  { %3903 = vmatpush1.bf16.msra.mxu1 %v3902_v2 }
  0x1e   :  { %3878 = vmatpush3.bf16.msra.mxu0 %v3877_v4  ;;  %3904 = vmatprep.subr.bf16.mxu1 %v4317_v3 }
  0x1f   :  { %3880 = vmatprep.subr.bf16.mxu0 %v3879_v6 }
  0x21   :  { %3906 = vmatpush1.bf16.msra.mxu1 %v3905_v10 }
  0x22   :  { %3882 = vmatpush3.bf16.msra.mxu0 %v3881_v11  ;;  %3907 = vmatprep.subr.bf16.mxu1 %v4317_v3  ;;  %v36_v3 = vld [vmem:[%s5848_s0 + $0x48] sm:$0xff] }
  0x25   :  { %255 = vmatmul.mubr.f32.vlgmr.msra.gmra.mrb[0].mxu0 %v27_v14  ;;  %3909 = vmatpush1.bf16.msra.mxu1 %v3908_v15 }
  0x26   :  { %259 = vmatprep.mubr.f32.mxu0 %v32_v16 }
  0x27   :  { %12 = vsyncpa [#allocation3], 0  ;;  %v3910_v22 = vpack.c.bf16 %v3433_v21, %v3429_v20  ;;  %v33_v23 = vld [vmem:[%s5848_s0 + $0x30] sm:$0xff]  ;;  %v35_v24 = vld [vmem:[%s5848_s0 + $0x40] sm:$0xff]  ;;  %vm542_vm1 = vcmask 261120   ;;  %s4319_s8 = smov [#allocation2]  }
  0x28   :  { %400 = vmatmul.mubr.f32.vlgmr.msra.gmra.mrb[0].mxu1 %v29_v17  ;;  %v38_v25 = vld [vmem:[%s5848_s0 + $0x58] sm:$0xff]  ;;  %v40_v26 = vld [vmem:[%s5848_s0 + $0x68] sm:$0xff]  ;;  %v37_v27 = vld [vmem:[%s5848_s0 + $0x50] sm:$0xff]  ;;  %s3403_s9 = sshll.u32 %s4319_s8, 4  ;;  %s3404_s9 = int_to_ptr.vmem [resolvable:$true] %s3403_s9 }
  0x29   :  { %260 = vmatmul.mubr.f32.gmra.mrb[2].mxu0 %v31_v18  ;;  %3412 = vmatprep.mubr.msk.f32.mxu1 %vm141_vm0, %v34_v19  ;;  %v39_v28 = vld [vmem:[%s5848_s0 + $0x60] sm:$0xff]  ;;  %v42_v29 = vld [vmem:[%s5848_s0 + $0x78] sm:$0xff]  ;;  %v44_v30 = vld [vmem:[%s5848_s0 + $0x88] sm:$0xff]  ;;  %s4293_s10 = scalar_lea.vmem %s3404_s9, 32  ;;  %p4298_p1 = scmp.lt.s32.totalorder %s3404_s9, %s3404_s9 }
  0x2a   :  { %264 = vmatprep.mubr.f32.mxu0 %v36_v3  ;;  %3911 = vmatprep.subr.bf16.mxu0 %v3910_v22  ;;  %v41_v31 = vld [vmem:[%s5848_s0 + $0x70] sm:$0xff]  ;;  %v43_v32 = vld [vmem:[%s5848_s0 + $0x80] sm:$0xff]  ;;  %v46_v33 = vld [vmem:[%s5848_s0 + $0x98] sm:$0xff]  ;;  %p4294_p0 = scmp.ne.s32.totalorder %s3404_s9, %s4293_s10  ;;  %p4299_p2 = scmp.lt.s32.totalorder %s4293_s10, %s4293_s10 }
  0x2b   :  { %v48_v34 = vld [vmem:[%s5848_s0 + $0xa8] sm:$0xff]  ;;  %v45_v35 = vld [vmem:[%s5848_s0 + $0x90] sm:$0xff]  ;;  %v47_v36 = vld [vmem:[%s5848_s0 + $0xa0] sm:$0xff] }
  0x2c   :  { %405 = vmatmul.mubr.f32.gmra.mrb[2].mxu1 %v33_v23  ;;  %v50_v37 = vld [vmem:[%s5848_s0 + $0xb8] sm:$0xff]  ;;  %v52_v38 = vld [vmem:[%s5848_s0 + $0xc8] sm:$0xff]  ;;  %v49_v39 = vld [vmem:[%s5848_s0 + $0xb0] sm:$0xff]  ;;  %p4300_p3 = por %p4299_p2, %p4298_p1 }
  0x2d   :  { %265 = vmatmul.mubr.f32.gmra.mrb[4].mxu0 %v35_v24  ;;  %3413 = vmatprep.mubr.msk.f32.mxu1 %vm141_vm0, %v38_v25  ;;  %v51_v40 = vld [vmem:[%s5848_s0 + $0xc0] sm:$0xff]  ;;  %v54_v41 = vld [vmem:[%s5848_s0 + $0xd8] sm:$0xff]  ;;  %v56_v42 = vld [vmem:[%s5848_s0 + $0xe8] sm:$0xff] }
  0x2e   :  { %269 = vmatprep.mubr.f32.mxu0 %v40_v26  ;;  %v53_v43 = vld [vmem:[%s5848_s0 + $0xd0] sm:$0xff]  ;;  %v55_v44 = vld [vmem:[%s5848_s0 + $0xe0] sm:$0xff]  ;;  %v58_v45 = vld [vmem:[%s5848_s0 + $0xf8] sm:$0xff]  ;;  %p4301_p4 = pnand %p4300_p3, %p4294_p0 }
  0x2f   :  { %v60_v46 = vld [vmem:[%s5848_s0 + $0x108] sm:$0xff]  ;;  %v57_v47 = vld [vmem:[%s5848_s0 + $0xf0] sm:$0xff]  ;;  %v59_v48 = vld [vmem:[%s5848_s0 + $0x100] sm:$0xff] }
  0x30   :  { %410 = vmatmul.mubr.f32.gmra.mrb[4].mxu1 %v37_v27  ;;  %v62_v49 = vld [vmem:[%s5848_s0 + $0x118] sm:$0xff]  ;;  %v64_v50 = vld [vmem:[%s5848_s0 + $0x128] sm:$0xff]  ;;  %v61_v51 = vld [vmem:[%s5848_s0 + $0x110] sm:$0xff] }
  0x31   :  { %270 = vmatmul.mubr.f32.gmra.mrb[6].mxu0 %v39_v28  ;;  %3414 = vmatprep.mubr.msk.f32.mxu1 %vm141_vm0, %v42_v29  ;;  %v63_v52 = vld [vmem:[%s5848_s0 + $0x120] sm:$0xff]  ;;  %v66_v53 = vld [vmem:[%s5848_s0 + $0x138] sm:$0xff]  ;;  %v68_v54 = vld [vmem:[%s5848_s0 + $0x148] sm:$0xff] }
  0x32   :  { %274 = vmatprep.mubr.f32.mxu0 %v44_v30  ;;  %v65_v55 = vld [vmem:[%s5848_s0 + $0x130] sm:$0xff]  ;;  %v67_v56 = vld [vmem:[%s5848_s0 + $0x140] sm:$0xff]  ;;  %v70_v57 = vld [vmem:[%s5848_s0 + $0x158] sm:$0xff] }
  0x33   :  { %v72_v58 = vld [vmem:[%s5848_s0 + $0x168] sm:$0xff]  ;;  %v69_v59 = vld [vmem:[%s5848_s0 + $0x150] sm:$0xff]  ;;  %v71_v60 = vld [vmem:[%s5848_s0 + $0x160] sm:$0xff] }
  0x34   :  { %415 = vmatmul.mubr.f32.gmra.mrb[6].mxu1 %v41_v31  ;;  %v74_v61 = vld [vmem:[%s5848_s0 + $0x178] sm:$0xff]  ;;  %v76_v62 = vld [vmem:[%s5848_s0 + $0x188] sm:$0xff]  ;;  %v73_v63 = vld [vmem:[%s5848_s0 + $0x170] sm:$0xff] }
  0x35   :  { %275 = vmatmul.mubr.f32.gmra.mrb[8].mxu0 %v43_v32  ;;  %3415 = vmatprep.mubr.msk.f32.mxu1 %vm141_vm0, %v46_v33  ;;  %v75_v0 = vld [vmem:[%s5848_s0 + $0x180] sm:$0xff]  ;;  %v78_v1 = vld [vmem:[%s5848_s0 + $0x198] sm:$0xff]  ;;  %v80_v2 = vld [vmem:[%s5848_s0 + $0x1a8] sm:$0xff] }
  0x36   :  { %279 = vmatprep.mubr.f32.mxu0 %v48_v34  ;;  %v77_v4 = vld [vmem:[%s5848_s0 + $0x190] sm:$0xff]  ;;  %v79_v5 = vld [vmem:[%s5848_s0 + $0x1a0] sm:$0xff]  ;;  %v82_v6 = vld [vmem:[%s5848_s0 + $0x1b8] sm:$0xff] }
  0x37   :  { %v84_v7 = vld [vmem:[%s5848_s0 + $0x1c8] sm:$0xff]  ;;  %v81_v8 = vld [vmem:[%s5848_s0 + $0x1b0] sm:$0xff]  ;;  %v83_v9 = vld [vmem:[%s5848_s0 + $0x1c0] sm:$0xff] }
  0x38   :  { %420 = vmatmul.mubr.f32.gmra.mrb[8].mxu1 %v45_v35  ;;  %v86_v10 = vld [vmem:[%s5848_s0 + $0x1d8] sm:$0xff]  ;;  %v88_v11 = vld [vmem:[%s5848_s0 + $0x1e8] sm:$0xff]  ;;  %v85_v12 = vld [vmem:[%s5848_s0 + $0x1d0] sm:$0xff] }
  0x39   :  { %280 = vmatmul.mubr.f32.gmra.mrb[10].mxu0 %v47_v36  ;;  %3416 = vmatprep.mubr.msk.f32.mxu1 %vm141_vm0, %v50_v37  ;;  %v87_v13 = vld [vmem:[%s5848_s0 + $0x1e0] sm:$0xff]  ;;  %v90_v14 = vld [vmem:[%s5848_s0 + $0x1f8] sm:$0xff]  ;;  %v89_v15 = vld [vmem:[%s5848_s0 + $0x1f0] sm:$0xff] }
  0x3a   :  { %284 = vmatprep.mubr.f32.mxu0 %v52_v38  ;;  %v3428_v16 = vld [vmem:[%s5851_s3 + $0x80] sm:$0xff]  ;;  %v3431_v19 = vld [vmem:[%s5851_s3 + $0x98] sm:$0xff]  ;;  %v3430_v20 = vld [vmem:[%s5851_s3 + $0x90] sm:$0xff] }
  0x3b   :  { %v3432_v17 = vld [vmem:[%s5851_s3 + $0xa0] sm:$0xff]  ;;  %v3435_v3 = vld [vmem:[%s5851_s3 + $0xb8] sm:$0xff]  ;;  %v3434_v22 = vld [vmem:[%s5851_s3 + $0xb0] sm:$0xff] }
  0x3c   :  { %425 = vmatmul.mubr.f32.gmra.mrb[10].mxu1 %v49_v39  ;;  %v3912_v18 = vpack.c.bf16 %v3432_v17, %v3428_v16  ;;  %v3918_v21 = vpack.c.bf16 %v3435_v3, %v3431_v19  ;;  %v3920_v23 = vpack.c.bf16 %v3434_v22, %v3430_v20  ;;  %v3437_v24 = vld [vmem:[%s5851_s3 + $0xc8] sm:$0xff]  ;;  %v3436_v26 = vld [vmem:[%s5851_s3 + $0xc0] sm:$0xff]  ;;  %v3439_v29 = vld [vmem:[%s5851_s3 + $0xd8] sm:$0xff] }
  0x3d   :  { %285 = vmatmul.mubr.f32.gmra.mrb[12].mxu0 %v51_v40  ;;  %3417 = vmatprep.mubr.msk.f32.mxu1 %vm141_vm0, %v54_v41  ;;  %v3441_v25 = vld [vmem:[%s5851_s3 + $0xe8] sm:$0xff]  ;;  %v3440_v28 = vld [vmem:[%s5851_s3 + $0xe0] sm:$0xff]  ;;  %v3443_v30 = vld [vmem:[%s5851_s3 + $0xf8] sm:$0xff]  ;;  %v4318_v41 = vmov 0.0  }
  0x3e   :  { %289 = vmatprep.mubr.f32.mxu0 %v56_v42  ;;  %3913 = vmatpush1.bf16.msra.mxu0 %v3912_v18  ;;  %v3914_v27 = vpack.c.bf16 %v3441_v25, %v3437_v24  ;;  %v3916_v31 = vpack.c.bf16 %v3440_v28, %v3436_v26  ;;  %v3922_v32 = vpack.c.bf16 %v3443_v30, %v3439_v29  ;;  %v3438_v33 = vld [vmem:[%s5851_s3 + $0xd0] sm:$0xff]  ;;  %v508_v36 = vld [vmem:[%s5851_s3 + $0x8] sm:$0xff]  ;;  %v510_v38 = vld [vmem:[%s5851_s3 + $0x18] sm:$0xff] }
  0x3f   :  { %3919 = vmatprep.subr.bf16.mxu1 %v3918_v21  ;;  %v3442_v34 = vld [vmem:[%s5851_s3 + $0xf0] sm:$0xff]  ;;  %v512_v37 = vld [vmem:[%s5851_s3 + $0x28] sm:$0xff]  ;;  %v514_v40 = vld [vmem:[%s5851_s3 + $0x38] sm:$0xff] }
  0x40   :  { %430 = vmatmul.mubr.f32.gmra.mrb[12].mxu1 %v53_v43  ;;  %3915 = vmatprep.subr.bf16.mxu0 %v3914_v27  ;;  %v3924_v35 = vpack.c.bf16 %v3442_v34, %v3438_v33  ;;  %v3926_v39 = vpack.c.bf16 %v512_v37, %v508_v36  ;;  %v3934_v42 = vpack.c.bf16 %v514_v40, %v510_v38 }
  0x41   :  { %290 = vmatmul.mubr.f32.gmra.mrb[14].mxu0 %v55_v44  ;;  %3418 = vmatprep.mubr.msk.f32.mxu1 %vm141_vm0, %v58_v45 }
  0x42   :  { %294 = vmatprep.mubr.f32.mxu0 %v60_v46  ;;  %3921 = vmatpush1.bf16.msra.mxu1 %v3920_v23 }
  0x43   :  { %3917 = vmatpush1.bf16.msra.mxu0 %v3916_v31  ;;  %3923 = vmatprep.subr.bf16.mxu1 %v3922_v32 }
  0x44   :  { %435 = vmatmul.mubr.f32.gmra.mrb[14].mxu1 %v57_v47  ;;  %3927 = vmatprep.subr.bf16.mxu0 %v3926_v39 }
  0x45   :  { %295 = vmatmul.mubr.f32.gmra.mrb[16].mxu0 %v59_v48  ;;  %3419 = vmatprep.mubr.msk.f32.mxu1 %vm141_vm0, %v62_v49 }
  0x46   :  { %299 = vmatprep.mubr.f32.mxu0 %v64_v50  ;;  %3925 = vmatpush1.bf16.msra.mxu1 %v3924_v35 }
  0x47   :  { %3935 = vmatprep.subr.bf16.mxu1 %v3934_v42 }
  0x48   :  { %440 = vmatmul.mubr.f32.gmra.mrb[16].mxu1 %v61_v51 }
  0x49   :  { %300 = vmatmul.mubr.f32.gmra.mrb[18].mxu0 %v63_v52  ;;  %3420 = vmatprep.mubr.msk.f32.mxu1 %vm141_vm0, %v66_v53 }
  0x4a   :  { %304 = vmatprep.mubr.f32.mxu0 %v68_v54 }
  0x4c   :  { %445 = vmatmul.mubr.f32.gmra.mrb[18].mxu1 %v65_v55 }
  0x4d   :  { %305 = vmatmul.mubr.f32.gmra.mrb[20].mxu0 %v67_v56  ;;  %3421 = vmatprep.mubr.msk.f32.mxu1 %vm141_vm0, %v70_v57 }
  0x4e   :  { %309 = vmatprep.mubr.f32.mxu0 %v72_v58 }
  0x50   :  { %450 = vmatmul.mubr.f32.gmra.mrb[20].mxu1 %v69_v59 }
  0x51   :  { %310 = vmatmul.mubr.f32.gmra.mrb[22].mxu0 %v71_v60  ;;  %3422 = vmatprep.mubr.msk.f32.mxu1 %vm141_vm0, %v74_v61 }
  0x52   :  { %314 = vmatprep.mubr.f32.mxu0 %v76_v62 }
  0x54   :  { %455 = vmatmul.mubr.f32.gmra.mrb[22].mxu1 %v73_v63 }
  0x55   :  { %315 = vmatmul.mubr.f32.gmra.mrb[24].mxu0 %v75_v0  ;;  %3423 = vmatprep.mubr.msk.f32.mxu1 %vm141_vm0, %v78_v1 }
  0x56   :  { %319 = vmatprep.mubr.f32.mxu0 %v80_v2 }
  0x58   :  { %460 = vmatmul.mubr.f32.gmra.mrb[24].mxu1 %v77_v4 }
  0x59   :  { %320 = vmatmul.mubr.f32.gmra.mrb[26].mxu0 %v79_v5  ;;  %3424 = vmatprep.mubr.msk.f32.mxu1 %vm141_vm0, %v82_v6 }
  0x5a   :  { %324 = vmatprep.mubr.f32.mxu0 %v84_v7 }
  0x5c   :  { %465 = vmatmul.mubr.f32.gmra.mrb[26].mxu1 %v81_v8 }
  0x5d   :  { %325 = vmatmul.mubr.f32.gmra.mrb[28].mxu0 %v83_v9  ;;  %3425 = vmatprep.mubr.msk.f32.mxu1 %vm141_vm0, %v86_v10 }
  0x5e   :  { %329 = vmatprep.mubr.f32.mxu0 %v88_v11 }
  0x60   :  { %470 = vmatmul.mubr.f32.gmra.mrb[28].mxu1 %v85_v12 }
  0x61   :  { %330 = vmatmul.mubr.f32.gmra.mrb[30].mxu0 %v87_v13  ;;  %3426 = vmatprep.mubr.msk.f32.mxu1 %vm141_vm0, %v90_v14 }
  0x62   :  { %609 = vmatprep.mubr.f32.mxu0 %v4318_v41 }
  0x64   :  { %475 = vmatmul.mubr.f32.gmra.mrb[30].mxu1 %v89_v15 }
  0x65   :  { %680 = vmatprep.mubr.f32.mxu1 %v4318_v41 }
  0xf8   :  { %v3733_v43 = vpop.f32.mrb[0].mxu0 }
  0xf9   :  { %v3734_v44 = vpop.f32.mrb[1].mxu0 }
  0xfa   :  { %v3735_v45 = vadd.f32 %v3734_v44, %v3733_v43 }
  0xfb   :  { %v401_v46 = vpop.f32.mrb[0].mxu1 }
  0xfc   :  { %v3736_v47 = vpop.f32.mrb[2].mxu0  ;;  %v4789_v48 = vadd.f32 %v3735_v45, %v401_v46  ;;  %v403_v49 = vpop.f32.mrb[1].mxu1 }
  0xfd   :  { %v3737_v50 = vpop.f32.mrb[3].mxu0 }
  0xfe   :  { %v3738_v51 = vadd.f32 %v3737_v50, %v3736_v47 }
  0xff   :  { %v406_v52 = vpop.f32.mrb[2].mxu1 }
 0x100   :  { %v3739_v53 = vpop.f32.mrb[4].mxu0  ;;  %v4791_v54 = vadd.f32 %v3738_v51, %v406_v52  ;;  %v408_v55 = vpop.f32.mrb[3].mxu1 }
 0x101   :  { %v3740_v56 = vpop.f32.mrb[5].mxu0 }
 0x102   :  { %v3741_v57 = vadd.f32 %v3740_v56, %v3739_v53 }
 0x103   :  { %v411_v58 = vpop.f32.mrb[4].mxu1 }
 0x104   :  { %v3742_v59 = vpop.f32.mrb[6].mxu0  ;;  %v4793_v60 = vadd.f32 %v3741_v57, %v411_v58  ;;  %v413_v61 = vpop.f32.mrb[5].mxu1 }
 0x105   :  { %v3743_v62 = vpop.f32.mrb[7].mxu0 }
 0x106   :  { %v3744_v63 = vadd.f32 %v3743_v62, %v3742_v59 }
 0x107   :  { %v416_v0 = vpop.f32.mrb[6].mxu1 }
 0x108   :  { %v3745_v1 = vpop.f32.mrb[8].mxu0  ;;  %v4795_v2 = vadd.f32 %v3744_v63, %v416_v0  ;;  %v418_v4 = vpop.f32.mrb[7].mxu1 }
 0x109   :  { %v3746_v5 = vpop.f32.mrb[9].mxu0 }
 0x10a   :  { %v3747_v6 = vadd.f32 %v3746_v5, %v3745_v1 }
 0x10b   :  { %v421_v7 = vpop.f32.mrb[8].mxu1 }
 0x10c   :  { %v3748_v8 = vpop.f32.mrb[10].mxu0  ;;  %v422_v9 = vadd.f32 %v3747_v6, %v421_v7  ;;  %v423_v10 = vpop.f32.mrb[9].mxu1  ;;  %v4815_v6 = vld [vmem:[%s5850_s2] ss:$0 sm:$0xff] }
 0x10d   :  { %v3749_v11 = vpop.f32.mrb[11].mxu0 }
 0x10e   :  { %v3750_v12 = vadd.f32 %v3749_v11, %v3748_v8  ;;  %v480_v13 = vmax.f32 %v4789_v48, %v422_v9 }
 0x10f   :  { %v426_v14 = vpop.f32.mrb[10].mxu1 }
 0x110   :  { %v3751_v15 = vpop.f32.mrb[12].mxu0  ;;  %v4798_v16 = vadd.f32 %v3750_v12, %v426_v14  ;;  %v428_v17 = vpop.f32.mrb[11].mxu1 }
 0x111   :  { %v3752_v18 = vpop.f32.mrb[13].mxu0  ;;  %v511_v17 = vld [vmem:[%s5851_s3 + $0x20] sm:$0xff] }
 0x112   :  { %v3753_v19 = vadd.f32 %v3752_v18, %v3751_v15  ;;  %v481_v3 = vmax.f32 %v4791_v54, %v4798_v16  ;;  %v507_v15 = vld [vmem:[%s5851_s3] sm:$0xff]  ;;  %v517_v54 = vld [vmem:[%s5851_s3 + $0x50] sm:$0xff] }
 0x113   :  { %v431_v20 = vpop.f32.mrb[12].mxu1 }
 0x114   :  { %v3754_v21 = vpop.f32.mrb[14].mxu0  ;;  %v4802_v22 = vadd.f32 %v3753_v19, %v431_v20  ;;  %v433_v23 = vpop.f32.mrb[13].mxu1  ;;  %v509_v20 = vld [vmem:[%s5851_s3 + $0x10] sm:$0xff] }
 0x115   :  { %v3755_v24 = vpop.f32.mrb[15].mxu0 }
 0x116   :  { %v3756_v25 = vadd.f32 %v3755_v24, %v3754_v21  ;;  %v482_v26 = vmax.f32 %v4793_v60, %v4802_v22  ;;  %v516_v21 = vld [vmem:[%s5851_s3 + $0x48] sm:$0xff]  ;;  %v3452_v60 = vld [vmem:[%s5851_s3 + $0x120] sm:$0xff] }
 0x117   :  { %v436_v27 = vpop.f32.mrb[14].mxu1 }
 0x118   :  { %v3757_v28 = vpop.f32.mrb[16].mxu0  ;;  %v4806_v29 = vadd.f32 %v3756_v25, %v436_v27  ;;  %v438_v30 = vpop.f32.mrb[15].mxu1  ;;  %v520_v25 = vld [vmem:[%s5851_s3 + $0x68] sm:$0xff]  ;;  %v518_v27 = vld [vmem:[%s5851_s3 + $0x58] sm:$0xff] }
 0x119   :  { %v3758_v31 = vpop.f32.mrb[17].mxu0 }
 0x11a   :  { %v3759_v32 = vadd.f32 %v3758_v31, %v3757_v28  ;;  %v483_v33 = vmax.f32 %v4795_v2, %v4806_v29  ;;  %v522_v28 = vld [vmem:[%s5851_s3 + $0x78] sm:$0xff]  ;;  %v3458_v29 = vld [vmem:[%s5851_s3 + $0x150] sm:$0xff] }
 0x11b   :  { %v441_v34 = vpop.f32.mrb[16].mxu1 }
 0x11c   :  { %v3760_v35 = vpop.f32.mrb[18].mxu0  ;;  %v442_v36 = vadd.f32 %v3759_v32, %v441_v34  ;;  %v443_v37 = vpop.f32.mrb[17].mxu1 }
 0x11d   :  { %v3761_v38 = vpop.f32.mrb[19].mxu0  ;;  %v3928_v37 = vpack.c.bf16 %v511_v17, %v507_v15  ;;  %v3469_v15 = vld [vmem:[%s5851_s3 + $0x198] sm:$0xff] }
 0x11e   :  { %v3762_v39 = vadd.f32 %v3761_v38, %v3760_v35  ;;  %v3473_v17 = vld [vmem:[%s5851_s3 + $0x1b8] sm:$0xff] }
 0x11f   :  { %v446_v40 = vpop.f32.mrb[18].mxu1 }
 0x120   :  { %v3763_v42 = vpop.f32.mrb[20].mxu0  ;;  %v447_v43 = vadd.f32 %v3762_v39, %v446_v40  ;;  %v448_v44 = vpop.f32.mrb[19].mxu1  ;;  %v515_v39 = vld [vmem:[%s5851_s3 + $0x40] sm:$0xff] }
 0x121   :  { %v3764_v45 = vpop.f32.mrb[21].mxu0  ;;  %v519_v40 = vld [vmem:[%s5851_s3 + $0x60] sm:$0xff]  ;;  %v521_v44 = vld [vmem:[%s5851_s3 + $0x70] sm:$0xff] }
 0x122   :  { %v3765_v46 = vadd.f32 %v3764_v45, %v3763_v42  ;;  %v3930_v42 = vpack.c.bf16 %v520_v25, %v516_v21  ;;  %v3449_v45 = vld [vmem:[%s5851_s3 + $0x108] sm:$0xff]  ;;  %v3472_v25 = vld [vmem:[%s5851_s3 + $0x1b0] sm:$0xff] }
 0x123   :  { %v451_v47 = vpop.f32.mrb[20].mxu1 }
 0x124   :  { %v3766_v48 = vpop.f32.mrb[22].mxu0  ;;  %v452_v49 = vadd.f32 %v3765_v46, %v451_v47  ;;  %v453_v50 = vpop.f32.mrb[21].mxu1  ;;  %v3453_v46 = vld [vmem:[%s5851_s3 + $0x128] sm:$0xff] }
 0x125   :  { %v3767_v51 = vpop.f32.mrb[23].mxu0 }
 0x126   :  { %v3768_v52 = vadd.f32 %v3767_v51, %v3766_v48  ;;  %v3451_v48 = vld [vmem:[%s5851_s3 + $0x118] sm:$0xff] }
 0x127   :  { %v456_v53 = vpop.f32.mrb[22].mxu1 }
 0x128   :  { %v3769_v55 = vpop.f32.mrb[24].mxu0  ;;  %v4810_v56 = vadd.f32 %v3768_v52, %v456_v53  ;;  %v458_v57 = vpop.f32.mrb[23].mxu1  ;;  %v3932_v53 = vpack.c.bf16 %v519_v40, %v515_v39 }
 0x129   :  { %v3770_v58 = vpop.f32.mrb[25].mxu0  ;;  %v3942_v57 = vpack.c.bf16 %v3453_v46, %v3449_v45  ;;  %v3491_v45 = vld [vmem:[%s5851_s3 + $0x238] sm:$0xff] }
 0x12a   :  { %v3771_v59 = vadd.f32 %v3770_v58, %v3769_v55  ;;  %v3940_v55 = vpack.c.bf16 %v521_v44, %v517_v54  ;;  %v3448_v58 = vld [vmem:[%s5851_s3 + $0x100] sm:$0xff]  ;;  %v3487_v44 = vld [vmem:[%s5851_s3 + $0x218] sm:$0xff] }
 0x12b   :  { %v461_v61 = vpop.f32.mrb[24].mxu1 }
 0x12c   :  { %v3772_v62 = vpop.f32.mrb[26].mxu0  ;;  %v462_v63 = vadd.f32 %v3771_v59, %v461_v61  ;;  %v463_v0 = vpop.f32.mrb[25].mxu1  ;;  %v3450_v61 = vld [vmem:[%s5851_s3 + $0x110] sm:$0xff] }
 0x12d   :  { %v3773_v1 = vpop.f32.mrb[27].mxu0  ;;  %v3459_v0 = vld [vmem:[%s5851_s3 + $0x158] sm:$0xff] }
 0x12e   :  { %v3774_v4 = vadd.f32 %v3773_v1, %v3772_v62  ;;  %v484_v5 = vmax.f32 %v442_v36, %v462_v63  ;;  %v3454_v62 = vld [vmem:[%s5851_s3 + $0x130] sm:$0xff]  ;;  %v3457_v63 = vld [vmem:[%s5851_s3 + $0x148] sm:$0xff]  ;;  %v3463_v1 = vld [vmem:[%s5851_s3 + $0x178] sm:$0xff] }
 0x12f   :  { %v466_v7 = vpop.f32.mrb[26].mxu1  ;;  %v3954_v2 = vpack.c.bf16 %v3463_v1, %v3459_v0  ;;  %v3494_v1 = vld [vmem:[%s5851_s3 + $0x250] sm:$0xff] }
 0x130   :  { %v3775_v8 = vpop.f32.mrb[28].mxu0  ;;  %v488_v9 = vmax.f32 %v480_v13, %v484_v5  ;;  %v467_v10 = vadd.f32 %v3774_v4, %v466_v7  ;;  %v468_v12 = vpop.f32.mrb[27].mxu1  ;;  %v513_v13 = vld [vmem:[%s5851_s3 + $0x30] sm:$0xff]  ;;  %v3944_v5 = vpack.c.bf16 %v3452_v60, %v3448_v58  ;;  %v3952_v7 = vpack.c.bf16 %v3454_v62, %v3450_v61  ;;  %v3495_v58 = vld [vmem:[%s5851_s3 + $0x258] sm:$0xff]  ;;  %v3492_v61 = vld [vmem:[%s5851_s3 + $0x240] sm:$0xff] }
 0x131   :  { %v3776_v11 = vpop.f32.mrb[29].mxu0  ;;  %v3936_v38 = vpack.c.bf16 %v513_v13, %v509_v20  ;;  %v3467_v12 = vld [vmem:[%s5851_s3 + $0x188] sm:$0xff]  ;;  %v3466_v20 = vld [vmem:[%s5851_s3 + $0x180] sm:$0xff]  ;;  %v3499_v60 = vld [vmem:[%s5851_s3 + $0x278] sm:$0xff] }
 0x132   :  { %v3777_v14 = vadd.f32 %v3776_v11, %v3775_v8  ;;  %v499_v18 = vadd.f32 %v4815_v6, %v488_v9  ;;  %v485_v19 = vmax.f32 %v447_v43, %v467_v10  ;;  %v3938_v43 = vpack.c.bf16 %v522_v28, %v518_v27  ;;  %v3456_v8 = vld [vmem:[%s5851_s3 + $0x140] sm:$0xff]  ;;  %v3475_v27 = vld [vmem:[%s5851_s3 + $0x1c8] sm:$0xff] }
 0x133   :  { %v471_v23 = vpop.f32.mrb[28].mxu1  ;;  %v3460_v9 = vld [vmem:[%s5851_s3 + $0x160] sm:$0xff]  ;;  %v3479_v28 = vld [vmem:[%s5851_s3 + $0x1e8] sm:$0xff]  ;;  %v3986_v0 = vpack.c.bf16 %v3499_v60, %v3495_v58  ;;  %v3534_v58 = vld [vmem:[%s5851_s3 + $0x370] sm:$0xff] }
 0x134   :  { %v3778_v24 = vpop.f32.mrb[30].mxu0  ;;  %v4842_v30 = vmax.f32 %v499_v18, 0.0  ;;  %v4847_v31 = vmax.f32 %v481_v3, %v485_v19  ;;  %v472_v32 = vadd.f32 %v3777_v14, %v471_v23  ;;  %v473_v35 = vpop.f32.mrb[29].mxu1  ;;  %v3471_v14 = vld [vmem:[%s5851_s3 + $0x1a8] sm:$0xff]  ;;  %v3948_v18 = vpack.c.bf16 %v3460_v9, %v3456_v8  ;;  %v3470_v13 = vld [vmem:[%s5851_s3 + $0x1a0] sm:$0xff]  ;;  %v3509_v8 = vld [vmem:[%s5851_s3 + $0x2b8] sm:$0xff] }
 0x135   :  { %v3779_v34 = vpop.f32.mrb[31].mxu0  ;;  %v3958_v21 = vpack.c.bf16 %v3471_v14, %v3467_v12  ;;  %v3966_v23 = vpack.c.bf16 %v3473_v17, %v3469_v15  ;;  %v3960_v35 = vpack.c.bf16 %v3470_v13, %v3466_v20  ;;  %v3962_v40 = vpack.c.bf16 %v3479_v28, %v3475_v27  ;;  %v3496_v62 = vld [vmem:[%s5851_s3 + $0x260] sm:$0xff]  ;;  %v3504_v15 = vld [vmem:[%s5851_s3 + $0x290] sm:$0xff]  ;;  %v3539_v60 = vld [vmem:[%s5851_s3 + $0x388] sm:$0xff] }
 0x136   :  { %v3780_v36 = vadd.f32 %v3779_v34, %v3778_v24  ;;  %v486_v16 = vmax.f32 %v452_v49, %v472_v32  ;;  %v541_v3 = vrot.slane %v4842_v30, 2  ;;  %v3455_v49 = vld [vmem:[%s5851_s3 + $0x138] sm:$0xff]  ;;  %v3468_v24 = vld [vmem:[%s5851_s3 + $0x190] sm:$0xff]  ;;  %v848_v39 = vrot.slane %v4842_v30, 4 }
 0x137   :  { %v476_v47 = vpop.f32.mrb[30].mxu1  ;;  %v3950_v59 = vpack.c.bf16 %v3455_v49, %v3451_v48  ;;  %v3477_v32 = vld [vmem:[%s5851_s3 + $0x1d8] sm:$0xff]  ;;  %v3484_v48 = vld [vmem:[%s5851_s3 + $0x200] sm:$0xff]  ;;  %v3980_v9 = vpack.c.bf16 %v3496_v62, %v3492_v61  ;;  %v3508_v17 = vld [vmem:[%s5851_s3 + $0x2b0] sm:$0xff] }
 0x138   :  { %v490_v50 = vmax.f32 %v482_v26, %v486_v16  ;;  %v477_v51 = vadd.f32 %v3780_v36, %v476_v47  ;;  %3444 = vmatmul.mubr.msk.f32.vlgmr.msra.gmra.mrb[32].mxu0 %vm542_vm1, %v541_v3  ;;  %3445 = vmatmul.mubr.msk.f32.vlgmr.msra.gmra.mrb[32].mxu1 %vm542_vm1, %v541_v3  ;;  %v478_v52 = vpop.f32.mrb[31].mxu1  ;;  %v3481_v34 = vld [vmem:[%s5851_s3 + $0x1f8] sm:$0xff]  ;;  %v3968_v36 = vpack.c.bf16 %v3472_v25, %v3468_v24  ;;  %v3476_v16 = vld [vmem:[%s5851_s3 + $0x1d0] sm:$0xff]  ;;  %v3488_v49 = vld [vmem:[%s5851_s3 + $0x220] sm:$0xff] }
 0x139   :  { %3929 = vmatpush1.bf16.msra.mxu0 %v3928_v37  ;;  %3937 = vmatpush1.bf16.msra.mxu1 %v3936_v38  ;;  %v3474_v37 = vld [vmem:[%s5851_s3 + $0x1c0] sm:$0xff]  ;;  %v3970_v54 = vpack.c.bf16 %v3481_v34, %v3477_v32  ;;  %v3480_v3 = vld [vmem:[%s5851_s3 + $0x1f0] sm:$0xff]  ;;  %v4000_v13 = vpack.c.bf16 %v3508_v17, %v3504_v15  ;;  %v3521_v34 = vld [vmem:[%s5851_s3 + $0x308] sm:$0xff] }
 0x13a   :  { %v4886_v22 = vadd.f32 %v4815_v6, %v490_v50  ;;  %v487_v26 = vmax.f32 %v4810_v56, %v477_v51  ;;  %3931 = vmatprep.subr.bf16.mxu0 %v3930_v42  ;;  %3939 = vmatprep.subr.bf16.mxu1 %v3938_v43  ;;  %v3461_v56 = vld [vmem:[%s5851_s3 + $0x168] sm:$0xff]  ;;  %v3478_v38 = vld [vmem:[%s5851_s3 + $0x1e0] sm:$0xff]  ;;  %v3972_v47 = vpack.c.bf16 %v3480_v3, %v3476_v16  ;;  %v3486_v52 = vld [vmem:[%s5851_s3 + $0x210] sm:$0xff] }
 0x13b   :  { %753 = vmatprep.mubr.f32.mxu0 %v4318_v41  ;;  %824 = vmatprep.mubr.f32.mxu1 %v4318_v41  ;;  %v3946_v11 = vpack.c.bf16 %v3461_v56, %v3457_v63  ;;  %v3485_v42 = vld [vmem:[%s5851_s3 + $0x208] sm:$0xff]  ;;  %v3964_v46 = vpack.c.bf16 %v3478_v38, %v3474_v37  ;;  %v3982_v51 = vpack.c.bf16 %v3491_v45, %v3487_v44  ;;  %v1014_v63 = vrot.slane %v4842_v30, 6  ;;  %v3512_v28 = vld [vmem:[%s5851_s3 + $0x2d0] sm:$0xff]  ;;  %v3527_v37 = vld [vmem:[%s5851_s3 + $0x338] sm:$0xff] }
 0x13c   :  { %v491_v4 = vmax.f32 %v483_v33, %v487_v26  ;;  %v3462_v33 = vld [vmem:[%s5851_s3 + $0x170] sm:$0xff]  ;;  %v3489_v43 = vld [vmem:[%s5851_s3 + $0x228] sm:$0xff]  ;;  %v3976_v26 = vpack.c.bf16 %v3488_v49, %v3484_v48  ;;  %v3545_v61 = vld [vmem:[%s5851_s3 + $0x3b8] sm:$0xff] }
 0x13d   :  { %3933 = vmatpush1.bf16.msra.mxu0 %v3932_v53  ;;  %3941 = vmatpush1.bf16.msra.mxu1 %v3940_v55  ;;  %v3956_v19 = vpack.c.bf16 %v3462_v33, %v3458_v29  ;;  %v3974_v50 = vpack.c.bf16 %v3489_v43, %v3485_v42  ;;  %v3490_v53 = vld [vmem:[%s5851_s3 + $0x230] sm:$0xff]  ;;  %v3493_v55 = vld [vmem:[%s5851_s3 + $0x248] sm:$0xff]  ;;  %v3506_v29 = vld [vmem:[%s5851_s3 + $0x2a0] sm:$0xff]  ;;  %v500_v33 = vadd.f32 %v4815_v6, %v4847_v31 }
 0x13e   :  { %v4919_v10 = vadd.f32 %v4815_v6, %v491_v4  ;;  %3943 = vmatprep.subr.bf16.mxu0 %v3942_v57  ;;  %3951 = vmatprep.subr.bf16.mxu1 %v3950_v59  ;;  %v3497_v57 = vld [vmem:[%s5851_s3 + $0x268] sm:$0xff]  ;;  %v3984_v59 = vpack.c.bf16 %v3490_v53, %v3486_v52  ;;  %v3498_v4 = vld [vmem:[%s5851_s3 + $0x270] sm:$0xff]  ;;  %v3513_v31 = vld [vmem:[%s5851_s3 + $0x2d8] sm:$0xff] }
 0x13f   :  { %v3978_v56 = vpack.c.bf16 %v3497_v57, %v3493_v55  ;;  %v3515_v6 = vld [vmem:[%s5851_s3 + $0x2e8] sm:$0xff]  ;;  %v5083_v24 = vmax.f32 %v500_v33, 0.0  ;;  %v3516_v32 = vld [vmem:[%s5851_s3 + $0x2f0] sm:$0xff]  ;;  %v3546_v33 = vld [vmem:[%s5851_s3 + $0x3c0] sm:$0xff] }
 0x140   :  { %3446 = vmatmul.mubr.msk.f32.vlgmr.msra.gmra.mrb[32].mxu0 %vm542_vm1, %v4842_v30  ;;  %3447 = vmatmul.mubr.msk.f32.vlgmr.msra.gmra.mrb[32].mxu1 %vm542_vm1, %v4842_v30  ;;  %v3505_v30 = vld [vmem:[%s5851_s3 + $0x298] sm:$0xff]  ;;  %v3522_v42 = vld [vmem:[%s5851_s3 + $0x310] sm:$0xff]  ;;  %v3529_v44 = vld [vmem:[%s5851_s3 + $0x348] sm:$0xff] }
 0x141   :  { %3945 = vmatpush1.bf16.msra.mxu0 %v3944_v5  ;;  %3953 = vmatpush1.bf16.msra.mxu1 %v3952_v7  ;;  %v3503_v5 = vld [vmem:[%s5851_s3 + $0x288] sm:$0xff]  ;;  %v3998_v14 = vpack.c.bf16 %v3509_v8, %v3505_v30  ;;  %v3526_v43 = vld [vmem:[%s5851_s3 + $0x330] sm:$0xff]  ;;  %v1346_v52 = vrot.slane %v5083_v24, 2 }
 0x142   :  { %3947 = vmatprep.subr.bf16.mxu0 %v3946_v11  ;;  %3955 = vmatprep.subr.bf16.mxu1 %v3954_v2  ;;  %v3507_v7 = vld [vmem:[%s5851_s3 + $0x2a8] sm:$0xff]  ;;  %v3988_v11 = vpack.c.bf16 %v3498_v4, %v3494_v1  ;;  %v3502_v2 = vld [vmem:[%s5851_s3 + $0x280] sm:$0xff]  ;;  %v4016_v49 = vpack.c.bf16 %v3526_v43, %v3522_v42  ;;  %v3530_v57 = vld [vmem:[%s5851_s3 + $0x350] sm:$0xff]  ;;  %v1678_v42 = vrot.slane %v5083_v24, 6 }
 0x143   :  { %915 = vmatprep.mubr.f32.mxu0 %v4318_v41  ;;  %986 = vmatprep.mubr.f32.mxu1 %v4318_v41  ;;  %v3990_v12 = vpack.c.bf16 %v3507_v7, %v3503_v5  ;;  %v3992_v20 = vpack.c.bf16 %v3506_v29, %v3502_v2  ;;  %v3533_v45 = vld [vmem:[%s5851_s3 + $0x368] sm:$0xff]  ;;  %v3540_v5 = vld [vmem:[%s5851_s3 + $0x390] sm:$0xff] }
 0x144   :  { %v4010_v53 = vpack.c.bf16 %v3533_v45, %v3529_v44  ;;  %v3544_v7 = vld [vmem:[%s5851_s3 + $0x3b0] sm:$0xff]  ;;  %v3547_v30 = vld [vmem:[%s5851_s3 + $0x3c8] sm:$0xff] }
 0x145   :  { %3949 = vmatpush1.bf16.msra.mxu0 %v3948_v18  ;;  %3957 = vmatpush1.bf16.msra.mxu1 %v3956_v19  ;;  %v3511_v18 = vld [vmem:[%s5851_s3 + $0x2c8] sm:$0xff]  ;;  %v3517_v19 = vld [vmem:[%s5851_s3 + $0x2f8] sm:$0xff]  ;;  %v4032_v29 = vpack.c.bf16 %v3544_v7, %v3540_v5  ;;  %v3566_v45 = vld [vmem:[%s5851_s3 + $0x450] sm:$0xff] }
 0x146   :  { %3959 = vmatprep.subr.bf16.mxu0 %v3958_v21  ;;  %3967 = vmatprep.subr.bf16.mxu1 %v3966_v23  ;;  %v3510_v21 = vld [vmem:[%s5851_s3 + $0x2c0] sm:$0xff]  ;;  %v3994_v25 = vpack.c.bf16 %v3515_v6, %v3511_v18  ;;  %v4002_v27 = vpack.c.bf16 %v3517_v19, %v3513_v31  ;;  %v3551_v8 = vld [vmem:[%s5851_s3 + $0x3e8] sm:$0xff]  ;;  %v3548_v18 = vld [vmem:[%s5851_s3 + $0x3d0] sm:$0xff] }
 0x147   :  { %v3514_v23 = vld [vmem:[%s5851_s3 + $0x2e0] sm:$0xff]  ;;  %v4026_v15 = vpack.c.bf16 %v3551_v8, %v3547_v30  ;;  %v3552_v6 = vld [vmem:[%s5851_s3 + $0x3f0] sm:$0xff]  ;;  %v3557_v31 = vld [vmem:[%s5851_s3 + $0x408] sm:$0xff] }
 0x148   :  { %3464 = vmatmul.mubr.msk.f32.vlgmr.msra.gmra.mrb[32].mxu0 %vm542_vm1, %v848_v39  ;;  %3465 = vmatmul.mubr.msk.f32.vlgmr.msra.gmra.mrb[32].mxu1 %vm542_vm1, %v848_v39  ;;  %v3996_v38 = vpack.c.bf16 %v3514_v23, %v3510_v21  ;;  %v4004_v39 = vpack.c.bf16 %v3516_v32, %v3512_v28  ;;  %v3561_v19 = vld [vmem:[%s5851_s3 + $0x428] sm:$0xff]  ;;  %v4036_v23 = vpack.c.bf16 %v3552_v6, %v3548_v18  ;;  %v3584_v30 = vld [vmem:[%s5851_s3 + $0x4d0] sm:$0xff] }
 0x149   :  { %3961 = vmatpush1.bf16.msra.mxu0 %v3960_v35  ;;  %3969 = vmatpush1.bf16.msra.mxu1 %v3968_v36  ;;  %v3525_v35 = vld [vmem:[%s5851_s3 + $0x328] sm:$0xff]  ;;  %v3523_v36 = vld [vmem:[%s5851_s3 + $0x318] sm:$0xff]  ;;  %v4038_v28 = vpack.c.bf16 %v3561_v19, %v3557_v31  ;;  %v3588_v8 = vld [vmem:[%s5851_s3 + $0x4f0] sm:$0xff] }
 0x14a   :  { %3963 = vmatprep.subr.bf16.mxu0 %v3962_v40  ;;  %3971 = vmatprep.subr.bf16.mxu1 %v3970_v54  ;;  %v3520_v40 = vld [vmem:[%s5851_s3 + $0x300] sm:$0xff]  ;;  %v4006_v16 = vpack.c.bf16 %v3525_v35, %v3521_v34  ;;  %v4014_v3 = vpack.c.bf16 %v3527_v37, %v3523_v36  ;;  %v3558_v34 = vld [vmem:[%s5851_s3 + $0x410] sm:$0xff]  ;;  %v3565_v36 = vld [vmem:[%s5851_s3 + $0x448] sm:$0xff] }
 0x14b   :  { %1081 = vmatprep.mubr.f32.mxu0 %v4318_v41  ;;  %1152 = vmatprep.mubr.f32.mxu1 %v4318_v41  ;;  %v3524_v54 = vld [vmem:[%s5851_s3 + $0x320] sm:$0xff]  ;;  %v3562_v35 = vld [vmem:[%s5851_s3 + $0x430] sm:$0xff]  ;;  %v3569_v37 = vld [vmem:[%s5851_s3 + $0x468] sm:$0xff] }
 0x14c   :  { %v4008_v48 = vpack.c.bf16 %v3524_v54, %v3520_v40  ;;  %v4048_v54 = vpack.c.bf16 %v3562_v35, %v3558_v34  ;;  %v4042_v43 = vpack.c.bf16 %v3569_v37, %v3565_v36  ;;  %v3594_v18 = vld [vmem:[%s5851_s3 + $0x510] sm:$0xff]  ;;  %v3601_v31 = vld [vmem:[%s5851_s3 + $0x548] sm:$0xff] }
 0x14d   :  { %3965 = vmatpush1.bf16.msra.mxu0 %v3964_v46  ;;  %3973 = vmatpush1.bf16.msra.mxu1 %v3972_v47  ;;  %v3531_v46 = vld [vmem:[%s5851_s3 + $0x358] sm:$0xff]  ;;  %v3598_v6 = vld [vmem:[%s5851_s3 + $0x530] sm:$0xff]  ;;  %v3605_v19 = vld [vmem:[%s5851_s3 + $0x568] sm:$0xff] }
 0x14e   :  { %3975 = vmatprep.subr.bf16.mxu0 %v3974_v50  ;;  %3983 = vmatprep.subr.bf16.mxu1 %v3982_v51  ;;  %v3535_v47 = vld [vmem:[%s5851_s3 + $0x378] sm:$0xff]  ;;  %v3528_v50 = vld [vmem:[%s5851_s3 + $0x340] sm:$0xff]  ;;  %v3602_v35 = vld [vmem:[%s5851_s3 + $0x550] sm:$0xff] }
 0x14f   :  { %v3532_v51 = vld [vmem:[%s5851_s3 + $0x360] sm:$0xff]  ;;  %v4018_v55 = vpack.c.bf16 %v3535_v47, %v3531_v46  ;;  %v3570_v46 = vld [vmem:[%s5851_s3 + $0x470] sm:$0xff]  ;;  %v3575_v47 = vld [vmem:[%s5851_s3 + $0x488] sm:$0xff] }
 0x150   :  { %3482 = vmatmul.mubr.msk.f32.vlgmr.msra.gmra.mrb[32].mxu0 %vm542_vm1, %v1014_v63  ;;  %3483 = vmatmul.mubr.msk.f32.vlgmr.msra.gmra.mrb[32].mxu1 %vm542_vm1, %v1014_v63  ;;  %v4012_v62 = vpack.c.bf16 %v3532_v51, %v3528_v50  ;;  %v4020_v63 = vpack.c.bf16 %v3534_v58, %v3530_v57  ;;  %v4052_v51 = vpack.c.bf16 %v3570_v46, %v3566_v45  ;;  %v3576_v58 = vld [vmem:[%s5851_s3 + $0x490] sm:$0xff]  ;;  %v3611_v37 = vld [vmem:[%s5851_s3 + $0x588] sm:$0xff] }
 0x151   :  { %3977 = vmatpush1.bf16.msra.mxu0 %v3976_v26  ;;  %3985 = vmatpush1.bf16.msra.mxu1 %v3984_v59  ;;  %v3543_v26 = vld [vmem:[%s5851_s3 + $0x3a8] sm:$0xff]  ;;  %v3541_v59 = vld [vmem:[%s5851_s3 + $0x398] sm:$0xff]  ;;  %v3606_v36 = vld [vmem:[%s5851_s3 + $0x570] sm:$0xff] }
 0x152   :  { %3979 = vmatprep.subr.bf16.mxu0 %v3978_v56  ;;  %3987 = vmatprep.subr.bf16.mxu1 %v3986_v0  ;;  %v3538_v56 = vld [vmem:[%s5851_s3 + $0x380] sm:$0xff]  ;;  %v4022_v1 = vpack.c.bf16 %v3543_v26, %v3539_v60  ;;  %v4030_v4 = vpack.c.bf16 %v3545_v61, %v3541_v59  ;;  %v3580_v60 = vld [vmem:[%s5851_s3 + $0x4b0] sm:$0xff]  ;;  %v3583_v26 = vld [vmem:[%s5851_s3 + $0x4c8] sm:$0xff] }
 0x153   :  { %1247 = vmatprep.mubr.f32.mxu0 %v4318_v41  ;;  %1318 = vmatprep.mubr.f32.mxu1 %v4318_v41  ;;  %v3542_v0 = vld [vmem:[%s5851_s3 + $0x3a0] sm:$0xff]  ;;  %v3587_v59 = vld [vmem:[%s5851_s3 + $0x4e8] sm:$0xff]  ;;  %v3585_v61 = vld [vmem:[%s5851_s3 + $0x4d8] sm:$0xff] }
 0x154   :  { %v4024_v2 = vpack.c.bf16 %v3542_v0, %v3538_v56  ;;  %v4064_v56 = vpack.c.bf16 %v3580_v60, %v3576_v58  ;;  %v3582_v0 = vld [vmem:[%s5851_s3 + $0x4c0] sm:$0xff]  ;;  %v4058_v5 = vpack.c.bf16 %v3587_v59, %v3583_v26  ;;  %v3612_v45 = vld [vmem:[%s5851_s3 + $0x590] sm:$0xff]  ;;  %v3629_v59 = vld [vmem:[%s5851_s3 + $0x608] sm:$0xff] }
 0x155   :  { %3981 = vmatpush1.bf16.msra.mxu0 %v3980_v9  ;;  %3989 = vmatpush1.bf16.msra.mxu1 %v3988_v11  ;;  %v3549_v9 = vld [vmem:[%s5851_s3 + $0x3d8] sm:$0xff]  ;;  %v3616_v46 = vld [vmem:[%s5851_s3 + $0x5b0] sm:$0xff] }
 0x156   :  { %3991 = vmatprep.subr.bf16.mxu0 %v3990_v12  ;;  %3999 = vmatprep.subr.bf16.mxu1 %v3998_v14  ;;  %v3553_v11 = vld [vmem:[%s5851_s3 + $0x3f8] sm:$0xff]  ;;  %v3550_v12 = vld [vmem:[%s5851_s3 + $0x3e0] sm:$0xff]  ;;  %v1512_v14 = vrot.slane %v5083_v24, 4  ;;  %v3620_v60 = vld [vmem:[%s5851_s3 + $0x5d0] sm:$0xff] }
 0x157   :  { %v4034_v17 = vpack.c.bf16 %v3553_v11, %v3549_v9  ;;  %v4028_v21 = vpack.c.bf16 %v3550_v12, %v3546_v33  ;;  %v3593_v9 = vld [vmem:[%s5851_s3 + $0x508] sm:$0xff]  ;;  %v3595_v11 = vld [vmem:[%s5851_s3 + $0x518] sm:$0xff]  ;;  %v4068_v33 = vpack.c.bf16 %v3588_v8, %v3584_v30  ;;  %v3592_v12 = vld [vmem:[%s5851_s3 + $0x500] sm:$0xff] }
 0x158   :  { %3500 = vmatmul.mubr.msk.f32.vlgmr.msra.gmra.mrb[32].mxu0 %vm542_vm1, %v5083_v24  ;;  %3501 = vmatmul.mubr.msk.f32.vlgmr.msra.gmra.mrb[32].mxu1 %vm542_vm1, %v5083_v24  ;;  %v3577_v24 = vld [vmem:[%s5851_s3 + $0x498] sm:$0xff]  ;;  %v3624_v26 = vld [vmem:[%s5851_s3 + $0x5f0] sm:$0xff] }
 0x159   :  { %3993 = vmatpush1.bf16.msra.mxu0 %v3992_v20  ;;  %4001 = vmatpush1.bf16.msra.mxu1 %v4000_v13  ;;  %v3559_v20 = vld [vmem:[%s5851_s3 + $0x418] sm:$0xff]  ;;  %v3630_v8 = vld [vmem:[%s5851_s3 + $0x610] sm:$0xff] }
 0x15a   :  { %3995 = vmatprep.subr.bf16.mxu0 %v3994_v25  ;;  %4003 = vmatprep.subr.bf16.mxu1 %v4002_v27  ;;  %v3563_v13 = vld [vmem:[%s5851_s3 + $0x438] sm:$0xff]  ;;  %v3556_v25 = vld [vmem:[%s5851_s3 + $0x400] sm:$0xff] }
 0x15b   :  { %1413 = vmatprep.mubr.f32.mxu0 %v4318_v41  ;;  %1484 = vmatprep.mubr.f32.mxu1 %v4318_v41  ;;  %v3560_v27 = vld [vmem:[%s5851_s3 + $0x420] sm:$0xff]  ;;  %v4046_v32 = vpack.c.bf16 %v3563_v13, %v3559_v20  ;;  %v3603_v20 = vld [vmem:[%s5851_s3 + $0x558] sm:$0xff] }
 0x15c   :  { %v4040_v40 = vpack.c.bf16 %v3560_v27, %v3556_v25  ;;  %v3607_v13 = vld [vmem:[%s5851_s3 + $0x578] sm:$0xff]  ;;  %v3600_v25 = vld [vmem:[%s5851_s3 + $0x540] sm:$0xff] }
 0x15d   :  { %3997 = vmatpush1.bf16.msra.mxu0 %v3996_v38  ;;  %4005 = vmatpush1.bf16.msra.mxu1 %v4004_v39  ;;  %v3567_v38 = vld [vmem:[%s5851_s3 + $0x458] sm:$0xff]  ;;  %v3604_v27 = vld [vmem:[%s5851_s3 + $0x560] sm:$0xff]  ;;  %v4082_v34 = vpack.c.bf16 %v3607_v13, %v3603_v20  ;;  %v3647_v20 = vld [vmem:[%s5851_s3 + $0x688] sm:$0xff] }
 0x15e   :  { %4007 = vmatprep.subr.bf16.mxu0 %v4006_v16  ;;  %4015 = vmatprep.subr.bf16.mxu1 %v4014_v3  ;;  %v3571_v39 = vld [vmem:[%s5851_s3 + $0x478] sm:$0xff]  ;;  %v3564_v16 = vld [vmem:[%s5851_s3 + $0x440] sm:$0xff]  ;;  %v3651_v13 = vld [vmem:[%s5851_s3 + $0x6a8] sm:$0xff] }
 0x15f   :  { %v3568_v3 = vld [vmem:[%s5851_s3 + $0x460] sm:$0xff]  ;;  %v4050_v44 = vpack.c.bf16 %v3571_v39, %v3567_v38  ;;  %v3615_v38 = vld [vmem:[%s5851_s3 + $0x5a8] sm:$0xff]  ;;  %v3613_v39 = vld [vmem:[%s5851_s3 + $0x598] sm:$0xff] }
 0x160   :  { %3518 = vmatmul.mubr.msk.f32.vlgmr.msra.gmra.mrb[32].mxu0 %vm542_vm1, %v1346_v52  ;;  %3519 = vmatmul.mubr.msk.f32.vlgmr.msra.gmra.mrb[32].mxu1 %vm542_vm1, %v1346_v52  ;;  %v4044_v50 = vpack.c.bf16 %v3568_v3, %v3564_v16  ;;  %v3574_v52 = vld [vmem:[%s5851_s3 + $0x480] sm:$0xff]  ;;  %v4084_v16 = vpack.c.bf16 %v3606_v36, %v3602_v35  ;;  %v3648_v35 = vld [vmem:[%s5851_s3 + $0x690] sm:$0xff] }
 0x161   :  { %4009 = vmatpush1.bf16.msra.mxu0 %v4008_v48  ;;  %4017 = vmatpush1.bf16.msra.mxu1 %v4016_v49  ;;  %v3579_v48 = vld [vmem:[%s5851_s3 + $0x4a8] sm:$0xff]  ;;  %v3581_v49 = vld [vmem:[%s5851_s3 + $0x4b8] sm:$0xff]  ;;  %v3610_v3 = vld [vmem:[%s5851_s3 + $0x580] sm:$0xff] }
 0x162   :  { %4011 = vmatprep.subr.bf16.mxu0 %v4010_v53  ;;  %4019 = vmatprep.subr.bf16.mxu1 %v4018_v55  ;;  %v3578_v53 = vld [vmem:[%s5851_s3 + $0x4a0] sm:$0xff]  ;;  %v4054_v55 = vpack.c.bf16 %v3579_v48, %v3575_v47  ;;  %v4062_v57 = vpack.c.bf16 %v3581_v49, %v3577_v24  ;;  %v3619_v47 = vld [vmem:[%s5851_s3 + $0x5c8] sm:$0xff]  ;;  %v3621_v24 = vld [vmem:[%s5851_s3 + $0x5d8] sm:$0xff] }
 0x163   :  { %1579 = vmatprep.mubr.f32.mxu0 %v4318_v41  ;;  %1650 = vmatprep.mubr.f32.mxu1 %v4318_v41  ;;  %v3623_v48 = vld [vmem:[%s5851_s3 + $0x5e8] sm:$0xff]  ;;  %v3625_v49 = vld [vmem:[%s5851_s3 + $0x5f8] sm:$0xff]  ;;  %v3652_v36 = vld [vmem:[%s5851_s3 + $0x6b0] sm:$0xff] }
 0x164   :  { %v4098_v58 = vpack.c.bf16 %v3625_v49, %v3621_v24  ;;  %v3667_v24 = vld [vmem:[%s5851_s3 + $0x718] sm:$0xff] }
 0x165   :  { %4013 = vmatpush1.bf16.msra.mxu0 %v4012_v62  ;;  %4021 = vmatpush1.bf16.msra.mxu1 %v4020_v63  ;;  %v3589_v62 = vld [vmem:[%s5851_s3 + $0x4f8] sm:$0xff]  ;;  %v4056_v63 = vpack.c.bf16 %v3578_v53, %v3574_v52  ;;  %v3618_v52 = vld [vmem:[%s5851_s3 + $0x5c0] sm:$0xff] }
 0x166   :  { %4023 = vmatprep.subr.bf16.mxu0 %v4022_v1  ;;  %4031 = vmatprep.subr.bf16.mxu1 %v4030_v4  ;;  %v3586_v1 = vld [vmem:[%s5851_s3 + $0x4e0] sm:$0xff]  ;;  %v5299_v4 = vmax.f32 %v4886_v22, 0.0  ;;  %v4066_v7 = vpack.c.bf16 %v3589_v62, %v3585_v61  ;;  %v3597_v22 = vld [vmem:[%s5851_s3 + $0x528] sm:$0xff]  ;;  %v3631_v62 = vld [vmem:[%s5851_s3 + $0x618] sm:$0xff] }
 0x167   :  { %v3622_v53 = vld [vmem:[%s5851_s3 + $0x5e0] sm:$0xff]  ;;  %v3633_v61 = vld [vmem:[%s5851_s3 + $0x628] sm:$0xff]  ;;  %v3671_v49 = vld [vmem:[%s5851_s3 + $0x738] sm:$0xff] }
 0x168   :  { %3536 = vmatmul.mubr.msk.f32.vlgmr.msra.gmra.mrb[32].mxu0 %vm542_vm1, %v1512_v14  ;;  %3537 = vmatmul.mubr.msk.f32.vlgmr.msra.gmra.mrb[32].mxu1 %vm542_vm1, %v1512_v14  ;;  %v3596_v14 = vld [vmem:[%s5851_s3 + $0x520] sm:$0xff] }
 0x169   :  { %4025 = vmatpush1.bf16.msra.mxu0 %v4024_v2  ;;  %4033 = vmatpush1.bf16.msra.mxu1 %v4032_v29  ;;  %v3599_v2 = vld [vmem:[%s5851_s3 + $0x538] sm:$0xff]  ;;  %v4060_v29 = vpack.c.bf16 %v3586_v1, %v3582_v0  ;;  %v4100_v0 = vpack.c.bf16 %v3624_v26, %v3620_v60  ;;  %v3628_v1 = vld [vmem:[%s5851_s3 + $0x600] sm:$0xff]  ;;  %v3670_v60 = vld [vmem:[%s5851_s3 + $0x730] sm:$0xff] }
 0x16a   :  { %4027 = vmatprep.subr.bf16.mxu0 %v4026_v15  ;;  %4035 = vmatprep.subr.bf16.mxu1 %v4034_v17  ;;  %v4070_v15 = vpack.c.bf16 %v3597_v22, %v3593_v9  ;;  %v4078_v17 = vpack.c.bf16 %v3599_v2, %v3595_v11  ;;  %v3634_v9 = vld [vmem:[%s5851_s3 + $0x630] sm:$0xff]  ;;  %v3637_v22 = vld [vmem:[%s5851_s3 + $0x648] sm:$0xff]  ;;  %v3639_v2 = vld [vmem:[%s5851_s3 + $0x658] sm:$0xff] }
 0x16b   :  { %1745 = vmatprep.mubr.f32.mxu0 %v4318_v41  ;;  %1816 = vmatprep.mubr.f32.mxu1 %v4318_v41  ;;  %v3641_v11 = vld [vmem:[%s5851_s3 + $0x668] sm:$0xff] }
 0x16c   :  { %v3673_v26 = vld [vmem:[%s5851_s3 + $0x748] sm:$0xff] }
 0x16d   :  { %4029 = vmatpush1.bf16.msra.mxu0 %v4028_v21  ;;  %4037 = vmatpush1.bf16.msra.mxu1 %v4036_v23  ;;  %v4072_v21 = vpack.c.bf16 %v3596_v14, %v3592_v12  ;;  %v4080_v23 = vpack.c.bf16 %v3598_v6, %v3594_v18  ;;  %v4112_v12 = vpack.c.bf16 %v3634_v9, %v3630_v8  ;;  %v3636_v14 = vld [vmem:[%s5851_s3 + $0x640] sm:$0xff]  ;;  %v3674_v8 = vld [vmem:[%s5851_s3 + $0x750] sm:$0xff] }
 0x16e   :  { %4039 = vmatprep.subr.bf16.mxu0 %v4038_v28  ;;  %4047 = vmatprep.subr.bf16.mxu1 %v4046_v32  ;;  %v2010_v28 = vrot.slane %v5299_v4, 2  ;;  %v4074_v32 = vpack.c.bf16 %v3605_v19, %v3601_v31  ;;  %v4106_v18 = vpack.c.bf16 %v3641_v11, %v3637_v22  ;;  %v3638_v31 = vld [vmem:[%s5851_s3 + $0x650] sm:$0xff]  ;;  %v3683_v22 = vld [vmem:[%s5851_s3 + $0x788] sm:$0xff] }
 0x16f   :  { %v3642_v19 = vld [vmem:[%s5851_s3 + $0x670] sm:$0xff]  ;;  %v3687_v11 = vld [vmem:[%s5851_s3 + $0x7a8] sm:$0xff] }
 0x170   :  { %3554 = vmatmul.mubr.msk.f32.vlgmr.msra.gmra.mrb[32].mxu0 %vm542_vm1, %v1678_v42  ;;  %3555 = vmatmul.mubr.msk.f32.vlgmr.msra.gmra.mrb[32].mxu1 %vm542_vm1, %v1678_v42  ;;  %v3614_v42 = vld [vmem:[%s5851_s3 + $0x5a0] sm:$0xff]  ;;  %v3678_v9 = vld [vmem:[%s5851_s3 + $0x770] sm:$0xff] }
 0x171   :  { %4041 = vmatpush1.bf16.msra.mxu0 %v4040_v40  ;;  %4049 = vmatpush1.bf16.msra.mxu1 %v4048_v54  ;;  %v3617_v40 = vld [vmem:[%s5851_s3 + $0x5b8] sm:$0xff]  ;;  %v4076_v54 = vpack.c.bf16 %v3604_v27, %v3600_v25  ;;  %v4116_v25 = vpack.c.bf16 %v3642_v19, %v3638_v31  ;;  %v3646_v27 = vld [vmem:[%s5851_s3 + $0x680] sm:$0xff]  ;;  %v3688_v31 = vld [vmem:[%s5851_s3 + $0x7b0] sm:$0xff] }
 0x172   :  { %4043 = vmatprep.subr.bf16.mxu0 %v4042_v43  ;;  %4051 = vmatprep.subr.bf16.mxu1 %v4050_v44  ;;  %v4086_v43 = vpack.c.bf16 %v3615_v38, %v3611_v37  ;;  %v4094_v44 = vpack.c.bf16 %v3617_v40, %v3613_v39  ;;  %v3655_v37 = vld [vmem:[%s5851_s3 + $0x6c8] sm:$0xff]  ;;  %v3657_v39 = vld [vmem:[%s5851_s3 + $0x6d8] sm:$0xff] }
 0x173   :  { %1911 = vmatprep.mubr.f32.mxu0 %v4318_v41  ;;  %1982 = vmatprep.mubr.f32.mxu1 %v4318_v41  ;;  %v3659_v38 = vld [vmem:[%s5851_s3 + $0x6e8] sm:$0xff]  ;;  %v3661_v40 = vld [vmem:[%s5851_s3 + $0x6f8] sm:$0xff] }
 0x174   :  { %v3691_v19 = vld [vmem:[%s5851_s3 + $0x7c8] sm:$0xff] }
 0x175   :  { %4045 = vmatpush1.bf16.msra.mxu0 %v4044_v50  ;;  %4053 = vmatpush1.bf16.msra.mxu1 %v4052_v51  ;;  %v4088_v50 = vpack.c.bf16 %v3614_v42, %v3610_v3  ;;  %v4096_v51 = vpack.c.bf16 %v3616_v46, %v3612_v45  ;;  %v3654_v3 = vld [vmem:[%s5851_s3 + $0x6c0] sm:$0xff]  ;;  %v4130_v45 = vpack.c.bf16 %v3661_v40, %v3657_v39  ;;  %v3656_v46 = vld [vmem:[%s5851_s3 + $0x6d0] sm:$0xff]  ;;  %v3234_v40 = vld [vmem:[%s5853_s5 + $0x188] sm:$0xff] }
 0x176   :  { %4055 = vmatprep.subr.bf16.mxu0 %v4054_v55  ;;  %4063 = vmatprep.subr.bf16.mxu1 %v4062_v57  ;;  %v2176_v55 = vrot.slane %v5299_v4, 4  ;;  %v4090_v57 = vpack.c.bf16 %v3623_v48, %v3619_v47  ;;  %v3658_v42 = vld [vmem:[%s5851_s3 + $0x6e0] sm:$0xff]  ;;  %v3660_v47 = vld [vmem:[%s5851_s3 + $0x6f0] sm:$0xff]  ;;  %v3665_v48 = vld [vmem:[%s5851_s3 + $0x708] sm:$0xff] }
 0x177   :  { %v3233_v39 = vld [vmem:[%s5853_s5 + $0x180] sm:$0xff] }
 0x178   :  { %3572 = vmatmul.mubr.msk.f32.vlgmr.msra.gmra.mrb[32].mxu0 %vm542_vm1, %v5299_v4  ;;  %3573 = vmatmul.mubr.msk.f32.vlgmr.msra.gmra.mrb[32].mxu1 %vm542_vm1, %v5299_v4 }
 0x179   :  { %4057 = vmatpush1.bf16.msra.mxu0 %v4056_v63  ;;  %4065 = vmatpush1.bf16.msra.mxu1 %v4064_v56  ;;  %v3635_v63 = vld [vmem:[%s5851_s3 + $0x638] sm:$0xff]  ;;  %v4092_v56 = vpack.c.bf16 %v3622_v53, %v3618_v52  ;;  %v3664_v52 = vld [vmem:[%s5851_s3 + $0x700] sm:$0xff] }
 0x17a   :  { %4059 = vmatprep.subr.bf16.mxu0 %v4058_v5  ;;  %4067 = vmatprep.subr.bf16.mxu1 %v4066_v7  ;;  %v3632_v5 = vld [vmem:[%s5851_s3 + $0x620] sm:$0xff]  ;;  %v4102_v7 = vpack.c.bf16 %v3633_v61, %v3629_v59  ;;  %v4110_v30 = vpack.c.bf16 %v3635_v63, %v3631_v62  ;;  %v3677_v59 = vld [vmem:[%s5851_s3 + $0x768] sm:$0xff]  ;;  %v3675_v61 = vld [vmem:[%s5851_s3 + $0x758] sm:$0xff] }
 0x17b   :  { %2077 = vmatprep.mubr.f32.mxu0 %v4318_v41  ;;  %2148 = vmatprep.mubr.f32.mxu1 %v4318_v41  ;;  %v3668_v53 = vld [vmem:[%s5851_s3 + $0x720] sm:$0xff]  ;;  %v3679_v62 = vld [vmem:[%s5851_s3 + $0x778] sm:$0xff] }
 0x17c   :  { %v4136_v63 = vpack.c.bf16 %v3668_v53, %v3664_v52  ;;  %v3188_v52 = vld [vmem:[%s5853_s5 + $0x18] sm:$0xff] }
 0x17d   :  { %4061 = vmatpush1.bf16.msra.mxu0 %v4060_v29  ;;  %4069 = vmatpush1.bf16.msra.mxu1 %v4068_v33  ;;  %v3643_v29 = vld [vmem:[%s5851_s3 + $0x678] sm:$0xff]  ;;  %v4104_v33 = vpack.c.bf16 %v3632_v5, %v3628_v1  ;;  %v3676_v1 = vld [vmem:[%s5851_s3 + $0x760] sm:$0xff] }
 0x17e   :  { %4071 = vmatprep.subr.bf16.mxu0 %v4070_v15  ;;  %4079 = vmatprep.subr.bf16.mxu1 %v4078_v17  ;;  %v3640_v15 = vld [vmem:[%s5851_s3 + $0x660] sm:$0xff]  ;;  %v2342_v17 = vrot.slane %v5299_v4, 6  ;;  %v4114_v6 = vpack.c.bf16 %v3643_v29, %v3639_v2  ;;  %v3649_v4 = vld [vmem:[%s5851_s3 + $0x698] sm:$0xff] }
 0x17f   :  { %v3685_v2 = vld [vmem:[%s5851_s3 + $0x798] sm:$0xff] }
 0x180   :  { %3590 = vmatmul.mubr.msk.f32.vlgmr.msra.gmra.mrb[32].mxu0 %vm542_vm1, %v2010_v28  ;;  %3591 = vmatmul.mubr.msk.f32.vlgmr.msra.gmra.mrb[32].mxu1 %vm542_vm1, %v2010_v28  ;;  %v3650_v28 = vld [vmem:[%s5851_s3 + $0x6a0] sm:$0xff]  ;;  %v3689_v29 = vld [vmem:[%s5851_s3 + $0x7b8] sm:$0xff] }
 0x181   :  { %4073 = vmatpush1.bf16.msra.mxu0 %v4072_v21  ;;  %4081 = vmatpush1.bf16.msra.mxu1 %v4080_v23  ;;  %v3653_v21 = vld [vmem:[%s5851_s3 + $0x6b8] sm:$0xff]  ;;  %v4108_v23 = vpack.c.bf16 %v3640_v15, %v3636_v14  ;;  %v3682_v14 = vld [vmem:[%s5851_s3 + $0x780] sm:$0xff] }
 0x182   :  { %4075 = vmatprep.subr.bf16.mxu0 %v4074_v32  ;;  %4083 = vmatprep.subr.bf16.mxu1 %v4082_v34  ;;  %v4118_v32 = vpack.c.bf16 %v3651_v13, %v3647_v20  ;;  %v4126_v34 = vpack.c.bf16 %v3653_v21, %v3649_v4  ;;  %v3686_v15 = vld [vmem:[%s5851_s3 + $0x7a0] sm:$0xff]  ;;  %v3695_v20 = vld [vmem:[%s5851_s3 + $0x7e8] sm:$0xff]  ;;  %v3693_v13 = vld [vmem:[%s5851_s3 + $0x7d8] sm:$0xff] }
 0x183   :  { %2243 = vmatprep.mubr.f32.mxu0 %v4318_v41  ;;  %2314 = vmatprep.mubr.f32.mxu1 %v4318_v41  ;;  %v3697_v4 = vld [vmem:[%s5851_s3 + $0x7f8] sm:$0xff]  ;;  %v4152_v21 = vpack.c.bf16 %v3686_v15, %v3682_v14 }
 0x185   :  { %4077 = vmatpush1.bf16.msra.mxu0 %v4076_v54  ;;  %4085 = vmatpush1.bf16.msra.mxu1 %v4084_v16  ;;  %v4120_v54 = vpack.c.bf16 %v3650_v28, %v3646_v27  ;;  %v4128_v16 = vpack.c.bf16 %v3652_v36, %v3648_v35  ;;  %v3694_v27 = vld [vmem:[%s5851_s3 + $0x7e0] sm:$0xff]  ;;  %v3692_v35 = vld [vmem:[%s5851_s3 + $0x7d0] sm:$0xff] }
 0x186   :  { %4087 = vmatprep.subr.bf16.mxu0 %v4086_v43  ;;  %4095 = vmatprep.subr.bf16.mxu1 %v4094_v44  ;;  %v5515_v43 = vmax.f32 %v4919_v10, 0.0  ;;  %v4122_v44 = vpack.c.bf16 %v3659_v38, %v3655_v37  ;;  %v3669_v10 = vld [vmem:[%s5851_s3 + $0x728] sm:$0xff]  ;;  %v3696_v36 = vld [vmem:[%s5851_s3 + $0x7f0] sm:$0xff]  ;;  %v3201_v37 = vld [vmem:[%s5853_s5 + $0x80] sm:$0xff] }
 0x187   :  { %v3202_v38 = vld [vmem:[%s5853_s5 + $0x88] sm:$0xff] }
 0x188   :  { %3608 = vmatmul.mubr.msk.f32.vlgmr.msra.gmra.mrb[32].mxu0 %vm542_vm1, %v2176_v55  ;;  %3609 = vmatmul.mubr.msk.f32.vlgmr.msra.gmra.mrb[32].mxu1 %vm542_vm1, %v2176_v55  ;;  %v4134_v55 = vpack.c.bf16 %v3669_v10, %v3665_v48  ;;  %v2674_v5 = vrot.slane %v5515_v43, 2  ;;  %v2840_v28 = vrot.slane %v5515_v43, 4  ;;  %v3203_v48 = vld [vmem:[%s5853_s5 + $0x90] sm:$0xff]  ;;  %v3204_v10 = vld [vmem:[%s5853_s5 + $0x98] sm:$0xff]  ;;  %v3006_v53 = vrot.slane %v5515_v43, 6 }
 0x189   :  { %4089 = vmatpush1.bf16.msra.mxu0 %v4088_v50  ;;  %4097 = vmatpush1.bf16.msra.mxu1 %v4096_v51  ;;  %v4124_v50 = vpack.c.bf16 %v3658_v42, %v3654_v3  ;;  %v4132_v51 = vpack.c.bf16 %v3660_v47, %v3656_v46  ;;  %v3185_v3 = vld [vmem:[%s5853_s5] sm:$0xff]  ;;  %v3186_v42 = vld [vmem:[%s5853_s5 + $0x8] sm:$0xff] }
 0x18a   :  { %4091 = vmatprep.subr.bf16.mxu0 %v4090_v57  ;;  %4099 = vmatprep.subr.bf16.mxu1 %v4098_v58  ;;  %v4142_v57 = vpack.c.bf16 %v3671_v49, %v3667_v24  ;;  %v3666_v58 = vld [vmem:[%s5851_s3 + $0x710] sm:$0xff]  ;;  %v3217_v46 = vld [vmem:[%s5853_s5 + $0x100] sm:$0xff]  ;;  %v3218_v47 = vld [vmem:[%s5853_s5 + $0x108] sm:$0xff] }
 0x18b   :  { %2409 = vmatprep.mubr.f32.mxu0 %v4318_v41  ;;  %2480 = vmatprep.mubr.f32.mxu1 %v4318_v41  ;;  %v3235_v24 = vld [vmem:[%s5853_s5 + $0x190] sm:$0xff]  ;;  %v3236_v49 = vld [vmem:[%s5853_s5 + $0x198] sm:$0xff] }
 0x18d   :  { %4093 = vmatpush1.bf16.msra.mxu0 %v4092_v56  ;;  %4101 = vmatpush1.bf16.msra.mxu1 %v4100_v0  ;;  %v4144_v56 = vpack.c.bf16 %v3670_v60, %v3666_v58  ;;  %v3672_v0 = vld [vmem:[%s5851_s3 + $0x740] sm:$0xff]  ;;  %v3219_v58 = vld [vmem:[%s5853_s5 + $0x110] sm:$0xff]  ;;  %v3220_v60 = vld [vmem:[%s5853_s5 + $0x118] sm:$0xff] }
 0x18e   :  { %4103 = vmatprep.subr.bf16.mxu0 %v4102_v7  ;;  %4111 = vmatprep.subr.bf16.mxu1 %v4110_v30  ;;  %v4138_v7 = vpack.c.bf16 %v3677_v59, %v3673_v26  ;;  %v4146_v30 = vpack.c.bf16 %v3679_v62, %v3675_v61  ;;  %v3205_v26 = vld [vmem:[%s5853_s5 + $0xa0] sm:$0xff]  ;;  %v3238_v61 = vld [vmem:[%s5853_s5 + $0x1a8] sm:$0xff] }
 0x18f   :  { %v3237_v59 = vld [vmem:[%s5853_s5 + $0x1a0] sm:$0xff] }
 0x190   :  { %3626 = vmatmul.mubr.msk.f32.vlgmr.msra.gmra.mrb[32].mxu0 %vm542_vm1, %v2342_v17  ;;  %3627 = vmatmul.mubr.msk.f32.vlgmr.msra.gmra.mrb[32].mxu1 %vm542_vm1, %v2342_v17  ;;  %v4150_v17 = vpack.c.bf16 %v3687_v11, %v3683_v22  ;;  %v3239_v22 = vld [vmem:[%s5853_s5 + $0x1b0] sm:$0xff]  ;;  %v3240_v11 = vld [vmem:[%s5853_s5 + $0x1b8] sm:$0xff] }
 0x191   :  { %4105 = vmatpush1.bf16.msra.mxu0 %v4104_v33  ;;  %4113 = vmatpush1.bf16.msra.mxu1 %v4112_v12  ;;  %v4140_v33 = vpack.c.bf16 %v3676_v1, %v3672_v0  ;;  %v4148_v12 = vpack.c.bf16 %v3678_v9, %v3674_v8  ;;  %v3190_v0 = vld [vmem:[%s5853_s5 + $0x28] sm:$0xff]  ;;  %v3207_v8 = vld [vmem:[%s5853_s5 + $0xb0] sm:$0xff]  ;;  %v3208_v9 = vld [vmem:[%s5853_s5 + $0xb8] sm:$0xff]  ;;  %v4210_v15 = vpack.c.bf16 %v3240_v11, %v3239_v22 }
 0x192   :  { %4107 = vmatprep.subr.bf16.mxu0 %v4106_v18  ;;  %4115 = vmatprep.subr.bf16.mxu1 %v4114_v6  ;;  %v4158_v18 = vpack.c.bf16 %v3689_v29, %v3685_v2  ;;  %v3684_v6 = vld [vmem:[%s5851_s3 + $0x790] sm:$0xff]  ;;  %v4178_v14 = vpack.c.bf16 %v3208_v9, %v3207_v8  ;;  %v3155_v22 = vld [vmem:[%s5852_s4] sm:$0xf] }
 0x193   :  { %2575 = vmatprep.mubr.f32.mxu0 %v4318_v41  ;;  %2646 = vmatprep.mubr.f32.mxu1 %v4318_v41 }
 0x195   :  { %4109 = vmatpush1.bf16.msra.mxu0 %v4108_v23  ;;  %4117 = vmatpush1.bf16.msra.mxu1 %v4116_v25  ;;  %v4160_v23 = vpack.c.bf16 %v3688_v31, %v3684_v6  ;;  %v3690_v25 = vld [vmem:[%s5851_s3 + $0x7c0] sm:$0xff]  ;;  %v3210_v31 = vld [vmem:[%s5853_s5 + $0xc8] sm:$0xff] }
 0x196   :  { %4119 = vmatprep.subr.bf16.mxu0 %v4118_v32  ;;  %4127 = vmatprep.subr.bf16.mxu1 %v4126_v34  ;;  %v4154_v32 = vpack.c.bf16 %v3695_v20, %v3691_v19  ;;  %v4162_v34 = vpack.c.bf16 %v3697_v4, %v3693_v13  ;;  %v3209_v6 = vld [vmem:[%s5853_s5 + $0xc0] sm:$0xff]  ;;  %v3242_v20 = vld [vmem:[%s5853_s5 + $0x1c8] sm:$0xff] }
 0x197   :  { %v3241_v19 = vld [vmem:[%s5853_s5 + $0x1c0] sm:$0xff] }
 0x198   :  { %3644 = vmatmul.mubr.msk.f32.vlgmr.msra.gmra.mrb[32].mxu0 %vm542_vm1, %v5515_v43  ;;  %3645 = vmatmul.mubr.msk.f32.vlgmr.msra.gmra.mrb[32].mxu1 %vm542_vm1, %v5515_v43  ;;  %v3206_v43 = vld [vmem:[%s5853_s5 + $0xa8] sm:$0xff] }
 0x199   :  { %4121 = vmatpush1.bf16.msra.mxu0 %v4120_v54  ;;  %4129 = vmatpush1.bf16.msra.mxu1 %v4128_v16  ;;  %v4156_v54 = vpack.c.bf16 %v3694_v27, %v3690_v25  ;;  %v4164_v16 = vpack.c.bf16 %v3696_v36, %v3692_v35  ;;  %v4174_v1 = vpack.c.bf16 %v3206_v43, %v3205_v26  ;;  %v3212_v35 = vld [vmem:[%s5853_s5 + $0xd8] sm:$0xff]  ;;  %v3243_v36 = vld [vmem:[%s5853_s5 + $0x1d0] sm:$0xff] }
 0x19a   :  { %4123 = vmatprep.subr.bf16.mxu0 %v4122_v44  ;;  %4131 = vmatprep.subr.bf16.mxu1 %v4130_v45  ;;  %v4166_v44 = vpack.c.bf16 %v3202_v38, %v3201_v37  ;;  %v4198_v45 = vpack.c.bf16 %v3234_v40, %v3233_v39  ;;  %v4182_v25 = vpack.c.bf16 %v3210_v31, %v3209_v6  ;;  %v3244_v37 = vld [vmem:[%s5853_s5 + $0x1d8] sm:$0xff]  ;;  %v3195_v40 = vld [vmem:[%s5853_s5 + $0x50] sm:$0xff] }
 0x19b   :  { %2741 = vmatprep.mubr.f32.mxu0 %v4318_v41  ;;  %2812 = vmatprep.mubr.f32.mxu1 %v4318_v41  ;;  %v4214_v27 = vpack.c.bf16 %v3242_v20, %v3241_v19  ;;  %v3247_v26 = vld [vmem:[%s5853_s5 + $0x1f0] sm:$0xff] }
 0x19d   :  { %4125 = vmatpush1.bf16.msra.mxu0 %v4124_v50  ;;  %4133 = vmatpush1.bf16.msra.mxu1 %v4132_v51  ;;  %v4168_v50 = vpack.c.bf16 %v3186_v42, %v3185_v3  ;;  %v4200_v51 = vpack.c.bf16 %v3218_v47, %v3217_v46  ;;  %v4218_v3 = vpack.c.bf16 %v3244_v37, %v3243_v36  ;;  %v3227_v42 = vld [vmem:[%s5853_s5 + $0x150] sm:$0xff]  ;;  %v3214_v46 = vld [vmem:[%s5853_s5 + $0xe8] sm:$0xff]  ;;  %v3245_v47 = vld [vmem:[%s5853_s5 + $0x1e0] sm:$0xff] }
 0x19e   :  { %4135 = vmatprep.subr.bf16.mxu0 %v4134_v55  ;;  %4143 = vmatprep.subr.bf16.mxu1 %v4142_v57  ;;  %v4170_v55 = vpack.c.bf16 %v3204_v10, %v3203_v48  ;;  %v4202_v57 = vpack.c.bf16 %v3236_v49, %v3235_v24  ;;  %v3246_v48 = vld [vmem:[%s5853_s5 + $0x1e8] sm:$0xff] }
 0x1a0   :  { %3662 = vmatmul.mubr.msk.f32.vlgmr.msra.gmra.mrb[32].mxu0 %vm542_vm1, %v2674_v5  ;;  %3663 = vmatmul.mubr.msk.f32.vlgmr.msra.gmra.mrb[32].mxu1 %vm542_vm1, %v2674_v5  ;;  %v4206_v5 = vpack.c.bf16 %v3238_v61, %v3237_v59  ;;  %v3248_v59 = vld [vmem:[%s5853_s5 + $0x1f8] sm:$0xff]  ;;  %v3199_v61 = vld [vmem:[%s5853_s5 + $0x70] sm:$0xff] }
 0x1a1   :  { %4137 = vmatpush1.bf16.msra.mxu0 %v4136_v63  ;;  %4145 = vmatpush1.bf16.msra.mxu1 %v4144_v56  ;;  %v4204_v63 = vpack.c.bf16 %v3220_v60, %v3219_v58  ;;  %v3189_v56 = vld [vmem:[%s5853_s5 + $0x20] sm:$0xff]  ;;  %v3215_v58 = vld [vmem:[%s5853_s5 + $0xf0] sm:$0xff]  ;;  %v3216_v60 = vld [vmem:[%s5853_s5 + $0xf8] sm:$0xff] }
 0x1a2   :  { %4139 = vmatprep.subr.bf16.mxu0 %v4138_v7  ;;  %4147 = vmatprep.subr.bf16.mxu1 %v4146_v30  ;;  %v3221_v7 = vld [vmem:[%s5853_s5 + $0x120] sm:$0xff]  ;;  %v3222_v30 = vld [vmem:[%s5853_s5 + $0x128] sm:$0xff]  ;;  %v4176_v2 = vpack.c.bf16 %v3190_v0, %v3189_v56  ;;  %v4194_v43 = vpack.c.bf16 %v3216_v60, %v3215_v58  ;;  %v3231_v0 = vld [vmem:[%s5853_s5 + $0x170] sm:$0xff] }
 0x1a3   :  { %2907 = vmatprep.mubr.f32.mxu0 %v4318_v41  ;;  %2978 = vmatprep.mubr.f32.mxu1 %v4318_v41  ;;  %v4208_v29 = vpack.c.bf16 %v3222_v30, %v3221_v7  ;;  %v3157_v7 = vlaneseq }
 0x1a5   :  { %4141 = vmatpush1.bf16.msra.mxu0 %v4140_v33  ;;  %4149 = vmatpush1.bf16.msra.mxu1 %v4148_v12  ;;  %v3191_v33 = vld [vmem:[%s5853_s5 + $0x30] sm:$0xff]  ;;  %v3192_v12 = vld [vmem:[%s5853_s5 + $0x38] sm:$0xff]  ;;  %v3158_v30 = vshrl.u32 %v3157_v7, 7 }
 0x1a6   :  { %4151 = vmatprep.subr.bf16.mxu0 %v4150_v17  ;;  %4159 = vmatprep.subr.bf16.mxu1 %v4158_v18  ;;  %v3223_v17 = vld [vmem:[%s5853_s5 + $0x130] sm:$0xff]  ;;  %v3224_v18 = vld [vmem:[%s5853_s5 + $0x138] sm:$0xff]  ;;  %v4180_v13 = vpack.c.bf16 %v3192_v12, %v3191_v33 }
 0x1a7   :  { %v4212_v4 = vpack.c.bf16 %v3224_v18, %v3223_v17  ;;  %v3159_v8 = vsub.s32 0, %v3158_v30  ;;  %v3167_v9 = vsub.s32 2, %v3158_v30  ;;  %v3163_v11 = vsub.s32 1, %v3158_v30 }
 0x1a8   :  { %3680 = vmatmul.mubr.msk.f32.vlgmr.msra.gmra.mrb[32].mxu0 %vm542_vm1, %v2840_v28  ;;  %3681 = vmatmul.mubr.msk.f32.vlgmr.msra.gmra.mrb[32].mxu1 %vm542_vm1, %v2840_v28  ;;  %v3225_v28 = vld [vmem:[%s5853_s5 + $0x140] sm:$0xff] }
 0x1a9   :  { %4153 = vmatpush1.bf16.msra.mxu0 %v4152_v21  ;;  %4161 = vmatpush1.bf16.msra.mxu1 %v4160_v23  ;;  %v3193_v21 = vld [vmem:[%s5853_s5 + $0x40] sm:$0xff]  ;;  %v3194_v23 = vld [vmem:[%s5853_s5 + $0x48] sm:$0xff]  ;;  %v3168_v33 = vrot.slane %v3155_v22, %v3167_v9  ;;  %v3164_v12 = vrot.slane %v3155_v22, %v3163_v11 }
 0x1aa   :  { %4155 = vmatprep.subr.bf16.mxu0 %v4154_v32  ;;  %4163 = vmatprep.subr.bf16.mxu1 %v4162_v34  ;;  %v3226_v32 = vld [vmem:[%s5853_s5 + $0x148] sm:$0xff]  ;;  %v3211_v34 = vld [vmem:[%s5853_s5 + $0xd0] sm:$0xff]  ;;  %v4184_v38 = vpack.c.bf16 %v3194_v23, %v3193_v21 }
 0x1ab   :  { %3073 = vmatprep.mubr.f32.mxu0 %v4318_v41  ;;  %3144 = vmatprep.mubr.f32.mxu1 %v4318_v41  ;;  %v3187_v41 = vld [vmem:[%s5853_s5 + $0x10] sm:$0xff]  ;;  %v4216_v39 = vpack.c.bf16 %v3226_v32, %v3225_v28  ;;  %v3700_v32 = vld [vmem:[%s5854_s6] ss:$0 sm:$0xff] }
 0x1ac   :  { %v4172_v62 = vpack.c.bf16 %v3188_v52, %v3187_v41  ;;  %v3198_v41 = vld [vmem:[%s5853_s5 + $0x68] sm:$0xff]  ;;  %v3229_v52 = vld [vmem:[%s5853_s5 + $0x160] sm:$0xff] }
 0x1ad   :  { %4157 = vmatpush1.bf16.msra.mxu0 %v4156_v54  ;;  %4165 = vmatpush1.bf16.msra.mxu1 %v4164_v16  ;;  %v3196_v54 = vld [vmem:[%s5853_s5 + $0x58] sm:$0xff]  ;;  %v4186_v16 = vpack.c.bf16 %v3212_v35, %v3211_v34 }
 0x1ae   :  { %4167 = vmatprep.subr.bf16.mxu0 %v4166_v44  ;;  %4199 = vmatprep.subr.bf16.mxu1 %v4198_v45  ;;  %v3228_v44 = vld [vmem:[%s5853_s5 + $0x158] sm:$0xff]  ;;  %v3213_v45 = vld [vmem:[%s5853_s5 + $0xe0] sm:$0xff]  ;;  %v4188_v10 = vpack.c.bf16 %v3196_v54, %v3195_v40 }
 0x1af   :  { %v4220_v24 = vpack.c.bf16 %v3228_v44, %v3227_v42  ;;  %v4190_v49 = vpack.c.bf16 %v3214_v46, %v3213_v45 }
 0x1b0   :  { %3698 = vmatmul.mubr.msk.f32.vlgmr.msra.gmra.mrb[32].mxu0 %vm542_vm1, %v3006_v53  ;;  %3699 = vmatmul.mubr.msk.f32.vlgmr.msra.gmra.mrb[32].mxu1 %vm542_vm1, %v3006_v53 }
 0x1b1   :  { %4169 = vmatpush3.bf16.msra.mxu0 %v4168_v50  ;;  %4201 = vmatpush3.bf16.msra.mxu1 %v4200_v51  ;;  %v4222_v50 = vpack.c.bf16 %v3246_v48, %v3245_v47  ;;  %v3197_v51 = vld [vmem:[%s5853_s5 + $0x60] sm:$0xff] }
 0x1b2   :  { %4171 = vmatprep.subr.bf16.mxu0 %v4170_v55  ;;  %4203 = vmatprep.subr.bf16.mxu1 %v4202_v57  ;;  %v4192_v53 = vpack.c.bf16 %v3198_v41, %v3197_v51  ;;  %v3230_v55 = vld [vmem:[%s5853_s5 + $0x168] sm:$0xff] }
 0x1b3   :  { %v4224_v57 = vpack.c.bf16 %v3230_v55, %v3229_v52 }
 0x1b5   :  { %4173 = vmatpush3.bf16.msra.mxu0 %v4172_v62  ;;  %4205 = vmatpush3.bf16.msra.mxu1 %v4204_v63  ;;  %v3200_v62 = vld [vmem:[%s5853_s5 + $0x78] sm:$0xff]  ;;  %v4226_v63 = vpack.c.bf16 %v3248_v59, %v3247_v26 }
 0x1b6   :  { %4175 = vmatprep.subr.bf16.mxu0 %v4174_v1  ;;  %4207 = vmatprep.subr.bf16.mxu1 %v4206_v5  ;;  %v4196_v56 = vpack.c.bf16 %v3200_v62, %v3199_v61  ;;  %v3232_v1 = vld [vmem:[%s5853_s5 + $0x178] sm:$0xff] }
 0x1b7   :  { %v4228_v5 = vpack.c.bf16 %v3232_v1, %v3231_v0 }
 0x1b9   :  { %4177 = vmatpush3.bf16.msra.mxu0 %v4176_v2  ;;  %4209 = vmatpush3.bf16.msra.mxu1 %v4208_v29  ;;  %v3171_v2 = vsub.s32 3, %v3158_v30  ;;  %v3160_v29 = vrot.slane %v3155_v22, %v3159_v8 }
 0x1ba   :  { %4179 = vmatprep.subr.bf16.mxu0 %v4178_v14  ;;  %4211 = vmatprep.subr.bf16.mxu1 %v4210_v15 }
 0x1bb   :  { %v3172_v14 = vrot.slane %v3155_v22, %v3171_v2 }
 0x1bd   :  { %4181 = vmatpush3.bf16.msra.mxu0 %v4180_v13  ;;  %4213 = vmatpush3.bf16.msra.mxu1 %v4212_v4 }
 0x1be   :  { %4183 = vmatprep.subr.bf16.mxu0 %v4182_v25  ;;  %4215 = vmatprep.subr.bf16.mxu1 %v4214_v27 }
 0x1c1   :  { %4185 = vmatpush3.bf16.msra.mxu0 %v4184_v38  ;;  %4217 = vmatpush3.bf16.msra.mxu1 %v4216_v39 }
 0x1c2   :  { %4187 = vmatprep.subr.bf16.mxu0 %v4186_v16  ;;  %4219 = vmatprep.subr.bf16.mxu1 %v4218_v3 }
 0x1c5   :  { %4189 = vmatpush3.bf16.msra.mxu0 %v4188_v10  ;;  %4221 = vmatpush3.bf16.msra.mxu1 %v4220_v24 }
 0x1c6   :  { %4191 = vmatprep.subr.bf16.mxu0 %v4190_v49  ;;  %4223 = vmatprep.subr.bf16.mxu1 %v4222_v50 }
 0x1c9   :  { %4193 = vmatpush3.bf16.msra.mxu0 %v4192_v53  ;;  %4225 = vmatpush3.bf16.msra.mxu1 %v4224_v57 }
 0x1ca   :  { %4195 = vmatprep.subr.bf16.mxu0 %v4194_v43  ;;  %4227 = vmatprep.subr.bf16.mxu1 %v4226_v63 }
 0x1cd   :  { %4197 = vmatpush3.bf16.msra.mxu0 %v4196_v56  ;;  %4229 = vmatpush3.bf16.msra.mxu1 %v4228_v5 }
 0x283   :  { %v3075_v15 = vpop.f32.mrb[32].mxu0  ;;  %v3146_v17 = vpop.f32.mrb[32].mxu1 }
 0x284   :  { %v3177_v18 = vadd.f32 %v3160_v29, %v3075_v15  ;;  %v3179_v6 = vadd.f32 %v3168_v33, %v3146_v17  ;;  %v3077_v31 = vpop.f32.mrb[33].mxu0  ;;  %v3148_v19 = vpop.f32.mrb[33].mxu1 }
 0x285   :  { %v3178_v20 = vadd.f32 %v3164_v12, %v3077_v31  ;;  %v3180_v13 = vadd.f32 %v3172_v14, %v3148_v19 }
 0x286   :  { %v3181_v23 = vmax.f32 %v3177_v18, 0.0  ;;  %v3183_v25 = vmax.f32 %v3179_v6, 0.0 }
 0x287   :  { %v3182_v4 = vmax.f32 %v3178_v20, 0.0  ;;  %v3184_v21 = vmax.f32 %v3180_v13, 0.0 }
 0x289   :  { %3320 = vmatprep.mubr.f32.mxu0 %v3182_v4  ;;  %3390 = vmatprep.mubr.f32.mxu1 %v3184_v21 }
 0x28a   :  { %3321 = vmatmul.mubr.f32.vlgmr.msra.gmra.mrb[34].mxu0 %v3181_v23  ;;  %3391 = vmatmul.mubr.f32.vlgmr.msra.gmra.mrb[34].mxu1 %v3183_v25 }
 0x35d   :  { %v3813_v27 = vpop.f32.mrb[34].mxu0  ;;  %v3848_v28 = vpop.f32.mrb[34].mxu1 }
 0x35e   :  { %v3814_v34 = vpop.f32.mrb[35].mxu0  ;;  %v3849_v35 = vpop.f32.mrb[35].mxu1 }
 0x35f   :  { %v3815_v36 = vadd.f32 %v3814_v34, %v3813_v27  ;;  %v3850_v37 = vadd.f32 %v3849_v35, %v3848_v28 }
 0x361   :  { %v3323_v38 = vadd.f32 %v3815_v36, %v3700_v32 }
 0x363   :  { %v3393_v39 = vadd.f32 %v3850_v37, %v3323_v38 }
 0x365   :  { %3396 = vst [vmem:[#allocation2] sm:$0x3] %v3393_v39 }
 0x366   :  { %4304 = shalt.err (!%p4301_p4)
}
 0x367   :  { %s4305_s6 = scalar_lea.hbm %s5855_s7, 32 }
 0x368   :  { %p4306_p5 = scmp.ne.s32.totalorder %s5855_s7, %s4305_s6  ;;  %p4309_p6 = scmp.lt.u32.totalorder %s4305_s6, %s5855_s7 }
 0x36a   :  { %p4311_p7 = pnand %p4309_p6, %p4306_p5 }
 0x36c   :  { %4314 = shalt.err (!%p4311_p7)
}
 0x36d   :  { %3406 = dma.vmem_to_hbm [thread:$0]  %s3404_s9, 32, %s5855_s7, [#allocation3]  }
 0x36e   :  { %4315 = dma.done.wait [#allocation3], 32  }
 0x36f   :  { %4316 = vsyncadd [#allocation3], 4294967264 }
 0x370   :  { %3410 = vsyncpa [#allocation3], 1 }

</bundles_post_ra>
